<compile_context>
chip_gen: v7x
topology: tpu7x:2x2x1
jax: 0.10.0
libtpu: 0.0.40
codegen_flags: <defaults>
</compile_context>

<pallas_src>
import functools

import jax
import jax.numpy as jnp
from jax import lax
from jax.experimental import pallas as pl
from jax.experimental.pallas import tpu as pltpu

EPS = 1e-5
AVG_NUM_NEIGHBORS = 10.0
NEG_INF = -1e30
LANE = 128

F0 = 64      # node-embedding width  ('64x0e')
H = 256      # hidden irreps dim     ('64x0e + 64x1o' -> 64 + 3*64)
HO = 64      # hidden-out irreps dim ('64x0e')


def _rup(n, m=LANE):
    return ((n + m - 1) // m) * m


def _pad2(w, rows, cols, dtype=jnp.float32):
    out = jnp.zeros((rows, cols), jnp.float32).at[: w.shape[0], : w.shape[1]].set(w)
    return out.astype(dtype)


def _bn_affine(bn):
    # eval-mode BatchNorm1d == per-feature affine:  y = x * s + t
    s = bn["gamma"] * lax.rsqrt(bn["var"] + EPS)
    return s, bn["beta"] - bn["mean"] * s


def _fold_bn_into_linear(w, b, bn):
    # BN(x @ W + b) == x @ (W * s) + (b * s + t)
    s, t = _bn_affine(bn)
    return w * s[None, :], b * s + t


def _pick_graphs_per_block(num_graphs, num_attributes, target_rows=128):
    """Largest divisor G of num_graphs with G*A <= target_rows (node matmul M/K),
    keeping the grid length >= 2 when possible (v7x has 2 TensorCores)."""
    g = max(1, min(num_graphs, target_rows // max(num_attributes, 1)))
    while num_graphs % g != 0:
        g -= 1
    if g == num_graphs and num_graphs > 1 and num_graphs % 2 == 0:
        g = num_graphs // 2
    return g


# --------------------------------------------------------------------------
# The fused kernel: whole MaceGNN forward for G graphs per grid step
# --------------------------------------------------------------------------
def _fused_forward_kernel(num_convs, num_mlp, *refs):
    bf16, f32 = jnp.bfloat16, jnp.float32

    adj_ref, x_ref, tri_ref, pool_ref, w_emb_ref, w_sc2_ref = refs[:6]
    i = 6
    conv_refs = refs[i:i + 2 * num_convs]; i += 2 * num_convs   # (w_upsc, w_out)*
    zaff_ref = refs[i]; i += 1
    mlp_w_refs = refs[i:i + num_mlp]; i += num_mlp
    wf_ref, bias_ref, o_ref = refs[i], refs[i + 1], refs[i + 2]

    def mm(a_bf16, w_ref):   # bf16 MXU matmul with f32 accumulation
        return jnp.dot(a_bf16, w_ref[...], preferred_element_type=f32)

    x = x_ref[...]        # (GA, a_pad) bf16  node attributes (padded)
    adj = adj_ref[...]    # (GA, GA)    bf16  block-diagonal weighted adjacency
    pool = pool_ref[...]  # (G,  GA)    bf16  per-graph mean-pool matrix

    # node embedding (o3.Linear surrogate) + tanh
    cur = jnp.tanh(mm(x, w_emb_ref))                     # (GA, 64) f32

    # x @ [W_sc2^0 | W_sc2^1 | ...] once — x is layer-invariant
    sc2_all = mm(x, w_sc2_ref)                           # (GA, sum_dout) f32

    # MACE-layer surrogates (1/avg_num_neighbors folded into w_out at build)
    pooled_parts = []
    off = 0
    for l in range(num_convs):
        w_upsc_ref, w_out_ref = conv_refs[2 * l], conv_refs[2 * l + 1]
        dout = w_out_ref.shape[0]
        cur_b = cur.astype(bf16)                         # cast once, reused
        # incremental per-graph mean pooling of the previous layer's features
        pooled_parts.append(jnp.dot(pool, cur_b, preferred_element_type=f32))
        upsc = mm(cur_b, w_upsc_ref)                     # (GA, 2*dout) = [h | sc1]
        h, sc1 = upsc[:, :dout], upsc[:, dout:]
        msg = jnp.dot(adj, h.astype(bf16), preferred_element_type=f32)
        sc = sc1 * sc2_all[:, off:off + dout]
        cur = jnp.tanh(mm(msg.astype(bf16), w_out_ref) + sc)
        off += dout
    pooled_parts.append(jnp.dot(pool, cur.astype(bf16), preferred_element_type=f32))

    # z = BN([triu | pooled_feats]) with both eval-mode BNs folded into one affine
    z = jnp.concatenate([tri_ref[...]] + pooled_parts, axis=1)   # (G, 768) f32
    z = z * zaff_ref[0:1, :] + zaff_ref[1:2, :]

    # MLP (Linear + folded BN + ReLU; Dropout == identity in eval mode)
    for l in range(num_mlp):
        w_ref = mlp_w_refs[l]
        z = jnp.maximum(mm(z.astype(bf16), w_ref)
                        + bias_ref[l:l + 1, :w_ref.shape[1]], 0.0)

    # final linear + log-softmax.  Padded class columns carry a -1e30 (f32)
    # bias: real logits are always far larger, so the row max ignores them and
    # exp() underflows them to exactly 0 in the softmax denominator.
    y = mm(z.astype(bf16), wf_ref) + bias_ref[num_mlp:num_mlp + 1, :wf_ref.shape[1]]
    m = jnp.max(y, axis=-1, keepdims=True)
    ys = y - m
    lse = jnp.log(jnp.sum(jnp.exp(ys), axis=-1, keepdims=True))
    o_ref[...] = ys - lse


# --------------------------------------------------------------------------
# Wrapper: one pallas_call, grid over blocks of G graphs (parallel)
# --------------------------------------------------------------------------
def mace_gnn_forward(x, adj_blocks, kp, num_graphs, num_attributes, num_classes,
                     graphs_per_block):
    B, A, G = num_graphs, num_attributes, graphs_per_block
    assert B % G == 0, (B, G)
    NB = B // G
    GA = G * A
    N = B * A
    a_pad = kp["w_emb"].shape[0]
    cls_pad = kp["final_w"].shape[1]
    tri = (A * (A - 1)) // 2
    tri_pad = _rup(tri)

    # ---- host-side layout plumbing (cheap XLA ops; constant shapes under jit)
    x_pad = jnp.zeros((N, a_pad), jnp.float32).at[:, :A].set(x).astype(jnp.bfloat16)

    iu0, iu1 = jnp.triu_indices(A, k=1)
    # TODO(synk): PyTorch keeps nonzero() entries of triu(); with a zero diagonal
    # and dense off-diagonal inputs this equals the strict upper triangle.
    x_tri = x.reshape(B, A, A)[:, iu0, iu1]
    tri_in = jnp.zeros((B, tri_pad), jnp.float32).at[:, :tri].set(x_tri)

    # block-diagonal adjacency: G graphs per grid step -> one (GA,GA) MXU matmul
    adj_r = adj_blocks.reshape(NB, G, A, A)
    eye_g = jnp.eye(G, dtype=adj_blocks.dtype)
    adj_bd = adj_r[:, :, None, :, :] * eye_g[None, :, :, None, None]   # (NB,G,G,A,A)
    adj_bd = adj_bd.transpose(0, 1, 3, 2, 4).reshape(NB, GA, GA).astype(jnp.bfloat16)

    # per-graph mean pooling as an MXU matmul: (G, GA) @ (GA, D)
    pool_mat = jnp.kron(jnp.eye(G, dtype=jnp.float32),
                        jnp.full((1, A), 1.0 / A, jnp.float32)).astype(jnp.bfloat16)

    args = [adj_bd, x_pad, tri_in, pool_mat, kp["w_emb"], kp["w_sc2_all"]]
    for c in kp["convs"]:
        args += [c["w_upsc"], c["w_out"]]
    args += [kp["z_aff"]]
    args += list(kp["mlp_w"])
    args += [kp["final_w"], kp["bias_stack"]]

    def _whole(arr):   # grid-invariant tensors: fetched once per block index (0,..)
        nd = arr.ndim
        return pl.BlockSpec(arr.shape, lambda g, _nd=nd: (0,) * _nd)

    in_specs = [
        pl.BlockSpec((None, GA, GA), lambda g: (g, 0, 0)),   # block-diag adjacency
        pl.BlockSpec((GA, a_pad), lambda g: (g, 0)),         # this block's node attrs
        pl.BlockSpec((G, tri_pad), lambda g: (g, 0)),        # this block's triu rows
    ] + [_whole(a) for a in args[3:]]
    out_spec = pl.BlockSpec((G, cls_pad), lambda g: (g, 0))

    # advisory cost estimate so XLA schedules around the custom call
    def _mmf(m, k, n):
        return 2 * m * k * n
    flops = _mmf(GA, a_pad, F0) + _mmf(GA, a_pad, kp["w_sc2_all"].shape[1])
    tanh_elems = GA * F0
    prev = F0
    for c in kp["convs"]:
        dout = c["w_out"].shape[0]
        flops += (_mmf(G, GA, prev) + _mmf(GA, prev, 2 * dout)
                  + _mmf(GA, GA, dout) + _mmf(GA, dout, dout))
        tanh_elems += GA * dout
        prev = dout
    flops += _mmf(G, GA, prev)
    zi = kp["z_aff"].shape[1]
    for w in kp["mlp_w"]:
        flops += _mmf(G, zi, w.shape[1])
        zi = w.shape[1]
    flops += _mmf(G, zi, cls_pad)
    cost = pl.CostEstimate(
        flops=int(NB * flops),
        transcendentals=int(NB * (tanh_elems + 2 * G * cls_pad)),
        bytes_accessed=int(sum(int(a.size) * a.dtype.itemsize for a in args)
                           + B * cls_pad * 4))

    out_pad = pl.pallas_call(
        functools.partial(_fused_forward_kernel, len(kp["convs"]), len(kp["mlp_w"])),
        grid=(NB,),
        in_specs=in_specs,
        out_specs=out_spec,
        out_shape=jax.ShapeDtypeStruct((B, cls_pad), jnp.float32),
        compiler_params=pltpu.CompilerParams(
            dimension_semantics=("parallel",),      # graph blocks independent
            vmem_limit_bytes=16 * 1024 * 1024),     # real footprint is a few MiB
        cost_estimate=cost,
    )(*args)
    return out_pad[:, :num_classes]


# --------------------------------------------------------------------------
# Parameter construction (deterministic, synthetic) + padding / folding
# --------------------------------------------------------------------------
def _glorot(key, fan_in, fan_out):
    return (jax.random.normal(key, (fan_in, fan_out), jnp.float32)
            / jnp.sqrt(jnp.float32(fan_in)))


def _bn_params(dim):
    # PyTorch BatchNorm1d defaults: gamma=1, beta=0, running_mean=0, running_var=1
    return dict(gamma=jnp.ones((dim,), jnp.float32),
                beta=jnp.zeros((dim,), jnp.float32),
                mean=jnp.zeros((dim,), jnp.float32),
                var=jnp.ones((dim,), jnp.float32))


def init_raw_params(key, num_attributes, num_classes, hidden_mlp, num_layers):
    keys = jax.random.split(key, 64)
    ki = iter(range(64))
    p = {}
    p["node_emb_w"] = _glorot(keys[next(ki)], num_attributes, F0)

    conv_io = [(F0, H)]
    for i in range(num_layers - 1):
        conv_io.append((H, H if i < num_layers - 2 else HO))
    p["convs"] = []
    for din, dout in conv_io:
        p["convs"].append(dict(
            w_up=_glorot(keys[next(ki)], din, dout),
            w_sc1=_glorot(keys[next(ki)], din, dout),
            w_sc2=_glorot(keys[next(ki)], num_attributes, dout),
            w_out=_glorot(keys[next(ki)], dout, dout)))

    tri = (num_attributes * (num_attributes - 1)) // 2
    bnh = F0 + H * (num_layers - 1) + HO
    p["bn"] = _bn_params(tri)
    p["bnh"] = _bn_params(bnh)

    d0 = bnh + tri
    dims = [(d0, hidden_mlp), (hidden_mlp, hidden_mlp // 2),
            (hidden_mlp // 2, hidden_mlp // 2)]
    p["mlp"] = []
    for din, dout in dims:
        q = dict(w=_glorot(keys[next(ki)], din, dout),
                 b=jnp.zeros((dout,), jnp.float32))
        q.update(_bn_params(dout))
        p["mlp"].append(q)
    p["final_w"] = _glorot(keys[next(ki)], hidden_mlp // 2, num_classes)
    p["final_b"] = jnp.zeros((num_classes,), jnp.float32)
    return p


def build_kernel_params(raw, num_attributes, num_classes, hidden_mlp, num_layers):
    """Lane-pad to 128 multiples, cast matmul weights to bf16, fold eval-mode
    BatchNorms into affines / linears, fold 1/avg_num_neighbors into w_out, and
    coalesce tensors (w_up|w_sc1 per conv, all w_sc2, both BN affines, all biases)."""
    bf16 = jnp.bfloat16
    A = num_attributes
    tri = (A * (A - 1)) // 2
    bnh = F0 + H * (num_layers - 1) + HO           # 640, already 128-aligned
    a_pad, tri_pad, cls_pad = _rup(A), _rup(tri), _rup(num_classes)

    kp = {"w_emb": _pad2(raw["node_emb_w"], a_pad, F0, bf16)}

    convs, sc2_cols = [], []
    for c in raw["convs"]:
        dout = c["w_up"].shape[1]
        convs.append(dict(
            w_upsc=jnp.concatenate([c["w_up"], c["w_sc1"]], axis=1).astype(bf16),
            w_out=(c["w_out"] * (1.0 / AVG_NUM_NEIGHBORS)).astype(bf16)))
        sc2_cols.append(_pad2(c["w_sc2"], a_pad, dout))
    kp["convs"] = convs
    kp["w_sc2_all"] = jnp.concatenate(sc2_cols, axis=1).astype(bf16)

    # one affine over z = [triu (lane-padded) | pooled bnh features]
    s_t, t_t = _bn_affine(raw["bn"])
    s_h, t_h = _bn_affine(raw["bnh"])
    zdim = tri_pad + bnh
    zscale = jnp.zeros((zdim,), jnp.float32).at[:tri].set(s_t).at[tri_pad:].set(s_h)
    zshift = jnp.zeros((zdim,), jnp.float32).at[:tri].set(t_t).at[tri_pad:].set(t_h)
    kp["z_aff"] = jnp.stack([zscale, zshift], axis=0)            # (2, zdim)

    # MLP layer 1: fold BN, remap input rows to the padded z = [tri_pad | bnh] layout
    q0 = raw["mlp"][0]
    w1, b1 = _fold_bn_into_linear(q0["w"], q0["b"], q0)
    hm = w1.shape[1]
    hm_pad = _rup(hm)
    w1p = jnp.zeros((zdim, hm_pad), jnp.float32)
    w1p = w1p.at[:tri, :hm].set(w1[:tri])
    w1p = w1p.at[tri_pad:tri_pad + bnh, :hm].set(w1[tri:])
    mlp_w = [w1p.astype(bf16)]
    biases = [(b1, hm, hm_pad, 0.0)]
    prev_pad = hm_pad
    for q in raw["mlp"][1:]:
        w, b = _fold_bn_into_linear(q["w"], q["b"], q)
        dout_pad = _rup(w.shape[1])
        mlp_w.append(_pad2(w, prev_pad, dout_pad, bf16))
        biases.append((b, w.shape[1], dout_pad, 0.0))
        prev_pad = dout_pad
    kp["mlp_w"] = mlp_w
    kp["final_w"] = _pad2(raw["final_w"], prev_pad, cls_pad, bf16)
    biases.append((raw["final_b"], num_classes, cls_pad, NEG_INF))

    # stack all biases into one (num_mlp+1, maxw) f32 array; padded class columns
    # of the final row carry -1e30 so the in-kernel log-softmax ignores them.
    maxw = max(p for _, _, p, _ in biases)
    rows = []
    for b, n, p_, fill in biases:
        row = jnp.full((maxw,), fill, jnp.float32).at[:n].set(b)
        if p_ < maxw:
            row = row.at[p_:].set(0.0)   # never read (kernel slices [:p_])
        rows.append(row)
    kp["bias_stack"] = jnp.stack(rows, axis=0)
    return kp


# --------------------------------------------------------------------------
# Pure-JAX reference (unpadded params, same bf16 matmul/pooling casts)
# --------------------------------------------------------------------------
def ref_forward(x, adj_blocks, raw, B, A):
    bf16, f32 = jnp.bfloat16, jnp.float32
    N = B * A

    def mm(a, b):
        return jnp.dot(a.astype(bf16), b.astype(bf16), preferred_element_type=f32)

    cur = jnp.tanh(mm(x, raw["node_emb_w"]))
    feats = [cur]
    adj = adj_blocks.astype(bf16)
    for c in raw["convs"]:
        h = mm(cur, c["w_up"])
        d = h.shape[1]
        msg = jnp.einsum("gij,gjd->gid", adj, h.reshape(B, A, d).astype(bf16),
                         preferred_element_type=f32).reshape(N, d)
        sc = mm(cur, c["w_sc1"]) * mm(x, c["w_sc2"])
        cur = jnp.tanh(mm(msg, c["w_out"] * (1.0 / AVG_NUM_NEIGHBORS)) + sc)
        feats.append(cur)

    pooled = jnp.concatenate([f.astype(bf16).astype(f32) for f in feats],
                             axis=1).reshape(B, A, -1).mean(axis=1)
    s, t = _bn_affine(raw["bnh"])
    h_bn = pooled * s[None, :] + t[None, :]

    iu0, iu1 = jnp.triu_indices(A, k=1)
    x_tri = x.reshape(B, A, A)[:, iu0, iu1]
    s, t = _bn_affine(raw["bn"])
    t_bn = x_tri * s[None, :] + t[None, :]

    z = jnp.concatenate([t_bn, h_bn], axis=1)
    for q in raw["mlp"]:
        w, b = _fold_bn_into_linear(q["w"], q["b"], q)
        z = jnp.maximum(mm(z, w) + b[None, :], 0.0)
    y = mm(z, raw["final_w"]) + raw["final_b"][None, :]
    return jax.nn.log_softmax(y, axis=-1)


# --------------------------------------------------------------------------
# Main: synthetic deterministic inputs
# --------------------------------------------------------------------------
if __name__ == "__main__":
    B = 32                # num_graphs  (16 graphs per grid step -> grid=(2,), GA=128)
    A = 8                 # dataset.num_features == nodes per graph (reshape logic)
    C = 4                 # dataset.num_classes
    HIDDEN_MLP = 32
    NUM_LAYERS = 3
    N = B * A

    key = jax.random.PRNGKey(0)
    k_x, k_ea, k_p = jax.random.split(key, 3)

    # node features: each graph is an A x A matrix, zero diagonal, dense off-diag
    mats = jax.random.uniform(k_x, (B, A, A), jnp.float32, minval=0.1, maxval=1.0)
    mats = mats * (1.0 - jnp.eye(A, dtype=jnp.float32))
    x = mats.reshape(N, A)

    # fully connected edges (no self loops) per graph; edge-attr weighted
    # per-graph adjacency blocks (dst aggregates from src)
    ii, jj = jnp.meshgrid(jnp.arange(A), jnp.arange(A), indexing="ij")
    mask = (ii != jj).reshape(-1)
    src = ii.reshape(-1)[mask]
    dst = jj.reshape(-1)[mask]
    E = int(src.shape[0])
    edge_attr = jax.random.uniform(k_ea, (B, E), jnp.float32)            # '1x0e'
    adj_blocks = jnp.zeros((B, A, A), jnp.float32).at[:, dst, src].add(edge_attr)
    # TODO(synk): edge_vectors feed spherical harmonics in real MACE; unused here.

    raw = init_raw_params(k_p, A, C, HIDDEN_MLP, NUM_LAYERS)
    kparams = build_kernel_params(raw, A, C, HIDDEN_MLP, NUM_LAYERS)
    G = _pick_graphs_per_block(B, A)          # -> 16: GA=128, grid length 2

    fwd = jax.jit(mace_gnn_forward, static_argnums=(3, 4, 5, 6))
    out = fwd(x, adj_blocks, kparams, B, A, C, G)
    out = jax.block_until_ready(out)

    assert out.shape == (B, C), out.shape
    assert bool(jnp.all(jnp.isfinite(out)))
    # rows of log-softmax must exp-sum to 1
    assert jnp.allclose(jnp.exp(out).sum(axis=1), 1.0, atol=1e-4)

    # validate padding / folding / block-diag bookkeeping against pure-JAX reference
    ref = ref_forward(x, adj_blocks, raw, B, A)
    err = float(jnp.max(jnp.abs(out - ref)))
    # tolerance covers bf16 rounding of activations/pooling across the batch
    assert err < 3e-2, f"mismatch vs pure-JAX reference: max abs err {err}"

    print("KERNEL_OK")
</pallas_src>

<mosaic_0001>
module attributes {stable_mosaic.version = 11 : i64} {
  func.func private @main(%arg0: i32) attributes {dimension_semantics = [#tpu.dimension_semantics<core_parallel>], iteration_bounds = array<i64: 2>, tpu.core_type = #tpu.core_type<sc_scalar_subcore>, window_params = []} {
    return
  }
}

module attributes {stable_mosaic.version = 11 : i64} {
  func.func private @main(%arg0: i32) attributes {dimension_semantics = [#tpu.dimension_semantics<core_parallel>], iteration_bounds = array<i64: 2>, tpu.core_type = #tpu.core_type<sc_scalar_subcore>, window_params = []} {
    return
  }
}

module attributes {stable_mosaic.version = 11 : i64} {
  func.func @_fused_forward_kernel(%arg0: i32, %arg1: memref<1x128x128xbf16, #tpu.memory_space<vmem>>, %arg2: memref<128x128xbf16, #tpu.memory_space<vmem>>, %arg3: memref<16x128xf32, #tpu.memory_space<vmem>>, %arg4: memref<16x128xbf16, #tpu.memory_space<vmem>>, %arg5: memref<128x64xbf16, #tpu.memory_space<vmem>>, %arg6: memref<128x576xbf16, #tpu.memory_space<vmem>>, %arg7: memref<64x512xbf16, #tpu.memory_space<vmem>>, %arg8: memref<256x256xbf16, #tpu.memory_space<vmem>>, %arg9: memref<256x512xbf16, #tpu.memory_space<vmem>>, %arg10: memref<256x256xbf16, #tpu.memory_space<vmem>>, %arg11: memref<256x128xbf16, #tpu.memory_space<vmem>>, %arg12: memref<64x64xbf16, #tpu.memory_space<vmem>>, %arg13: memref<2x768xf32, #tpu.memory_space<vmem>>, %arg14: memref<768x128xbf16, #tpu.memory_space<vmem>>, %arg15: memref<128x128xbf16, #tpu.memory_space<vmem>>, %arg16: memref<128x128xbf16, #tpu.memory_space<vmem>>, %arg17: memref<128x128xbf16, #tpu.memory_space<vmem>>, %arg18: memref<4x128xf32, #tpu.memory_space<vmem>>, %arg19: memref<16x128xf32, #tpu.memory_space<vmem>>) attributes {dimension_semantics = [#tpu.dimension_semantics<parallel>], iteration_bounds = array<i64: 2>, scalar_prefetch = 0 : i64, scratch_operands = 0 : i64, tpu.core_type = #tpu.core_type<tc>, window_params = [{transform_indices = @transform_0, window_bounds = array<i64: 1, 128, 128>}, {transform_indices = @transform_1, window_bounds = array<i64: 128, 128>}, {transform_indices = @transform_2, window_bounds = array<i64: 16, 128>}, {pipeline_mode = #tpu.pipeline_mode<synchronous>, transform_indices = @transform_3, window_bounds = array<i64: 16, 128>}, {pipeline_mode = #tpu.pipeline_mode<synchronous>, transform_indices = @transform_4, window_bounds = array<i64: 128, 64>}, {pipeline_mode = #tpu.pipeline_mode<synchronous>, transform_indices = @transform_5, window_bounds = array<i64: 128, 576>}, {pipeline_mode = #tpu.pipeline_mode<synchronous>, transform_indices = @transform_6, window_bounds = array<i64: 64, 512>}, {pipeline_mode = #tpu.pipeline_mode<synchronous>, transform_indices = @transform_7, window_bounds = array<i64: 256, 256>}, {pipeline_mode = #tpu.pipeline_mode<synchronous>, transform_indices = @transform_8, window_bounds = array<i64: 256, 512>}, {pipeline_mode = #tpu.pipeline_mode<synchronous>, transform_indices = @transform_9, window_bounds = array<i64: 256, 256>}, {pipeline_mode = #tpu.pipeline_mode<synchronous>, transform_indices = @transform_10, window_bounds = array<i64: 256, 128>}, {pipeline_mode = #tpu.pipeline_mode<synchronous>, transform_indices = @transform_11, window_bounds = array<i64: 64, 64>}, {pipeline_mode = #tpu.pipeline_mode<synchronous>, transform_indices = @transform_12, window_bounds = array<i64: 2, 768>}, {pipeline_mode = #tpu.pipeline_mode<synchronous>, transform_indices = @transform_13, window_bounds = array<i64: 768, 128>}, {pipeline_mode = #tpu.pipeline_mode<synchronous>, transform_indices = @transform_14, window_bounds = array<i64: 128, 128>}, {pipeline_mode = #tpu.pipeline_mode<synchronous>, transform_indices = @transform_15, window_bounds = array<i64: 128, 128>}, {pipeline_mode = #tpu.pipeline_mode<synchronous>, transform_indices = @transform_16, window_bounds = array<i64: 128, 128>}, {pipeline_mode = #tpu.pipeline_mode<synchronous>, transform_indices = @transform_17, window_bounds = array<i64: 4, 128>}, {transform_indices = @transform_18, window_bounds = array<i64: 16, 128>}]} {
    %c0 = arith.constant 0 : index
    %c0_0 = arith.constant 0 : index
    %0 = vector.load %arg2[%c0, %c0_0] : memref<128x128xbf16, #tpu.memory_space<vmem>>, vector<128x128xbf16>
    %c0_1 = arith.constant 0 : index
    %c0_2 = arith.constant 0 : index
    %c0_3 = arith.constant 0 : index
    %1 = vector.load %arg1[%c0_1, %c0_2, %c0_3] : memref<1x128x128xbf16, #tpu.memory_space<vmem>>, vector<1x128x128xbf16>
    %2 = vector.shape_cast %1 : vector<1x128x128xbf16> to vector<128x128xbf16>
    %c0_4 = arith.constant 0 : index
    %c0_5 = arith.constant 0 : index
    %3 = vector.load %arg4[%c0_4, %c0_5] : memref<16x128xbf16, #tpu.memory_space<vmem>>, vector<16x128xbf16>
    %c0_6 = arith.constant 0 : index
    %c0_7 = arith.constant 0 : index
    %4 = vector.load %arg5[%c0_6, %c0_7] : memref<128x64xbf16, #tpu.memory_space<vmem>>, vector<128x64xbf16>
    %cst = arith.constant dense<0.000000e+00> : vector<128x64xf32>
    %5 = tpu.matmul %0, %4, %cst {dimension_numbers = #tpu.dot_dimension_numbers<[1], [0], [0], [1], [0, 0, 1, 1], [], []>} : vector<128x128xbf16>, vector<128x64xbf16>, vector<128x64xf32> -> vector<128x64xf32>
    %6 = math.tanh %5 : vector<128x64xf32>
    %c0_8 = arith.constant 0 : index
    %c0_9 = arith.constant 0 : index
    %7 = vector.load %arg6[%c0_8, %c0_9] : memref<128x576xbf16, #tpu.memory_space<vmem>>, vector<128x576xbf16>
    %cst_10 = arith.constant dense<0.000000e+00> : vector<128x576xf32>
    %8 = tpu.matmul %0, %7, %cst_10 {dimension_numbers = #tpu.dot_dimension_numbers<[1], [0], [0], [1], [0, 0, 1, 1], [], []>} : vector<128x128xbf16>, vector<128x576xbf16>, vector<128x576xf32> -> vector<128x576xf32>
    %9 = arith.truncf %6 : vector<128x64xf32> to vector<128x64xbf16>
    %cst_11 = arith.constant dense<0.000000e+00> : vector<16x64xf32>
    %10 = tpu.matmul %3, %9, %cst_11 {dimension_numbers = #tpu.dot_dimension_numbers<[1], [0], [0], [1], [0, 0, 1, 1], [], []>} : vector<16x128xbf16>, vector<128x64xbf16>, vector<16x64xf32> -> vector<16x64xf32>
    %c0_12 = arith.constant 0 : index
    %c0_13 = arith.constant 0 : index
    %11 = vector.load %arg7[%c0_12, %c0_13] : memref<64x512xbf16, #tpu.memory_space<vmem>>, vector<64x512xbf16>
    %cst_14 = arith.constant dense<0.000000e+00> : vector<128x512xf32>
    %12 = tpu.matmul %9, %11, %cst_14 {dimension_numbers = #tpu.dot_dimension_numbers<[1], [0], [0], [1], [0, 0, 1, 1], [], []>} : vector<128x64xbf16>, vector<64x512xbf16>, vector<128x512xf32> -> vector<128x512xf32>
    %13 = vector.extract_strided_slice %12 {offsets = [0, 0], sizes = [128, 256], strides = [1, 1]} : vector<128x512xf32> to vector<128x256xf32>
    %14 = vector.extract_strided_slice %12 {offsets = [0, 256], sizes = [128, 256], strides = [1, 1]} : vector<128x512xf32> to vector<128x256xf32>
    %15 = arith.truncf %13 : vector<128x256xf32> to vector<128x256xbf16>
    %cst_15 = arith.constant dense<0.000000e+00> : vector<128x256xf32>
    %16 = tpu.matmul %2, %15, %cst_15 {dimension_numbers = #tpu.dot_dimension_numbers<[1], [0], [0], [1], [0, 0, 1, 1], [], []>} : vector<128x128xbf16>, vector<128x256xbf16>, vector<128x256xf32> -> vector<128x256xf32>
    %17 = vector.extract_strided_slice %8 {offsets = [0, 0], sizes = [128, 256], strides = [1, 1]} : vector<128x576xf32> to vector<128x256xf32>
    %18 = arith.mulf %14, %17 : vector<128x256xf32>
    %19 = arith.truncf %16 : vector<128x256xf32> to vector<128x256xbf16>
    %c0_16 = arith.constant 0 : index
    %c0_17 = arith.constant 0 : index
    %20 = vector.load %arg8[%c0_16, %c0_17] : memref<256x256xbf16, #tpu.memory_space<vmem>>, vector<256x256xbf16>
    %cst_18 = arith.constant dense<0.000000e+00> : vector<128x256xf32>
    %21 = tpu.matmul %19, %20, %cst_18 {dimension_numbers = #tpu.dot_dimension_numbers<[1], [0], [0], [1], [0, 0, 1, 1], [], []>} : vector<128x256xbf16>, vector<256x256xbf16>, vector<128x256xf32> -> vector<128x256xf32>
    %22 = arith.addf %21, %18 : vector<128x256xf32>
    %23 = math.tanh %22 : vector<128x256xf32>
    %24 = arith.truncf %23 : vector<128x256xf32> to vector<128x256xbf16>
    %cst_19 = arith.constant dense<0.000000e+00> : vector<16x256xf32>
    %25 = tpu.matmul %3, %24, %cst_19 {dimension_numbers = #tpu.dot_dimension_numbers<[1], [0], [0], [1], [0, 0, 1, 1], [], []>} : vector<16x128xbf16>, vector<128x256xbf16>, vector<16x256xf32> -> vector<16x256xf32>
    %c0_20 = arith.constant 0 : index
    %c0_21 = arith.constant 0 : index
    %26 = vector.load %arg9[%c0_20, %c0_21] : memref<256x512xbf16, #tpu.memory_space<vmem>>, vector<256x512xbf16>
    %cst_22 = arith.constant dense<0.000000e+00> : vector<128x512xf32>
    %27 = tpu.matmul %24, %26, %cst_22 {dimension_numbers = #tpu.dot_dimension_numbers<[1], [0], [0], [1], [0, 0, 1, 1], [], []>} : vector<128x256xbf16>, vector<256x512xbf16>, vector<128x512xf32> -> vector<128x512xf32>
    %28 = vector.extract_strided_slice %27 {offsets = [0, 0], sizes = [128, 256], strides = [1, 1]} : vector<128x512xf32> to vector<128x256xf32>
    %29 = vector.extract_strided_slice %27 {offsets = [0, 256], sizes = [128, 256], strides = [1, 1]} : vector<128x512xf32> to vector<128x256xf32>
    %30 = arith.truncf %28 : vector<128x256xf32> to vector<128x256xbf16>
    %cst_23 = arith.constant dense<0.000000e+00> : vector<128x256xf32>
    %31 = tpu.matmul %2, %30, %cst_23 {dimension_numbers = #tpu.dot_dimension_numbers<[1], [0], [0], [1], [0, 0, 1, 1], [], []>} : vector<128x128xbf16>, vector<128x256xbf16>, vector<128x256xf32> -> vector<128x256xf32>
    %32 = vector.extract_strided_slice %8 {offsets = [0, 256], sizes = [128, 256], strides = [1, 1]} : vector<128x576xf32> to vector<128x256xf32>
    %33 = arith.mulf %29, %32 : vector<128x256xf32>
    %34 = arith.truncf %31 : vector<128x256xf32> to vector<128x256xbf16>
    %c0_24 = arith.constant 0 : index
    %c0_25 = arith.constant 0 : index
    %35 = vector.load %arg10[%c0_24, %c0_25] : memref<256x256xbf16, #tpu.memory_space<vmem>>, vector<256x256xbf16>
    %cst_26 = arith.constant dense<0.000000e+00> : vector<128x256xf32>
    %36 = tpu.matmul %34, %35, %cst_26 {dimension_numbers = #tpu.dot_dimension_numbers<[1], [0], [0], [1], [0, 0, 1, 1], [], []>} : vector<128x256xbf16>, vector<256x256xbf16>, vector<128x256xf32> -> vector<128x256xf32>
    %37 = arith.addf %36, %33 : vector<128x256xf32>
    %38 = math.tanh %37 : vector<128x256xf32>
    %39 = arith.truncf %38 : vector<128x256xf32> to vector<128x256xbf16>
    %cst_27 = arith.constant dense<0.000000e+00> : vector<16x256xf32>
    %40 = tpu.matmul %3, %39, %cst_27 {dimension_numbers = #tpu.dot_dimension_numbers<[1], [0], [0], [1], [0, 0, 1, 1], [], []>} : vector<16x128xbf16>, vector<128x256xbf16>, vector<16x256xf32> -> vector<16x256xf32>
    %c0_28 = arith.constant 0 : index
    %c0_29 = arith.constant 0 : index
    %41 = vector.load %arg11[%c0_28, %c0_29] : memref<256x128xbf16, #tpu.memory_space<vmem>>, vector<256x128xbf16>
    %cst_30 = arith.constant dense<0.000000e+00> : vector<128x128xf32>
    %42 = tpu.matmul %39, %41, %cst_30 {dimension_numbers = #tpu.dot_dimension_numbers<[1], [0], [0], [1], [0, 0, 1, 1], [], []>} : vector<128x256xbf16>, vector<256x128xbf16>, vector<128x128xf32> -> vector<128x128xf32>
    %43 = vector.extract_strided_slice %42 {offsets = [0, 0], sizes = [128, 64], strides = [1, 1]} : vector<128x128xf32> to vector<128x64xf32>
    %44 = vector.extract_strided_slice %42 {offsets = [0, 64], sizes = [128, 64], strides = [1, 1]} : vector<128x128xf32> to vector<128x64xf32>
    %45 = arith.truncf %43 : vector<128x64xf32> to vector<128x64xbf16>
    %cst_31 = arith.constant dense<0.000000e+00> : vector<128x64xf32>
    %46 = tpu.matmul %2, %45, %cst_31 {dimension_numbers = #tpu.dot_dimension_numbers<[1], [0], [0], [1], [0, 0, 1, 1], [], []>} : vector<128x128xbf16>, vector<128x64xbf16>, vector<128x64xf32> -> vector<128x64xf32>
    %47 = vector.extract_strided_slice %8 {offsets = [0, 512], sizes = [128, 64], strides = [1, 1]} : vector<128x576xf32> to vector<128x64xf32>
    %48 = arith.mulf %44, %47 : vector<128x64xf32>
    %49 = arith.truncf %46 : vector<128x64xf32> to vector<128x64xbf16>
    %c0_32 = arith.constant 0 : index
    %c0_33 = arith.constant 0 : index
    %50 = vector.load %arg12[%c0_32, %c0_33] : memref<64x64xbf16, #tpu.memory_space<vmem>>, vector<64x64xbf16>
    %cst_34 = arith.constant dense<0.000000e+00> : vector<128x64xf32>
    %51 = tpu.matmul %49, %50, %cst_34 {dimension_numbers = #tpu.dot_dimension_numbers<[1], [0], [0], [1], [0, 0, 1, 1], [], []>} : vector<128x64xbf16>, vector<64x64xbf16>, vector<128x64xf32> -> vector<128x64xf32>
    %52 = arith.addf %51, %48 : vector<128x64xf32>
    %53 = math.tanh %52 : vector<128x64xf32>
    %54 = arith.truncf %53 : vector<128x64xf32> to vector<128x64xbf16>
    %cst_35 = arith.constant dense<0.000000e+00> : vector<16x64xf32>
    %55 = tpu.matmul %3, %54, %cst_35 {dimension_numbers = #tpu.dot_dimension_numbers<[1], [0], [0], [1], [0, 0, 1, 1], [], []>} : vector<16x128xbf16>, vector<128x64xbf16>, vector<16x64xf32> -> vector<16x64xf32>
    %c0_36 = arith.constant 0 : index
    %c0_37 = arith.constant 0 : index
    %56 = vector.load %arg3[%c0_36, %c0_37] : memref<16x128xf32, #tpu.memory_space<vmem>>, vector<16x128xf32>
    %57 = tpu.concatenate %56, %10, %25, %40, %55 in 1 : vector<16x128xf32>, vector<16x64xf32>, vector<16x256xf32>, vector<16x256xf32>, vector<16x64xf32> -> vector<16x768xf32>
    %c0_38 = arith.constant 0 : index
    %c0_39 = arith.constant 0 : index
    %58 = vector.load %arg13[%c0_38, %c0_39] : memref<2x768xf32, #tpu.memory_space<vmem>>, vector<1x768xf32>
    %59 = vector.broadcast %58 : vector<1x768xf32> to vector<16x768xf32>
    %60 = arith.mulf %57, %59 : vector<16x768xf32>
    %c1 = arith.constant 1 : index
    %c0_40 = arith.constant 0 : index
    %61 = vector.load %arg13[%c1, %c0_40] : memref<2x768xf32, #tpu.memory_space<vmem>>, vector<1x768xf32>
    %62 = vector.broadcast %61 : vector<1x768xf32> to vector<16x768xf32>
    %63 = arith.addf %60, %62 : vector<16x768xf32>
    %64 = arith.truncf %63 : vector<16x768xf32> to vector<16x768xbf16>
    %c0_41 = arith.constant 0 : index
    %c0_42 = arith.constant 0 : index
    %65 = vector.load %arg14[%c0_41, %c0_42] : memref<768x128xbf16, #tpu.memory_space<vmem>>, vector<768x128xbf16>
    %cst_43 = arith.constant dense<0.000000e+00> : vector<16x128xf32>
    %66 = tpu.matmul %64, %65, %cst_43 {dimension_numbers = #tpu.dot_dimension_numbers<[1], [0], [0], [1], [0, 0, 1, 1], [], []>} : vector<16x768xbf16>, vector<768x128xbf16>, vector<16x128xf32> -> vector<16x128xf32>
    %c0_44 = arith.constant 0 : index
    %c0_45 = arith.constant 0 : index
    %67 = vector.load %arg18[%c0_44, %c0_45] : memref<4x128xf32, #tpu.memory_space<vmem>>, vector<1x128xf32>
    %68 = vector.broadcast %67 : vector<1x128xf32> to vector<16x128xf32>
    %69 = arith.addf %66, %68 : vector<16x128xf32>
    %cst_46 = arith.constant 0.000000e+00 : f32
    %70 = vector.broadcast %cst_46 : f32 to vector<16x128xf32>
    %71 = arith.maximumf %69, %70 : vector<16x128xf32>
    %72 = arith.truncf %71 : vector<16x128xf32> to vector<16x128xbf16>
    %c0_47 = arith.constant 0 : index
    %c0_48 = arith.constant 0 : index
    %73 = vector.load %arg15[%c0_47, %c0_48] : memref<128x128xbf16, #tpu.memory_space<vmem>>, vector<128x128xbf16>
    %cst_49 = arith.constant dense<0.000000e+00> : vector<16x128xf32>
    %74 = tpu.matmul %72, %73, %cst_49 {dimension_numbers = #tpu.dot_dimension_numbers<[1], [0], [0], [1], [0, 0, 1, 1], [], []>} : vector<16x128xbf16>, vector<128x128xbf16>, vector<16x128xf32> -> vector<16x128xf32>
    %c1_50 = arith.constant 1 : index
    %c0_51 = arith.constant 0 : index
    %75 = vector.load %arg18[%c1_50, %c0_51] : memref<4x128xf32, #tpu.memory_space<vmem>>, vector<1x128xf32>
    %76 = vector.broadcast %75 : vector<1x128xf32> to vector<16x128xf32>
    %77 = arith.addf %74, %76 : vector<16x128xf32>
    %cst_52 = arith.constant 0.000000e+00 : f32
    %78 = vector.broadcast %cst_52 : f32 to vector<16x128xf32>
    %79 = arith.maximumf %77, %78 : vector<16x128xf32>
    %80 = arith.truncf %79 : vector<16x128xf32> to vector<16x128xbf16>
    %c0_53 = arith.constant 0 : index
    %c0_54 = arith.constant 0 : index
    %81 = vector.load %arg16[%c0_53, %c0_54] : memref<128x128xbf16, #tpu.memory_space<vmem>>, vector<128x128xbf16>
    %cst_55 = arith.constant dense<0.000000e+00> : vector<16x128xf32>
    %82 = tpu.matmul %80, %81, %cst_55 {dimension_numbers = #tpu.dot_dimension_numbers<[1], [0], [0], [1], [0, 0, 1, 1], [], []>} : vector<16x128xbf16>, vector<128x128xbf16>, vector<16x128xf32> -> vector<16x128xf32>
    %c2 = arith.constant 2 : index
    %c0_56 = arith.constant 0 : index
    %83 = vector.load %arg18[%c2, %c0_56] : memref<4x128xf32, #tpu.memory_space<vmem>>, vector<1x128xf32>
    %84 = vector.broadcast %83 : vector<1x128xf32> to vector<16x128xf32>
    %85 = arith.addf %82, %84 : vector<16x128xf32>
    %cst_57 = arith.constant 0.000000e+00 : f32
    %86 = vector.broadcast %cst_57 : f32 to vector<16x128xf32>
    %87 = arith.maximumf %85, %86 : vector<16x128xf32>
    %88 = arith.truncf %87 : vector<16x128xf32> to vector<16x128xbf16>
    %c0_58 = arith.constant 0 : index
    %c0_59 = arith.constant 0 : index
    %89 = vector.load %arg17[%c0_58, %c0_59] : memref<128x128xbf16, #tpu.memory_space<vmem>>, vector<128x128xbf16>
    %cst_60 = arith.constant dense<0.000000e+00> : vector<16x128xf32>
    %90 = tpu.matmul %88, %89, %cst_60 {dimension_numbers = #tpu.dot_dimension_numbers<[1], [0], [0], [1], [0, 0, 1, 1], [], []>} : vector<16x128xbf16>, vector<128x128xbf16>, vector<16x128xf32> -> vector<16x128xf32>
    %c3 = arith.constant 3 : index
    %c0_61 = arith.constant 0 : index
    %91 = vector.load %arg18[%c3, %c0_61] : memref<4x128xf32, #tpu.memory_space<vmem>>, vector<1x128xf32>
    %92 = vector.broadcast %91 : vector<1x128xf32> to vector<16x128xf32>
    %93 = arith.addf %90, %92 : vector<16x128xf32>
    %cst_62 = arith.constant dense<0xFF800000> : vector<16xf32>
    %94 = vector.multi_reduction <maximumf>, %93, %cst_62 [1] : vector<16x128xf32> to vector<16xf32>
    %95 = vector.shape_cast %94 : vector<16xf32> to vector<16x1xf32>
    %96 = vector.broadcast %95 : vector<16x1xf32> to vector<16x128xf32>
    %97 = arith.subf %93, %96 : vector<16x128xf32>
    %98 = math.exp %97 : vector<16x128xf32>
    %cst_63 = arith.constant dense<0.000000e+00> : vector<16xf32>
    %99 = vector.multi_reduction <add>, %98, %cst_63 [1] : vector<16x128xf32> to vector<16xf32>
    %100 = vector.shape_cast %99 : vector<16xf32> to vector<16x1xf32>
    %101 = math.log %100 : vector<16x1xf32>
    %102 = vector.broadcast %101 : vector<16x1xf32> to vector<16x128xf32>
    %103 = arith.subf %97, %102 : vector<16x128xf32>
    %c0_64 = arith.constant 0 : index
    %c0_65 = arith.constant 0 : index
    %104 = vector.load %arg19[%c0_64, %c0_65] : memref<16x128xf32, #tpu.memory_space<vmem>>, vector<16x128xf32>
    tpu.vector_store %arg19[%c0_64, %c0_65], %103 {strides = array<i32>} : memref<16x128xf32, #tpu.memory_space<vmem>>, vector<16x128xf32>,
    return
  }
  func.func @transform_0(%arg0: i32) -> (i32, i32, i32) {
    %c0_i32 = arith.constant 0 : i32
    %c0_i32_0 = arith.constant 0 : i32
    %c0_i32_1 = arith.constant 0 : i32
    return %arg0, %c0_i32, %c0_i32_0 : i32, i32, i32
  }
  func.func @transform_1(%arg0: i32) -> (i32, i32) {
    %c0_i32 = arith.constant 0 : i32
    %c0_i32_0 = arith.constant 0 : i32
    return %arg0, %c0_i32 : i32, i32
  }
  func.func @transform_2(%arg0: i32) -> (i32, i32) {
    %c0_i32 = arith.constant 0 : i32
    %c0_i32_0 = arith.constant 0 : i32
    return %arg0, %c0_i32 : i32, i32
  }
  func.func @transform_3(%arg0: i32) -> (i32, i32) {
    %c0_i32 = arith.constant 0 : i32
    %c0_i32_0 = arith.constant 0 : i32
    %c0_i32_1 = arith.constant 0 : i32
    return %c0_i32, %c0_i32_0 : i32, i32
  }
  func.func @transform_4(%arg0: i32) -> (i32, i32) {
    %c0_i32 = arith.constant 0 : i32
    %c0_i32_0 = arith.constant 0 : i32
    %c0_i32_1 = arith.constant 0 : i32
    return %c0_i32, %c0_i32_0 : i32, i32
  }
  func.func @transform_5(%arg0: i32) -> (i32, i32) {
    %c0_i32 = arith.constant 0 : i32
    %c0_i32_0 = arith.constant 0 : i32
    %c0_i32_1 = arith.constant 0 : i32
    return %c0_i32, %c0_i32_0 : i32, i32
  }
  func.func @transform_6(%arg0: i32) -> (i32, i32) {
    %c0_i32 = arith.constant 0 : i32
    %c0_i32_0 = arith.constant 0 : i32
    %c0_i32_1 = arith.constant 0 : i32
    return %c0_i32, %c0_i32_0 : i32, i32
  }
  func.func @transform_7(%arg0: i32) -> (i32, i32) {
    %c0_i32 = arith.constant 0 : i32
    %c0_i32_0 = arith.constant 0 : i32
    %c0_i32_1 = arith.constant 0 : i32
    return %c0_i32, %c0_i32_0 : i32, i32
  }
  func.func @transform_8(%arg0: i32) -> (i32, i32) {
    %c0_i32 = arith.constant 0 : i32
    %c0_i32_0 = arith.constant 0 : i32
    %c0_i32_1 = arith.constant 0 : i32
    return %c0_i32, %c0_i32_0 : i32, i32
  }
  func.func @transform_9(%arg0: i32) -> (i32, i32) {
    %c0_i32 = arith.constant 0 : i32
    %c0_i32_0 = arith.constant 0 : i32
    %c0_i32_1 = arith.constant 0 : i32
    return %c0_i32, %c0_i32_0 : i32, i32
  }
  func.func @transform_10(%arg0: i32) -> (i32, i32) {
    %c0_i32 = arith.constant 0 : i32
    %c0_i32_0 = arith.constant 0 : i32
    %c0_i32_1 = arith.constant 0 : i32
    return %c0_i32, %c0_i32_0 : i32, i32
  }
  func.func @transform_11(%arg0: i32) -> (i32, i32) {
    %c0_i32 = arith.constant 0 : i32
    %c0_i32_0 = arith.constant 0 : i32
    %c0_i32_1 = arith.constant 0 : i32
    return %c0_i32, %c0_i32_0 : i32, i32
  }
  func.func @transform_12(%arg0: i32) -> (i32, i32) {
    %c0_i32 = arith.constant 0 : i32
    %c0_i32_0 = arith.constant 0 : i32
    %c0_i32_1 = arith.constant 0 : i32
    return %c0_i32, %c0_i32_0 : i32, i32
  }
  func.func @transform_13(%arg0: i32) -> (i32, i32) {
    %c0_i32 = arith.constant 0 : i32
    %c0_i32_0 = arith.constant 0 : i32
    %c0_i32_1 = arith.constant 0 : i32
    return %c0_i32, %c0_i32_0 : i32, i32
  }
  func.func @transform_14(%arg0: i32) -> (i32, i32) {
    %c0_i32 = arith.constant 0 : i32
    %c0_i32_0 = arith.constant 0 : i32
    %c0_i32_1 = arith.constant 0 : i32
    return %c0_i32, %c0_i32_0 : i32, i32
  }
  func.func @transform_15(%arg0: i32) -> (i32, i32) {
    %c0_i32 = arith.constant 0 : i32
    %c0_i32_0 = arith.constant 0 : i32
    %c0_i32_1 = arith.constant 0 : i32
    return %c0_i32, %c0_i32_0 : i32, i32
  }
  func.func @transform_16(%arg0: i32) -> (i32, i32) {
    %c0_i32 = arith.constant 0 : i32
    %c0_i32_0 = arith.constant 0 : i32
    %c0_i32_1 = arith.constant 0 : i32
    return %c0_i32, %c0_i32_0 : i32, i32
  }
  func.func @transform_17(%arg0: i32) -> (i32, i32) {
    %c0_i32 = arith.constant 0 : i32
    %c0_i32_0 = arith.constant 0 : i32
    %c0_i32_1 = arith.constant 0 : i32
    return %c0_i32, %c0_i32_0 : i32, i32
  }
  func.func @transform_18(%arg0: i32) -> (i32, i32) {
    %c0_i32 = arith.constant 0 : i32
    %c0_i32_0 = arith.constant 0 : i32
    return %arg0, %c0_i32 : i32, i32
  }
}

</mosaic_0001>

<bundles_post_ra>
// kernel: mace_gnn_forward.1
= control target key start
LH: loop header
LB: loop body
LE: loop exit
PB: predicated region body
PF: predicated region fallthrough
CT: control target
= control target key end

     0   :  { %s6992_s27 = smov 0   ;;  %s8882_s0 = inlined_call_operand.vmem [shape: bf16[2,128,128], index: 0, kind: input, shape index: {}]   ;;  %s8883_s1 = inlined_call_operand.vmem [shape: bf16[256,128], index: 1, kind: input, shape index: {}]   ;;  %s8884_s2 = inlined_call_operand.vmem [shape: f32[32,128], index: 2, kind: input, shape index: {}]   ;;  %s8885_s3 = inlined_call_operand.vmem [shape: bf16[16,128], index: 3, kind: input, shape index: {}]   ;;  %s8886_s4 = inlined_call_operand.vmem [shape: bf16[128,64], index: 4, kind: input, shape index: {}]   ;;  %s8887_s5 = inlined_call_operand.vmem [shape: bf16[128,576], index: 5, kind: input, shape index: {}]   ;;  %s8888_s6 = inlined_call_operand.vmem [shape: bf16[64,512], index: 6, kind: input, shape index: {}]   ;;  %s8889_s7 = inlined_call_operand.vmem [shape: bf16[256,256], index: 7, kind: input, shape index: {}]   ;;  %s8890_s8 = inlined_call_operand.vmem [shape: bf16[256,512], index: 8, kind: input, shape index: {}]   ;;  %s8891_s9 = inlined_call_operand.vmem [shape: bf16[256,256], index: 9, kind: input, shape index: {}]   ;;  %s8892_s10 = inlined_call_operand.vmem [shape: bf16[256,128], index: 10, kind: input, shape index: {}]   ;;  %s8893_s11 = inlined_call_operand.vmem [shape: bf16[64,64], index: 11, kind: input, shape index: {}]   ;;  %s8894_s12 = inlined_call_operand.vmem [shape: f32[2,768], index: 12, kind: input, shape index: {}]   ;;  %s8895_s13 = inlined_call_operand.vmem [shape: bf16[768,128], index: 13, kind: input, shape index: {}]   ;;  %s8896_s14 = inlined_call_operand.vmem [shape: bf16[128,128], index: 14, kind: input, shape index: {}]   ;;  %s8897_s15 = inlined_call_operand.vmem [shape: bf16[128,128], index: 15, kind: input, shape index: {}]   ;;  %s8898_s16 = inlined_call_operand.vmem [shape: bf16[128,128], index: 16, kind: input, shape index: {}]   ;;  %s8899_s17 = inlined_call_operand.vmem [shape: f32[4,128], index: 17, kind: input, shape index: {}]   ;;  %s8900_s18 = inlined_call_operand.vmem [shape: f32[32,128], index: 18, kind: output, shape index: {}]  }
   0x1   :  { %8907 = sst [smem:[#allocation21_spill]] %s8882_s0 }
   0x2   :  { %8908 = sst [smem:[#allocation22_spill]] %s8883_s1 }
   0x3   :  { %8909 = sst [smem:[#allocation23_spill]] %s8884_s2 }
   0x4 LB: > { %s6998_s28 = sadd.s32 4294967295, %s6891_s27   ;;  %p5474_p0 = scmp.ge.s32.totalorder %s6891_s27, 1  ;;  %s6891_s27 = sphi %s6992_s27, %s28_s27  }
   0x5   : > { %p534_p1 = scmp.lt.s32.totalorder %s6891_s27, 3 }
   0x7   : > { %p535_p2 = pnand %p5474_p0, %p534_p1 }
   0x9   : > { %538 = sbr.rel (%p535_p2) target bundleno = 4111 (0x100f), region = 92 }
  0x10   : > { %v6283_v0 = vld [vmem:[%s8886_s4] sm:$0xff]   ;;  %s5477_s0 = sshll.u32 %s6998_s28, 4  ;;  %v6284_v1 = vld [vmem:[%s8886_s4 + $0x8] sm:$0xff]   ;;  %v8903_v2 = vmov 0   ;;  %v6285_v3 = vld [vmem:[%s8886_s4 + $0x10] sm:$0xff]   ;;  %s8910_s24 = sld [smem:[#allocation22_spill]] }
  0x11   : > { %p604_p3 = scmp.lt.s32.totalorder %s5477_s0, 31  ;;  %6051 = vmatprep.subr.bf16.mxu0 %v6283_v0  ;;  %1169 = vmatprep.mubr.bf16.mxu1 %v8903_v2  ;;  %v6286_v4 = vld [vmem:[%s8886_s4 + $0x18] sm:$0xff]   ;;  %v6287_v6 = vld [vmem:[%s8886_s4 + $0x20] sm:$0xff]   ;;  %v6288_v7 = vld [vmem:[%s8886_s4 + $0x28] sm:$0xff]   ;;  %vm6895_vm0 = vmmov 0   ;;  %vm1611_vm1 = vcmask 523264  }
  0x12   : > { %6052 = vmatpush3.bf16.msra.mxu0 %v6283_v0  ;;  %v6299_v8 = vld [vmem:[%s8887_s5 + $0x4] ss:$20 sps:$4 sm:$0xff]   ;;  %v6301_v9 = vld [vmem:[%s8887_s5] ss:$20 sps:$4 sm:$0xff]   ;;  %v6304_v12 = vld [vmem:[%s8887_s5 + $0x28] ss:$20 sps:$4 sm:$0xff]  }
  0x13   : > { %s8955_s0 = smov (!%p604_p3, %s5477_s0), 31  ;;  %6053 = vmatprep.subr.bf16.mxu0 %v6284_v1  ;;  %1137 = vmatprep.subr.bf16.mxu1 %v6299_v8  ;;  %v6302_v10 = vld [vmem:[%s8887_s5 + $0x2c] ss:$20 sps:$4 sm:$0xff]   ;;  %v6289_v11 = vld [vmem:[%s8886_s4 + $0x30] sm:$0xff]   ;;  %v6290_v14 = vld [vmem:[%s8886_s4 + $0x38] sm:$0xff]   ;;  %s8905_s26 = smov 64  }
  0x14   : > { %s5478_s22 = sshll.u32 %s8955_s0, 2  ;;  %1138 = vmatpush1.bf16.msra.mxu1 %v6301_v9  ;;  %v6305_v13 = vld [vmem:[%s8887_s5 + $0x54] ss:$20 sps:$4 sm:$0xff]   ;;  %v6307_v15 = vld [vmem:[%s8887_s5 + $0x50] ss:$20 sps:$4 sm:$0xff]   ;;  %p598_p4 = scmp.lt.s32.totalorder %s6998_s28, 1 }
  0x15   : > { %1139 = vmatprep.subr.bf16.mxu1 %v6302_v10  ;;  %v6308_v16 = vld [vmem:[%s8887_s5 + $0x7c] ss:$20 sps:$4 sm:$0xff]   ;;  %v6310_v17 = vld [vmem:[%s8887_s5 + $0x78] ss:$20 sps:$4 sm:$0xff]   ;;  %v6313_v22 = vld [vmem:[%s8887_s5 + $0xa0] ss:$20 sps:$4 sm:$0xff]  }
  0x16   : > { %s7016_s25 = scalar_lea.vmem %s8910_s24, %s5478_s22  ;;  %6054 = vmatpush3.bf16.msra.mxu0 %v6284_v1  ;;  %v6311_v19 = vld [vmem:[%s8887_s5 + $0xa4] ss:$20 sps:$4 sm:$0xff]   ;;  %v6327_v21 = vld [vmem:[%s8887_s5 + $0xc] ss:$20 sps:$4 sm:$0xff]   ;;  %v6325_v24 = vld [vmem:[%s8887_s5 + $0x8] ss:$20 sps:$4 sm:$0xff]  }
  0x17   : > { %6055 = vmatprep.subr.bf16.mxu0 %v6285_v3  ;;  %v7022_v5 = vld [vmem:[%s7016_s25] sm:$0xff]   ;;  %v7062_v18 = vld [vmem:[%s7016_s25 + $0x8] sm:$0xff]   ;;  %v7068_v20 = vld [vmem:[%s7016_s25 + $0x10] sm:$0xff]   ;;  %v8901_v1 = vmov 0.0   ;;  %s599_s29 = scalar_select %p598_p4, %s6998_s28, 1 }
  0x18   : > { %6067 = vmatprep.mubr.bf16.mxu0 %v7022_v5  ;;  %1140 = vmatpush1.bf16.msra.mxu1 %v6304_v12  ;;  %v6314_v23 = vld [vmem:[%s8887_s5 + $0xcc] ss:$20 sps:$4 sm:$0xff]   ;;  %v6331_v25 = vld [vmem:[%s8887_s5 + $0x34] ss:$20 sps:$4 sm:$0xff]   ;;  %v7091_v27 = vld [vmem:[%s7016_s25 + $0x18] sm:$0xff]   ;;  %s8928_s1 = sld [smem:[#allocation21_spill]] }
  0x19   : > { %1141 = vmatprep.subr.bf16.mxu1 %v6305_v13  ;;  %v6316_v26 = vld [vmem:[%s8887_s5 + $0xc8] ss:$20 sps:$4 sm:$0xff]   ;;  %v6329_v29 = vld [vmem:[%s8887_s5 + $0x30] ss:$20 sps:$4 sm:$0xff]   ;;  %v6333_v34 = vld [vmem:[%s8887_s5 + $0x58] ss:$20 sps:$4 sm:$0xff]  }
  0x1a   : > { %6056 = vmatpush3.bf16.msra.mxu0 %v6285_v3  ;;  %v6317_v28 = vld [vmem:[%s8887_s5 + $0xf4] ss:$20 sps:$4 sm:$0xff]   ;;  %v7100_v30 = vld [vmem:[%s7016_s25 + $0x20] sm:$0xff]   ;;  %v6335_v31 = vld [vmem:[%s8887_s5 + $0x5c] ss:$20 sps:$4 sm:$0xff]   ;;  %s5815_s30 = sshll.u32 %s599_s29, 6 }
  0x1b   : > { %6057 = vmatprep.subr.bf16.mxu0 %v6286_v4  ;;  %v6319_v32 = vld [vmem:[%s8887_s5 + $0xf0] ss:$20 sps:$4 sm:$0xff]   ;;  %v6322_v36 = vld [vmem:[%s8887_s5 + $0x118] ss:$20 sps:$4 sm:$0xff]   ;;  %v6337_v39 = vld [vmem:[%s8887_s5 + $0x80] ss:$20 sps:$4 sm:$0xff]  }
  0x1c   : > { %1142 = vmatpush1.bf16.msra.mxu1 %v6307_v15  ;;  %v6320_v33 = vld [vmem:[%s8887_s5 + $0x11c] ss:$20 sps:$4 sm:$0xff]   ;;  %v6339_v35 = vld [vmem:[%s8887_s5 + $0x84] ss:$20 sps:$4 sm:$0xff]   ;;  %v7126_v38 = vld [vmem:[%s7016_s25 + $0x28] sm:$0xff]   ;;  %s8950_s2 = smov 64  }
  0x1d   : > { %1143 = vmatprep.subr.bf16.mxu1 %v6308_v16  ;;  %v6323_v37 = vld [vmem:[%s8887_s5 + $0x10] ss:$20 sps:$4 sm:$0xff]   ;;  %v6343_v41 = vld [vmem:[%s8887_s5 + $0xac] ss:$20 sps:$4 sm:$0xff]   ;;  %v6341_v42 = vld [vmem:[%s8887_s5 + $0xa8] ss:$20 sps:$4 sm:$0xff]  }
  0x1e   : > { %6058 = vmatpush3.bf16.msra.mxu0 %v6286_v4  ;;  %v7132_v40 = vld [vmem:[%s7016_s25 + $0x30] sm:$0xff]   ;;  %v6324_v43 = vld [vmem:[%s8887_s5 + $0x38] ss:$20 sps:$4 sm:$0xff]   ;;  %v6332_v50 = vld [vmem:[%s8887_s5 + $0x88] ss:$20 sps:$4 sm:$0xff]   ;;  %s7507_s20 = scalar_lea.vmem %s8928_s1, %s5815_s30  ;;  %s8953_s1 = sld [smem:[#allocation23_spill]] }
  0x1f   : > { %6059 = vmatprep.subr.bf16.mxu0 %v6287_v6  ;;  %v6347_v44 = vld [vmem:[%s8887_s5 + $0xd4] ss:$20 sps:$4 sm:$0xff]   ;;  %v6345_v45 = vld [vmem:[%s8887_s5 + $0xd0] ss:$20 sps:$4 sm:$0xff]   ;;  %v7160_v48 = vld [vmem:[%s7016_s25 + $0x38] sm:$0xff]  }
  0x20   : > { %1144 = vmatpush1.bf16.msra.mxu1 %v6310_v17  ;;  %v6328_v46 = vld [vmem:[%s8887_s5 + $0x60] ss:$20 sps:$4 sm:$0xff]   ;;  %v6351_v47 = vld [vmem:[%s8887_s5 + $0xfc] ss:$20 sps:$4 sm:$0xff]   ;;  %v6349_v49 = vld [vmem:[%s8887_s5 + $0xf8] ss:$20 sps:$4 sm:$0xff]  }
  0x21   : > { %1145 = vmatprep.subr.bf16.mxu1 %v6311_v19  ;;  %v6354_v51 = vld [vmem:[%s8887_s5 + $0x124] ss:$20 sps:$4 sm:$0xff]   ;;  %v6352_v52 = vld [vmem:[%s8887_s5 + $0x120] ss:$20 sps:$4 sm:$0xff]   ;;  %v6348_v56 = vld [vmem:[%s8887_s5 + $0x128] ss:$20 sps:$4 sm:$0xff]  }
  0x22   : > { %6060 = vmatpush3.bf16.msra.mxu0 %v6287_v6  ;;  %v6336_v53 = vld [vmem:[%s8887_s5 + $0xb0] ss:$20 sps:$4 sm:$0xff]   ;;  %v6340_v54 = vld [vmem:[%s8887_s5 + $0xd8] ss:$20 sps:$4 sm:$0xff]   ;;  %v6344_v55 = vld [vmem:[%s8887_s5 + $0x100] ss:$20 sps:$4 sm:$0xff]  }
  0x23   : > { %6061 = vmatprep.subr.bf16.mxu0 %v6288_v7  ;;  %v6357_v57 = vld [vmem:[%s8888_s6 + $0x4] ss:$16 sps:$4 sm:$0xff]   ;;  %v6355_v58 = vld [vmem:[%s8888_s6] ss:$16 sps:$4 sm:$0xff]  }
  0x24   : > { %1146 = vmatpush1.bf16.msra.mxu1 %v6313_v22  ;;  %v6360_v59 = vld [vmem:[%s8888_s6 + $0x24] ss:$16 sps:$4 sm:$0xff]   ;;  %v6358_v60 = vld [vmem:[%s8888_s6 + $0x20] ss:$16 sps:$4 sm:$0xff]  }
  0x25   : > { %1147 = vmatprep.subr.bf16.mxu1 %v6314_v23  ;;  %v6363_v61 = vld [vmem:[%s8888_s6 + $0x44] ss:$16 sps:$4 sm:$0xff]   ;;  %v6361_v62 = vld [vmem:[%s8888_s6 + $0x40] ss:$16 sps:$4 sm:$0xff]  }
  0x26   : > { %6062 = vmatpush3.bf16.msra.mxu0 %v6288_v7  ;;  %v6366_v63 = vld [vmem:[%s8888_s6 + $0x64] ss:$16 sps:$4 sm:$0xff]   ;;  %v6364_v0 = vld [vmem:[%s8888_s6 + $0x60] ss:$16 sps:$4 sm:$0xff]  }
  0x27   : > { %6063 = vmatprep.subr.bf16.mxu0 %v6289_v11 }
  0x28   : > { %1148 = vmatpush1.bf16.msra.mxu1 %v6316_v26 }
  0x29   : > { %1149 = vmatprep.subr.bf16.mxu1 %v6317_v28 }
  0x2a   : > { %6064 = vmatpush3.bf16.msra.mxu0 %v6289_v11 }
  0x2b   : > { %6065 = vmatprep.subr.bf16.mxu0 %v6290_v14 }
  0x2c   : > { %1150 = vmatpush1.bf16.msra.mxu1 %v6319_v32 }
  0x2d   : > { %1151 = vmatprep.subr.bf16.mxu1 %v6320_v33 }
  0x2e   : > { %6066 = vmatpush3.bf16.msra.mxu0 %v6290_v14 }
  0x2f   : > { %1250 = vmatprep.subr.bf16.mxu0 %v6327_v21 }
  0x30   : > { %1152 = vmatpush1.bf16.msra.mxu1 %v6322_v36 }
  0x31   : > { %6068 = vmatmul.mubr.bf16.vlgmr.msra.gmra.mrb[0].mxu0 %v7062_v18  ;;  %6083 = vmatprep.subr.bf16.mxu1 %v6323_v37 }
  0x32   : > { %6071 = vmatprep.mubr.bf16.mxu0 %v7068_v20  ;;  %1251 = vmatpush1.bf16.msra.mxu0 %v6325_v24 }
  0x33   : > { %1252 = vmatprep.subr.bf16.mxu0 %v6331_v25  ;;  %1170 = vmatmul.mubr.bf16.vlgmr.msra.gmra.mrb[0].mxu1 %v7022_v5 }
  0x34   : > { %1179 = vmatprep.mubr.bf16.mxu1 %v8903_v2  ;;  %6084 = vmatpush3.bf16.msra.mxu1 %v6323_v37 }
  0x35   : > { %6085 = vmatprep.subr.bf16.mxu1 %v6324_v43 }
  0x36   : > { %1253 = vmatpush1.bf16.msra.mxu0 %v6329_v29 }
  0x37   : > { %1254 = vmatprep.subr.bf16.mxu0 %v6335_v31 }
  0x38   : > { %6086 = vmatpush3.bf16.msra.mxu1 %v6324_v43 }
  0x39   : > { %6072 = vmatmul.mubr.bf16.gmra.mrb[4].mxu0 %v7091_v27  ;;  %6087 = vmatprep.subr.bf16.mxu1 %v6328_v46 }
  0x3a   : > { %6075 = vmatprep.mubr.bf16.mxu0 %v7100_v30  ;;  %1255 = vmatpush1.bf16.msra.mxu0 %v6333_v34 }
  0x3b   : > { %1256 = vmatprep.subr.bf16.mxu0 %v6339_v35  ;;  %1180 = vmatmul.mubr.bf16.gmra.mrb[4].mxu1 %v7062_v18 }
  0x3c   : > { %1189 = vmatprep.mubr.bf16.mxu1 %v8903_v2  ;;  %6088 = vmatpush3.bf16.msra.mxu1 %v6328_v46 }
  0x3d   : > { %6089 = vmatprep.subr.bf16.mxu1 %v6332_v50 }
  0x3e   : > { %1257 = vmatpush1.bf16.msra.mxu0 %v6337_v39 }
  0x3f   : > { %1258 = vmatprep.subr.bf16.mxu0 %v6343_v41 }
  0x40   : > { %6090 = vmatpush3.bf16.msra.mxu1 %v6332_v50 }
  0x41   : > { %6076 = vmatmul.mubr.bf16.gmra.mrb[8].mxu0 %v7126_v38  ;;  %6091 = vmatprep.subr.bf16.mxu1 %v6336_v53 }
  0x42   : > { %6079 = vmatprep.mubr.bf16.mxu0 %v7132_v40  ;;  %1259 = vmatpush1.bf16.msra.mxu0 %v6341_v42 }
  0x43   : > { %1260 = vmatprep.subr.bf16.mxu0 %v6347_v44  ;;  %1190 = vmatmul.mubr.bf16.gmra.mrb[8].mxu1 %v7068_v20 }
  0x44   : > { %1199 = vmatprep.mubr.bf16.mxu1 %v8903_v2  ;;  %6092 = vmatpush3.bf16.msra.mxu1 %v6336_v53 }
  0x45   : > { %6093 = vmatprep.subr.bf16.mxu1 %v6340_v54 }
  0x46   : > { %1261 = vmatpush1.bf16.msra.mxu0 %v6345_v45 }
  0x47   : > { %1262 = vmatprep.subr.bf16.mxu0 %v6351_v47 }
  0x48   : > { %6094 = vmatpush3.bf16.msra.mxu1 %v6340_v54 }
  0x49   : > { %6080 = vmatmul.mubr.bf16.gmra.mrb[12].mxu0 %v7160_v48  ;;  %6095 = vmatprep.subr.bf16.mxu1 %v6344_v55 }
  0x4a   : > { %1282 = vmatprep.mubr.bf16.mxu0 %v8903_v2  ;;  %1263 = vmatpush1.bf16.msra.mxu0 %v6349_v49 }
  0x4b   : > { %1264 = vmatprep.subr.bf16.mxu0 %v6354_v51  ;;  %1200 = vmatmul.mubr.bf16.gmra.mrb[12].mxu1 %v7091_v27 }
  0x4c   : > { %1209 = vmatprep.mubr.bf16.mxu1 %v8903_v2  ;;  %6096 = vmatpush3.bf16.msra.mxu1 %v6344_v55 }
  0x4d   : > { %6097 = vmatprep.subr.bf16.mxu1 %v6348_v56 }
  0x4e   : > { %1265 = vmatpush1.bf16.msra.mxu0 %v6352_v52 }
  0x4f   : > { %6115 = vmatprep.subr.bf16.mxu0 %v8901_v1 }
  0x50   : > { %6098 = vmatpush3.bf16.msra.mxu1 %v6348_v56 }
  0x51   : > { %1283 = vmatmul.mubr.bf16.vlgmr.msra.gmra.mrb[16].mxu0 %v7022_v5  ;;  %1636 = vmatprep.subr.bf16.mxu1 %v6357_v57  ;;  %v6369_v57 = vld [vmem:[%s8888_s6 + $0xc] ss:$16 sps:$4 sm:$0xff]  }
  0x52   : > { %1292 = vmatprep.mubr.bf16.mxu0 %v8903_v2 }
  0x53   : > { %1210 = vmatmul.mubr.bf16.gmra.mrb[16].mxu1 %v7100_v30 }
  0x54   : > { %1219 = vmatprep.mubr.bf16.mxu1 %v8903_v2 }
  0x59   : > { %1293 = vmatmul.mubr.bf16.gmra.mrb[20].mxu0 %v7062_v18 }
  0x5a   : > { %1302 = vmatprep.mubr.bf16.mxu0 %v8903_v2 }
  0x5b   : > { %1220 = vmatmul.mubr.bf16.gmra.mrb[20].mxu1 %v7126_v38 }
  0x5c   : > { %1229 = vmatprep.mubr.bf16.mxu1 %v8903_v2 }
  0x61   : > { %1303 = vmatmul.mubr.bf16.gmra.mrb[24].mxu0 %v7068_v20 }
  0x62   : > { %1312 = vmatprep.mubr.bf16.mxu0 %v8903_v2 }
  0x63   : > { %1230 = vmatmul.mubr.bf16.gmra.mrb[24].mxu1 %v7132_v40 }
  0x64   : > { %1239 = vmatprep.mubr.bf16.mxu1 %v8903_v2 }
  0x69   : > { %1313 = vmatmul.mubr.bf16.gmra.mrb[28].mxu0 %v7091_v27 }
  0x6a   : > { %1322 = vmatprep.mubr.bf16.mxu0 %v8903_v2 }
  0x6b   : > { %1240 = vmatmul.mubr.bf16.gmra.mrb[28].mxu1 %v7160_v48 }
  0x6c   : > { %6099 = vmatprep.mubr.bf16.mxu1 %v7022_v5 }
  0x71   : > { %1323 = vmatmul.mubr.bf16.gmra.mrb[32].mxu0 %v7100_v30 }
  0x72   : > { %1332 = vmatprep.mubr.bf16.mxu0 %v8903_v2 }
  0x73   : > { %6100 = vmatmul.mubr.bf16.vlgmr.msra.gmra.mrb[32].mxu1 %v7062_v18 }
  0x74   : > { %6103 = vmatprep.mubr.bf16.mxu1 %v7068_v20  ;;  %1637 = vmatpush1.bf16.msra.mxu1 %v6355_v58 }
  0x75   : > { %1638 = vmatprep.subr.bf16.mxu1 %v6360_v59 }
  0x78   : > { %1639 = vmatpush1.bf16.msra.mxu1 %v6358_v60  ;;  %v6370_v60 = vld [vmem:[%s8885_s3] sm:$0xff]  }
  0x79   : > { %1333 = vmatmul.mubr.bf16.gmra.mrb[36].mxu0 %v7126_v38  ;;  %1640 = vmatprep.subr.bf16.mxu1 %v6363_v61  ;;  %v6367_v61 = vld [vmem:[%s8888_s6 + $0x8] ss:$16 sps:$4 sm:$0xff]  }
  0x7a   : > { %1342 = vmatprep.mubr.bf16.mxu0 %v8903_v2 }
  0x7b   : > { %6104 = vmatmul.mubr.bf16.gmra.mrb[36].mxu1 %v7091_v27 }
  0x7c   : > { %6107 = vmatprep.mubr.bf16.mxu1 %v7100_v30  ;;  %1641 = vmatpush1.bf16.msra.mxu1 %v6361_v62  ;;  %v6373_v62 = vld [vmem:[%s8888_s6 + $0x2c] ss:$16 sps:$4 sm:$0xff]  }
  0x7d   : > { %1642 = vmatprep.subr.bf16.mxu1 %v6366_v63 }
  0x80   : > { %1643 = vmatpush1.bf16.msra.mxu1 %v6364_v0  ;;  %v6371_v0 = vld [vmem:[%s8888_s6 + $0x28] ss:$16 sps:$4 sm:$0xff]  }
  0x81   : > { %1343 = vmatmul.mubr.bf16.gmra.mrb[40].mxu0 %v7132_v40 }
  0x82   : > { %1352 = vmatprep.mubr.bf16.mxu0 %v8903_v2 }
  0x83   : > { %6108 = vmatmul.mubr.bf16.gmra.mrb[40].mxu1 %v7126_v38 }
  0x84   : > { %6111 = vmatprep.mubr.bf16.mxu1 %v7132_v40 }
  0x89   : > { %1353 = vmatmul.mubr.bf16.gmra.mrb[44].mxu0 %v7160_v48 }
  0x8a   : > { %6131 = vmatprep.mubr.msk.bf16.mxu0 %vm6895_vm0, %v8901_v1 }
  0x8b   : > { %6112 = vmatmul.mubr.bf16.gmra.mrb[44].mxu1 %v7160_v48 }
  0x8c   : > { %1668 = vmatprep.mubr.bf16.mxu1 %v8903_v2 }
 0x104   : > { %v6069_v3 = vpop.f32.mrb[0].mxu0 }
 0x105   : > { %6672 = vtanh.f32 %v6069_v3  ;;  %v802_v4 = vpop.f32.mrb[1].mxu0 }
 0x106   : > { %6674 = vtanh.f32 %v802_v4  ;;  %v6070_v5 = vpop.f32.mrb[2].mxu0  ;;  %v7256_v18 = vpop.f32.mrb[0].mxu1  ;;  %v6376_v4 = vld [vmem:[%s8888_s6 + $0x4c] ss:$16 sps:$4 sm:$0xff]  }
 0x107   : > { %6676 = vtanh.f32 %v6070_v5  ;;  %v805_v6 = vpop.f32.mrb[3].mxu0  ;;  %v7261_v20 = vpop.f32.mrb[1].mxu1 }
 0x108   : > { %6678 = vtanh.f32 %v805_v6  ;;  %v7265_v22 = vpop.f32.mrb[2].mxu1 }
 0x109   : > { %v7267_v25 = vpop.f32.mrb[3].mxu1 }
 0x10c   : > { %v6073_v7 = vpop.f32.mrb[4].mxu0 }
 0x10d   : > { %6680 = vtanh.f32 %v6073_v7  ;;  %v818_v8 = vpop.f32.mrb[5].mxu0  ;;  %v6374_v7 = vld [vmem:[%s8888_s6 + $0x48] ss:$16 sps:$4 sm:$0xff]  }
 0x10e   : > { %6682 = vtanh.f32 %v818_v8  ;;  %v6074_v9 = vpop.f32.mrb[6].mxu0  ;;  %v7275_v32 = vpop.f32.mrb[4].mxu1  ;;  %v6379_v8 = vld [vmem:[%s8888_s6 + $0x6c] ss:$16 sps:$4 sm:$0xff]  }
 0x10f   : > { %v6673_v10 = vpop.eup %6672  ;;  %6684 = vtanh.f32 %v6074_v9  ;;  %v821_v11 = vpop.f32.mrb[7].mxu0 }
 0x110   : > { %v6675_v12 = vpop.eup %6674  ;;  %6686 = vtanh.f32 %v821_v11  ;;  %v7280_v34 = vpop.f32.mrb[5].mxu1 }
 0x111   : > { %v6677_v13 = vpop.eup %6676  ;;  %v7284_v36 = vpop.f32.mrb[6].mxu1 }
 0x112   : > { %v6679_v14 = vpop.eup %6678  ;;  %v7252_v15 = vpack.c.bf16 %v6677_v13, %v6673_v10  ;;  %v7286_v39 = vpop.f32.mrb[7].mxu1  ;;  %v6377_v10 = vld [vmem:[%s8888_s6 + $0x68] ss:$16 sps:$4 sm:$0xff]  }
 0x113   : > { %v7254_v16 = vpack.c.bf16 %v6679_v14, %v6675_v12 }
 0x114   : > { %v6077_v17 = vpop.f32.mrb[8].mxu0 }
 0x115   : > { %6688 = vtanh.f32 %v6077_v17  ;;  %v834_v19 = vpop.f32.mrb[9].mxu0  ;;  %6116 = vmatpush3.bf16.msra.mxu0 %v7254_v16  ;;  %5556 = vmatmul.mubr.msk.bf16.vlgmr.msra.gmra.mrb[48].mxu1 %vm1611_vm1, %v7254_v16 }
 0x116   : > { %6690 = vtanh.f32 %v834_v19  ;;  %v6078_v21 = vpop.f32.mrb[10].mxu0  ;;  %6117 = vmatprep.subr.bf16.mxu0 %v8901_v1  ;;  %1678 = vmatprep.mubr.bf16.mxu1 %v8903_v2  ;;  %v7294_v45 = vpop.f32.mrb[8].mxu1 }
 0x117   : > { %v6681_v23 = vpop.eup %6680  ;;  %6692 = vtanh.f32 %v6078_v21  ;;  %v837_v24 = vpop.f32.mrb[11].mxu0 }
 0x118   : > { %v6683_v26 = vpop.eup %6682  ;;  %6694 = vtanh.f32 %v837_v24  ;;  %v7299_v46 = vpop.f32.mrb[9].mxu1 }
 0x119   : > { %v6685_v27 = vpop.eup %6684  ;;  %6118 = vmatpush3.bf16.msra.mxu0 %v7252_v15  ;;  %v7303_v47 = vpop.f32.mrb[10].mxu1 }
 0x11a   : > { %v6687_v28 = vpop.eup %6686  ;;  %6119 = vmatprep.subr.bf16.mxu0 %v8901_v1  ;;  %v7271_v29 = vpack.c.bf16 %v6685_v27, %v6681_v23  ;;  %v7305_v49 = vpop.f32.mrb[11].mxu1 }
 0x11b   : > { %v7273_v30 = vpack.c.bf16 %v6687_v28, %v6683_v26 }
 0x11c   : > { %v6081_v31 = vpop.f32.mrb[12].mxu0 }
 0x11d   : > { %6696 = vtanh.f32 %v6081_v31  ;;  %v850_v33 = vpop.f32.mrb[13].mxu0  ;;  %6120 = vmatpush3.bf16.msra.mxu0 %v7273_v30  ;;  %5557 = vmatmul.mubr.msk.bf16.gmra.mrb[52].mxu1 %vm1611_vm1, %v7252_v15 }
 0x11e   : > { %6698 = vtanh.f32 %v850_v33  ;;  %v6082_v35 = vpop.f32.mrb[14].mxu0  ;;  %6121 = vmatprep.subr.bf16.mxu0 %v8901_v1  ;;  %1688 = vmatprep.mubr.bf16.mxu1 %v8903_v2  ;;  %v7313_v55 = vpop.f32.mrb[12].mxu1 }
 0x11f   : > { %v6689_v37 = vpop.eup %6688  ;;  %6700 = vtanh.f32 %v6082_v35  ;;  %v853_v38 = vpop.f32.mrb[15].mxu0 }
 0x120   : > { %v6691_v40 = vpop.eup %6690  ;;  %6702 = vtanh.f32 %v853_v38  ;;  %v7318_v56 = vpop.f32.mrb[13].mxu1 }
 0x121   : > { %v6693_v41 = vpop.eup %6692  ;;  %6122 = vmatpush3.bf16.msra.mxu0 %v7271_v29  ;;  %v7325_v58 = vpop.f32.mrb[14].mxu1 }
 0x122   : > { %v6695_v42 = vpop.eup %6694  ;;  %6123 = vmatprep.subr.bf16.mxu0 %v8901_v1  ;;  %v7290_v43 = vpack.c.bf16 %v6693_v41, %v6689_v37  ;;  %v7327_v59 = vpop.f32.mrb[15].mxu1 }
 0x123   : > { %v7292_v44 = vpack.c.bf16 %v6695_v42, %v6691_v40 }
 0x125   : > { %6124 = vmatpush3.bf16.msra.mxu0 %v7292_v44  ;;  %5558 = vmatmul.mubr.msk.bf16.gmra.mrb[56].mxu1 %vm1611_vm1, %v7273_v30 }
 0x126   : > { %6125 = vmatprep.subr.bf16.mxu0 %v8901_v1  ;;  %1698 = vmatprep.mubr.bf16.mxu1 %v8903_v2  ;;  %v7339_v63 = vpop.f32.mrb[16].mxu1 }
 0x127   : > { %v6697_v48 = vpop.eup %6696  ;;  %v7346_v3 = vpop.f32.mrb[17].mxu1 }
 0x128   : > { %v6699_v50 = vpop.eup %6698  ;;  %v7352_v5 = vpop.f32.mrb[18].mxu1 }
 0x129   : > { %v6701_v51 = vpop.eup %6700  ;;  %6126 = vmatpush3.bf16.msra.mxu0 %v7290_v43  ;;  %v7355_v6 = vpop.f32.mrb[19].mxu1 }
 0x12a   : > { %v6703_v52 = vpop.eup %6702  ;;  %6127 = vmatprep.subr.bf16.mxu0 %v8901_v1  ;;  %v7309_v53 = vpack.c.bf16 %v6701_v51, %v6697_v48  ;;  %v7432_v51 = vpop.f32.mrb[16].mxu0 }
 0x12b   : > { %v7311_v54 = vpack.c.bf16 %v6703_v52, %v6699_v50 }
 0x12d   : > { %6128 = vmatpush3.bf16.msra.mxu0 %v7311_v54  ;;  %5559 = vmatmul.mubr.msk.bf16.gmra.mrb[60].mxu1 %vm1611_vm1, %v7271_v29 }
 0x12e   : > { %6129 = vmatprep.subr.bf16.mxu0 %v8901_v1  ;;  %1708 = vmatprep.mubr.bf16.mxu1 %v8903_v2  ;;  %v7363_v9 = vpop.f32.mrb[20].mxu1 }
 0x12f   : > { %v7370_v11 = vpop.f32.mrb[21].mxu1 }
 0x130   : > { %v7373_v12 = vpop.f32.mrb[22].mxu1 }
 0x131   : > { %6130 = vmatpush3.bf16.msra.mxu0 %v7309_v53  ;;  %v7375_v13 = vpop.f32.mrb[23].mxu1 }
 0x132   : > { %1749 = vmatprep.subr.bf16.mxu0 %v6369_v57 }
 0x134   : > { %6132 = vmatmul.mubr.bf16.vlgmr.msra.gmra.mrb[48].mxu0 %v6370_v60 }
 0x135   : > { %5560 = vmatmul.mubr.msk.bf16.gmra.mrb[64].mxu1 %vm1611_vm1, %v7292_v44  ;;  %1750 = vmatpush1.bf16.msra.mxu0 %v6367_v61 }
 0x136   : > { %1751 = vmatprep.subr.bf16.mxu0 %v6373_v62  ;;  %1718 = vmatprep.mubr.bf16.mxu1 %v8903_v2  ;;  %v7379_v14 = vpop.f32.mrb[24].mxu1 }
 0x137   : > { %1781 = vmatprep.mubr.bf16.mxu0 %v8903_v2  ;;  %v7384_v17 = vpop.f32.mrb[25].mxu1 }
 0x138   : > { %v7387_v19 = vpop.f32.mrb[26].mxu1 }
 0x139   : > { %1752 = vmatpush1.bf16.msra.mxu0 %v6371_v0  ;;  %v7389_v21 = vpop.f32.mrb[27].mxu1 }
 0x13a   : > { %1753 = vmatprep.subr.bf16.mxu0 %v6376_v4 }
 0x13d   : > { %5561 = vmatmul.mubr.msk.bf16.gmra.mrb[68].mxu1 %vm1611_vm1, %v7290_v43  ;;  %1754 = vmatpush1.bf16.msra.mxu0 %v6374_v7 }
 0x13e   : > { %1755 = vmatprep.subr.bf16.mxu0 %v6379_v8  ;;  %1728 = vmatprep.mubr.bf16.mxu1 %v8903_v2  ;;  %v7393_v23 = vpop.f32.mrb[28].mxu1 }
 0x141   : > { %1756 = vmatpush1.bf16.msra.mxu0 %v6377_v10 }
 0x144   : > { %5564 = vmatmul.mubr.msk.bf16.vlgmr.msra.gmra.mrb[52].mxu0 %vm1611_vm1, %v7254_v16  ;;  %v7398_v16 = vpop.f32.mrb[29].mxu1 }
 0x145   : > { %5562 = vmatmul.mubr.msk.bf16.gmra.mrb[72].mxu1 %vm1611_vm1, %v7311_v54  ;;  %1791 = vmatprep.mubr.bf16.mxu0 %v8903_v2  ;;  %v7400_v24 = vpop.f32.mrb[30].mxu1 }
 0x146   : > { %1738 = vmatprep.mubr.bf16.mxu1 %v8903_v2  ;;  %v7403_v26 = vpop.f32.mrb[31].mxu1 }
 0x147   : > { %v6101_v27 = vpop.f32.mrb[32].mxu1 }
 0x148   : > { %4016 = vrot.lane.b32.xlu1 %v6101_v27, %s8905_s26 }
 0x14c   : > { %5565 = vmatmul.mubr.msk.bf16.gmra.mrb[56].mxu0 %vm1611_vm1, %v7252_v15  ;;  %v1397_v15 = vpop.f32.mrb[33].mxu1 }
 0x14d   : > { %5563 = vmatmul.mubr.msk.bf16.gmra.mrb[76].mxu1 %vm1611_vm1, %v7309_v53  ;;  %1801 = vmatprep.mubr.bf16.mxu0 %v8903_v2  ;;  %v6102_v28 = vpop.f32.mrb[34].mxu1 }
 0x14e   : > { %1958 = vmatprep.mubr.bf16.mxu1 %v8903_v2  ;;  %4012 = vrot.lane.b32.xlu0 %v1397_v15, %s8905_s26  ;;  %v1400_v31 = vpop.f32.mrb[35].mxu1 }
 0x14f   : > { %4018 = vrot.lane.b32.xlu1 %v6102_v28, %s8905_s26  ;;  %v6105_v33 = vpop.f32.mrb[36].mxu1 }
 0x152   : > { %4014 = vrot.lane.b32.xlu0 %v1400_v31, %s8905_s26 }
 0x154   : > { %5566 = vmatmul.mubr.msk.bf16.gmra.mrb[60].mxu0 %vm1611_vm1, %v7273_v30  ;;  %v1413_v30 = vpop.f32.mrb[37].mxu1 }
 0x155   : > { %1811 = vmatprep.mubr.bf16.mxu0 %v8903_v2  ;;  %v6106_v35 = vpop.f32.mrb[38].mxu1 }
 0x156   : > { %4020 = vrot.lane.b32.xlu0 %v1413_v30, %s8905_s26  ;;  %v1416_v37 = vpop.f32.mrb[39].mxu1 }
 0x157   : > { %4022 = vrot.lane.b32.xlu1 %v1416_v37, %s8905_s26  ;;  %v6109_v38 = vpop.f32.mrb[40].mxu1 }
 0x15a   : > { %4024 = vrot.lane.b32.xlu0 %v6105_v33, %s8905_s26 }
 0x15b   : > { %4026 = vrot.lane.b32.xlu1 %v6106_v35, %s8905_s26 }
 0x15c   : > { %5567 = vmatmul.mubr.msk.bf16.gmra.mrb[64].mxu0 %vm1611_vm1, %v7271_v29  ;;  %v1429_v29 = vpop.f32.mrb[41].mxu1 }
 0x15d   : > { %1821 = vmatprep.mubr.bf16.mxu0 %v8903_v2  ;;  %v6110_v40 = vpop.f32.mrb[42].mxu1 }
 0x15e   : > { %4028 = vrot.lane.b32.xlu0 %v1429_v29, %s8905_s26  ;;  %v1432_v41 = vpop.f32.mrb[43].mxu1 }
 0x15f   : > { %4030 = vrot.lane.b32.xlu1 %v1432_v41, %s8905_s26  ;;  %v6113_v42 = vpop.f32.mrb[44].mxu1 }
 0x162   : > { %4032 = vrot.lane.b32.xlu0 %v6109_v38, %s8905_s26 }
 0x163   : > { %4034 = vrot.lane.b32.xlu1 %v6110_v40, %s8905_s26 }
 0x164   : > { %5568 = vmatmul.mubr.msk.bf16.gmra.mrb[68].mxu0 %vm1611_vm1, %v7292_v44  ;;  %v1445_v44 = vpop.f32.mrb[45].mxu1 }
 0x165   : > { %1831 = vmatprep.mubr.bf16.mxu0 %v8903_v2  ;;  %v6114_v48 = vpop.f32.mrb[46].mxu1 }
 0x166   : > { %4036 = vrot.lane.b32.xlu0 %v1445_v44, %s8905_s26  ;;  %v1448_v50 = vpop.f32.mrb[47].mxu1 }
 0x167   : > { %4038 = vrot.lane.b32.xlu1 %v1448_v50, %s8905_s26 }
 0x16a   : > { %4040 = vrot.lane.b32.xlu0 %v6113_v42, %s8905_s26 }
 0x16b   : > { %4042 = vrot.lane.b32.xlu1 %v6114_v48, %s8905_s26  ;;  %s5479_s26 = sshll.u32 %s6998_s28, 1 }
 0x16c   : > { %5569 = vmatmul.mubr.msk.bf16.gmra.mrb[72].mxu0 %vm1611_vm1, %v7290_v43  ;;  %v7437_v43 = vpop.f32.mrb[17].mxu0  ;;  %p610_p5 = scmp.lt.s32.totalorder %s5479_s26, 3 }
 0x16d   : > { %1841 = vmatprep.mubr.bf16.mxu0 %v8903_v2  ;;  %v7440_v52 = vpop.f32.mrb[18].mxu0 }
 0x16e   : > { %v7442_v57 = vpop.f32.mrb[19].mxu0  ;;  %s8957_s26 = smov (!%p610_p5, %s5479_s26), 3 }
 0x16f   : > { %v7444_v60 = vpop.f32.mrb[20].mxu0  ;;  %s5480_s28 = sshll.u32 %s8957_s26, 3 }
 0x170   : > { %v7446_v61 = vpop.f32.mrb[21].mxu0  ;;  %s613_s21 = scalar_lea.vmem %s8953_s1, %s5480_s28 }
 0x171   : > { %v7448_v62 = vpop.f32.mrb[22].mxu0 }
 0x172   : > { %v7450_v0 = vpop.f32.mrb[23].mxu0 }
 0x173   : > { %v7452_v4 = vpop.f32.mrb[24].mxu0 }
 0x174   : > { %5570 = vmatmul.mubr.msk.bf16.gmra.mrb[76].mxu0 %vm1611_vm1, %v7311_v54  ;;  %v7456_v54 = vpop.f32.mrb[25].mxu0 }
 0x175   : > { %1851 = vmatprep.mubr.bf16.mxu0 %v8903_v2  ;;  %v7458_v7 = vpop.f32.mrb[26].mxu0 }
 0x176   : > { %v7460_v8 = vpop.f32.mrb[27].mxu0 }
 0x177   : > { %v7462_v10 = vpop.f32.mrb[28].mxu0 }
 0x178   : > { %v7464_v27 = vpop.f32.mrb[29].mxu0 }
 0x179   : > { %v7466_v15 = vpop.f32.mrb[30].mxu0 }
 0x17a   : > { %v7468_v28 = vpop.f32.mrb[31].mxu0 }
 0x17b   : > { %8911 = vst [vmem:[#allocation2_spill] sm:$0xff] %v7468_v28  ;;  %v7470_v31 = vpop.f32.mrb[32].mxu0 }
 0x17c   : > { %5571 = vmatmul.mubr.msk.bf16.gmra.mrb[80].mxu0 %vm1611_vm1, %v7309_v53  ;;  %8912 = vst [vmem:[#allocation3_spill] sm:$0xff] %v7470_v31  ;;  %v7472_v33 = vpop.f32.mrb[33].mxu0 }
 0x17d   : > { %8913 = vst [vmem:[#allocation4_spill] sm:$0xff] %v7472_v33  ;;  %v7474_v53 = vpop.f32.mrb[34].mxu0 }
 0x17e   : > { %8914 = vst [vmem:[#allocation5_spill] sm:$0xff] %v7474_v53  ;;  %v7476_v30 = vpop.f32.mrb[35].mxu0 }
 0x17f   : > { %8915 = vst [vmem:[#allocation6_spill] sm:$0xff] %v7476_v30  ;;  %v7478_v35 = vpop.f32.mrb[36].mxu0 }
 0x180   : > { %8916 = vst [vmem:[#allocation7_spill] sm:$0xff] %v7478_v35  ;;  %v7480_v37 = vpop.f32.mrb[37].mxu0 }
 0x181   : > { %8917 = vst [vmem:[#allocation8_spill] sm:$0xff] %v7480_v37  ;;  %v7482_v38 = vpop.f32.mrb[38].mxu0  ;;  %v6397_v37 = vld [vmem:[%s8889_s7 + $0x30] ss:$8 sps:$4 sm:$0xff]  }
 0x182   : > { %8918 = vst [vmem:[#allocation9_spill] sm:$0xff] %v7482_v38  ;;  %v7484_v29 = vpop.f32.mrb[39].mxu0 }
 0x183   : > { %8919 = vst [vmem:[#allocation10_spill] sm:$0xff] %v7484_v29  ;;  %v7486_v40 = vpop.f32.mrb[40].mxu0 }
 0x184   : > { %8920 = vst [vmem:[#allocation11_spill] sm:$0xff] %v7486_v40  ;;  %v7488_v41 = vpop.f32.mrb[41].mxu0  ;;  %v6394_v40 = vld [vmem:[%s8889_s7 + $0x20] ss:$8 sps:$4 sm:$0xff]  }
 0x185   : > { %8921 = vst [vmem:[#allocation12_spill] sm:$0xff] %v7488_v41  ;;  %v7490_v42 = vpop.f32.mrb[42].mxu0 }
 0x186   : > { %8922 = vst [vmem:[#allocation13_spill] sm:$0xff] %v7490_v42  ;;  %v7492_v44 = vpop.f32.mrb[43].mxu0 }
 0x187   : > { %8923 = vst [vmem:[#allocation14_spill] sm:$0xff] %v7492_v44  ;;  %v7494_v48 = vpop.f32.mrb[44].mxu0  ;;  %v6388_v44 = vld [vmem:[%s8889_s7] ss:$8 sps:$4 sm:$0xff]  }
 0x188   : > { %8924 = vst [vmem:[#allocation15_spill] sm:$0xff] %v7494_v48  ;;  %v7496_v50 = vpop.f32.mrb[45].mxu0  ;;  %v6396_v48 = vld [vmem:[%s8889_s7 + $0x24] ss:$8 sps:$4 sm:$0xff]  }
 0x189   : > { %8925 = vst [vmem:[#allocation16_spill] sm:$0xff] %v7496_v50  ;;  %v7498_v1 = vpop.f32.mrb[46].mxu0  ;;  %v6390_v50 = vld [vmem:[%s8889_s7 + $0x4] ss:$8 sps:$4 sm:$0xff]  }
 0x18a   : > { %8926 = vst [vmem:[#allocation17_spill] sm:$0xff] %v7498_v1  ;;  %v7500_v2 = vpop.f32.mrb[47].mxu0  ;;  %2279 = vmatprep.subr.bf16.mxu0 %v6390_v50  ;;  %v6391_v1 = vld [vmem:[%s8889_s7 + $0x10] ss:$8 sps:$4 sm:$0xff]  }
 0x18b   : > { %8927 = vst [vmem:[#allocation18_spill] sm:$0xff] %v7500_v2  ;;  %v6393_v2 = vld [vmem:[%s8889_s7 + $0x14] ss:$8 sps:$4 sm:$0xff]   ;;  %2280 = vmatpush1.bf16.msra.mxu0 %v6388_v44 }
 0x18c   : > { %2281 = vmatprep.subr.bf16.mxu0 %v6393_v2  ;;  %v6399_v44 = vld [vmem:[%s8889_s7 + $0x34] ss:$8 sps:$4 sm:$0xff]  }
 0x18f   : > { %2282 = vmatpush1.bf16.msra.mxu0 %v6391_v1  ;;  %v6402_v1 = vld [vmem:[%s8889_s7 + $0x44] ss:$8 sps:$4 sm:$0xff]  }
 0x190   : > { %2283 = vmatprep.subr.bf16.mxu0 %v6396_v48 }
 0x193   : > { %2284 = vmatpush1.bf16.msra.mxu0 %v6394_v40  ;;  %v6405_v40 = vld [vmem:[%s8889_s7 + $0x54] ss:$8 sps:$4 sm:$0xff]  }
 0x194   : > { %2285 = vmatprep.subr.bf16.mxu0 %v6399_v44 }
 0x197   : > { %2286 = vmatpush1.bf16.msra.mxu0 %v6397_v37  ;;  %v6408_v37 = vld [vmem:[%s8889_s7 + $0x64] ss:$8 sps:$4 sm:$0xff]  }
 0x198   : > { %2287 = vmatprep.subr.bf16.mxu0 %v6402_v1 }
 0x1e8   : > { %v1670_v42 = vpop.f32.mrb[48].mxu1 }
 0x1e9   : > { %v1672_v41 = vpop.f32.mrb[49].mxu1 }
 0x1ea   : > { %v1674_v29 = vpop.f32.mrb[50].mxu1 }
 0x1eb   : > { %v1862_v50 = vpack.c.bf16 %v1674_v29, %v1670_v42  ;;  %v1676_v38 = vpop.f32.mrb[51].mxu1  ;;  %v6400_v29 = vld [vmem:[%s8889_s7 + $0x40] ss:$8 sps:$4 sm:$0xff]  }
 0x1ec   : > { %v1863_v2 = vpack.c.bf16 %v1676_v38, %v1672_v41  ;;  %2288 = vmatpush1.bf16.msra.mxu0 %v6400_v29  ;;  %v6411_v29 = vld [vmem:[%s8889_s7 + $0x74] ss:$8 sps:$4 sm:$0xff]  }
 0x1ed   : > { %2289 = vmatprep.subr.bf16.mxu0 %v6405_v40 }
 0x1ee   : > { %1926 = vmatprep.subr.bf16.mxu1 %v1863_v2 }
 0x1ef   : > { %1927 = vmatpush1.bf16.msra.mxu1 %v1862_v50  ;;  %v6403_v50 = vld [vmem:[%s8889_s7 + $0x50] ss:$8 sps:$4 sm:$0xff]  }
 0x1f0   : > { %v1680_v48 = vpop.f32.mrb[52].mxu1  ;;  %2290 = vmatpush1.bf16.msra.mxu0 %v6403_v50 }
 0x1f1   : > { %v1682_v35 = vpop.f32.mrb[53].mxu1  ;;  %2291 = vmatprep.subr.bf16.mxu0 %v6408_v37 }
 0x1f2   : > { %v1684_v38 = vpop.f32.mrb[54].mxu1 }
 0x1f3   : > { %v1864_v41 = vpack.c.bf16 %v1684_v38, %v1680_v48  ;;  %v1686_v42 = vpop.f32.mrb[55].mxu1  ;;  %v6406_v48 = vld [vmem:[%s8889_s7 + $0x60] ss:$8 sps:$4 sm:$0xff]  }
 0x1f4   : > { %v1865_v44 = vpack.c.bf16 %v1686_v42, %v1682_v35  ;;  %2292 = vmatpush1.bf16.msra.mxu0 %v6406_v48  ;;  %v6417_v48 = vld [vmem:[%s8889_s7 + $0x94] ss:$8 sps:$4 sm:$0xff]  }
 0x1f5   : > { %2293 = vmatprep.subr.bf16.mxu0 %v6411_v29 }
 0x1f6   : > { %1928 = vmatprep.subr.bf16.mxu1 %v1865_v44  ;;  %v6414_v44 = vld [vmem:[%s8889_s7 + $0x84] ss:$8 sps:$4 sm:$0xff]  }
 0x1f7   : > { %1929 = vmatpush1.bf16.msra.mxu1 %v1864_v41  ;;  %v6409_v41 = vld [vmem:[%s8889_s7 + $0x70] ss:$8 sps:$4 sm:$0xff]  }
 0x1f8   : > { %v1690_v2 = vpop.f32.mrb[56].mxu1  ;;  %2294 = vmatpush1.bf16.msra.mxu0 %v6409_v41 }
 0x1f9   : > { %v1692_v1 = vpop.f32.mrb[57].mxu1  ;;  %2295 = vmatprep.subr.bf16.mxu0 %v6414_v44 }
 0x1fa   : > { %v1694_v35 = vpop.f32.mrb[58].mxu1 }
 0x1fb   : > { %v1866_v38 = vpack.c.bf16 %v1694_v35, %v1690_v2  ;;  %v1696_v40 = vpop.f32.mrb[59].mxu1  ;;  %v6412_v2 = vld [vmem:[%s8889_s7 + $0x80] ss:$8 sps:$4 sm:$0xff]  }
 0x1fc   : > { %v1867_v42 = vpack.c.bf16 %v1696_v40, %v1692_v1  ;;  %2296 = vmatpush1.bf16.msra.mxu0 %v6412_v2 }
 0x1fd   : > { %2297 = vmatprep.subr.bf16.mxu0 %v6417_v48  ;;  %v6423_v48 = vld [vmem:[%s8889_s7 + $0xb4] ss:$8 sps:$4 sm:$0xff]  }
 0x1fe   : > { %1930 = vmatprep.subr.bf16.mxu1 %v1867_v42  ;;  %v6420_v42 = vld [vmem:[%s8889_s7 + $0xa4] ss:$8 sps:$4 sm:$0xff]  }
 0x1ff   : > { %1931 = vmatpush1.bf16.msra.mxu1 %v1866_v38  ;;  %v6415_v38 = vld [vmem:[%s8889_s7 + $0x90] ss:$8 sps:$4 sm:$0xff]  }
 0x200   : > { %v1700_v50 = vpop.f32.mrb[60].mxu1  ;;  %2298 = vmatpush1.bf16.msra.mxu0 %v6415_v38  ;;  %v6426_v38 = vld [vmem:[%s8889_s7 + $0xc4] ss:$8 sps:$4 sm:$0xff]  }
 0x201   : > { %v1702_v37 = vpop.f32.mrb[61].mxu1  ;;  %2299 = vmatprep.subr.bf16.mxu0 %v6420_v42 }
 0x202   : > { %v1704_v1 = vpop.f32.mrb[62].mxu1 }
 0x203   : > { %v1868_v35 = vpack.c.bf16 %v1704_v1, %v1700_v50  ;;  %v1706_v29 = vpop.f32.mrb[63].mxu1 }
 0x204   : > { %v1869_v40 = vpack.c.bf16 %v1706_v29, %v1702_v37  ;;  %v6418_v37 = vld [vmem:[%s8889_s7 + $0xa0] ss:$8 sps:$4 sm:$0xff]  }
 0x205   : > { %2300 = vmatpush1.bf16.msra.mxu0 %v6418_v37  ;;  %v6429_v37 = vld [vmem:[%s8889_s7 + $0xd4] ss:$8 sps:$4 sm:$0xff]  }
 0x206   : > { %1932 = vmatprep.subr.bf16.mxu1 %v1869_v40  ;;  %2301 = vmatprep.subr.bf16.mxu0 %v6423_v48 }
 0x207   : > { %1933 = vmatpush1.bf16.msra.mxu1 %v1868_v35  ;;  %v7572_v41 = vpop.f32.mrb[48].mxu0 }
 0x208   : > { %8929 = vst [vmem:[#allocation19_spill] sm:$0xff] %v7572_v41  ;;  %v1710_v44 = vpop.f32.mrb[64].mxu1  ;;  %v6133_v30 = vpop.f32.mrb[49].mxu0 }
 0x209   : > { %v1712_v53 = vpop.f32.mrb[65].mxu1  ;;  %v7574_v50 = vpop.f32.mrb[50].mxu0  ;;  %v6421_v30 = vld [vmem:[%s8889_s7 + $0xb0] ss:$8 sps:$4 sm:$0xff]  }
 0x20a   : > { %8930 = vst [vmem:[#allocation20_spill] sm:$0xff] %v7574_v50  ;;  %v1714_v2 = vpop.f32.mrb[66].mxu1  ;;  %v6134_v1 = vpop.f32.mrb[51].mxu0  ;;  %2302 = vmatpush1.bf16.msra.mxu0 %v6421_v30 }
 0x20b   : > { %v1870_v35 = vpack.c.bf16 %v1714_v2, %v1710_v44  ;;  %v1716_v29 = vpop.f32.mrb[67].mxu1  ;;  %v6424_v44 = vld [vmem:[%s8889_s7 + $0xc0] ss:$8 sps:$4 sm:$0xff]   ;;  %2303 = vmatprep.subr.bf16.mxu0 %v6426_v38 }
 0x20c   : > { %v1871_v40 = vpack.c.bf16 %v1716_v29, %v1712_v53 }
 0x20e   : > { %1934 = vmatprep.subr.bf16.mxu1 %v1871_v40  ;;  %2304 = vmatpush1.bf16.msra.mxu0 %v6424_v44  ;;  %v6432_v40 = vld [vmem:[%s8889_s7 + $0xe4] ss:$8 sps:$4 sm:$0xff]  }
 0x20f   : > { %1935 = vmatpush1.bf16.msra.mxu1 %v1870_v35  ;;  %v6427_v35 = vld [vmem:[%s8889_s7 + $0xd0] ss:$8 sps:$4 sm:$0xff]   ;;  %2305 = vmatprep.subr.bf16.mxu0 %v6429_v37  ;;  %v6430_v37 = vld [vmem:[%s8889_s7 + $0xe0] ss:$8 sps:$4 sm:$0xff]  }
 0x210   : > { %v1720_v42 = vpop.f32.mrb[68].mxu1 }
 0x211   : > { %v1722_v1 = vpop.f32.mrb[69].mxu1 }
 0x212   : > { %v1724_v53 = vpop.f32.mrb[70].mxu1  ;;  %2306 = vmatpush1.bf16.msra.mxu0 %v6427_v35 }
 0x213   : > { %v1872_v2 = vpack.c.bf16 %v1724_v53, %v1720_v42  ;;  %v1726_v48 = vpop.f32.mrb[71].mxu1  ;;  %2307 = vmatprep.subr.bf16.mxu0 %v6432_v40 }
 0x214   : > { %v1873_v29 = vpack.c.bf16 %v1726_v48, %v1722_v1 }
 0x216   : > { %1936 = vmatprep.subr.bf16.mxu1 %v1873_v29  ;;  %2308 = vmatpush1.bf16.msra.mxu0 %v6430_v37 }
 0x217   : > { %v1783_v30 = vpop.f32.mrb[52].mxu0  ;;  %1937 = vmatpush1.bf16.msra.mxu1 %v1872_v2 }
 0x218   : > { %v7601_v38 = vmul.f32 %v1783_v30, %v7256_v18  ;;  %v1730_v50 = vpop.f32.mrb[72].mxu1  ;;  %v1785_v42 = vpop.f32.mrb[53].mxu0 }
 0x219   : > { %v7604_v1 = vmul.f32 %v1785_v42, %v7261_v20  ;;  %v1732_v44 = vpop.f32.mrb[73].mxu1  ;;  %v1787_v53 = vpop.f32.mrb[54].mxu0 }
 0x21a   : > { %v7610_v48 = vmul.f32 %v1787_v53, %v7265_v22  ;;  %v1734_v29 = vpop.f32.mrb[74].mxu1  ;;  %v1789_v2 = vpop.f32.mrb[55].mxu0 }
 0x21b   : > { %v1874_v18 = vpack.c.bf16 %v1734_v29, %v1730_v50  ;;  %v7613_v30 = vmul.f32 %v1789_v2, %v7267_v25  ;;  %v1736_v41 = vpop.f32.mrb[75].mxu1 }
 0x21c   : > { %v1875_v20 = vpack.c.bf16 %v1736_v41, %v1732_v44 }
 0x21e   : > { %1938 = vmatprep.subr.bf16.mxu1 %v1875_v20 }
 0x21f   : > { %v1793_v42 = vpop.f32.mrb[56].mxu0  ;;  %1939 = vmatpush1.bf16.msra.mxu1 %v1874_v18  ;;  %v6380_v18 = vld [vmem:[%s7507_s20] sm:$0xff]  }
 0x220   : > { %v7616_v35 = vmul.f32 %v1793_v42, %v7275_v32  ;;  %v1740_v33 = vpop.f32.mrb[76].mxu1  ;;  %v1795_v22 = vpop.f32.mrb[57].mxu0 }
 0x221   : > { %v7619_v53 = vmul.f32 %v1795_v22, %v7280_v34  ;;  %v1742_v40 = vpop.f32.mrb[77].mxu1  ;;  %v1797_v50 = vpop.f32.mrb[58].mxu0 }
 0x222   : > { %v7622_v25 = vmul.f32 %v1797_v50, %v7284_v36  ;;  %v1744_v29 = vpop.f32.mrb[78].mxu1  ;;  %v1799_v41 = vpop.f32.mrb[59].mxu0  ;;  %v8931_v50 = vmov 0  }
 0x223   : > { %v1876_v44 = vpack.c.bf16 %v1744_v29, %v1740_v33  ;;  %v7625_v37 = vmul.f32 %v1799_v41, %v7286_v39  ;;  %v1746_v2 = vpop.f32.mrb[79].mxu1  ;;  %v6381_v29 = vld [vmem:[%s7507_s20 + $0x8] sm:$0xff]  }
 0x224   : > { %v1877_v32 = vpack.c.bf16 %v1746_v2, %v1742_v40 }
 0x226   : > { %1940 = vmatprep.subr.bf16.mxu1 %v1877_v32 }
 0x227   : > { %v1803_v20 = vpop.f32.mrb[60].mxu0  ;;  %1941 = vmatpush1.bf16.msra.mxu1 %v1876_v44 }
 0x228   : > { %v7629_v34 = vmul.f32 %v1803_v20, %v7294_v45  ;;  %v1805_v42 = vpop.f32.mrb[61].mxu0 }
 0x229   : > { %v7632_v36 = vmul.f32 %v1805_v42, %v7299_v46  ;;  %v1807_v22 = vpop.f32.mrb[62].mxu0 }
 0x22a   : > { %v7635_v33 = vmul.f32 %v1807_v22, %v7303_v47  ;;  %v1809_v39 = vpop.f32.mrb[63].mxu0  ;;  %1959 = vmatmul.mubr.bf16.vlgmr.msra.gmra.mrb[80].mxu1 %v6380_v18  ;;  %v6382_v18 = vld [vmem:[%s7507_s20 + $0x10] sm:$0xff]  }
 0x22b   : > { %v7638_v40 = vmul.f32 %v1809_v39, %v7305_v49  ;;  %1968 = vmatprep.mubr.bf16.mxu1 %v8931_v50 }
 0x22f   : > { %v1813_v41 = vpop.f32.mrb[64].mxu0 }
 0x230   : > { %v7643_v45 = vmul.f32 %v1813_v41, %v7313_v55  ;;  %v1815_v44 = vpop.f32.mrb[65].mxu0 }
 0x231   : > { %v7646_v46 = vmul.f32 %v1815_v44, %v7318_v56  ;;  %v1817_v2 = vpop.f32.mrb[66].mxu0 }
 0x232   : > { %v7649_v47 = vmul.f32 %v1817_v2, %v7325_v58  ;;  %v1819_v32 = vpop.f32.mrb[67].mxu0  ;;  %1969 = vmatmul.mubr.bf16.gmra.mrb[84].mxu1 %v6381_v29  ;;  %v6383_v29 = vld [vmem:[%s7507_s20 + $0x18] sm:$0xff]  }
 0x233   : > { %v7652_v49 = vmul.f32 %v1819_v32, %v7327_v59  ;;  %1978 = vmatprep.mubr.bf16.mxu1 %v8931_v50 }
 0x237   : > { %v1823_v20 = vpop.f32.mrb[68].mxu0 }
 0x238   : > { %v7657_v55 = vmul.f32 %v1823_v20, %v7339_v63  ;;  %v1825_v42 = vpop.f32.mrb[69].mxu0 }
 0x239   : > { %v7660_v56 = vmul.f32 %v1825_v42, %v7346_v3  ;;  %v1827_v22 = vpop.f32.mrb[70].mxu0 }
 0x23a   : > { %v7663_v58 = vmul.f32 %v1827_v22, %v7352_v5  ;;  %v1829_v39 = vpop.f32.mrb[71].mxu0  ;;  %1979 = vmatmul.mubr.bf16.gmra.mrb[88].mxu1 %v6382_v18  ;;  %v6384_v18 = vld [vmem:[%s7507_s20 + $0x20] sm:$0xff]  }
 0x23b   : > { %v7666_v59 = vmul.f32 %v1829_v39, %v7355_v6  ;;  %1988 = vmatprep.mubr.bf16.mxu1 %v8931_v50 }
 0x23f   : > { %v1833_v41 = vpop.f32.mrb[72].mxu0 }
 0x240   : > { %v7671_v63 = vmul.f32 %v1833_v41, %v7363_v9  ;;  %v1835_v44 = vpop.f32.mrb[73].mxu0 }
 0x241   : > { %v7674_v3 = vmul.f32 %v1835_v44, %v7370_v11  ;;  %v1837_v2 = vpop.f32.mrb[74].mxu0 }
 0x242   : > { %v7677_v5 = vmul.f32 %v1837_v2, %v7373_v12  ;;  %v1839_v32 = vpop.f32.mrb[75].mxu0  ;;  %1989 = vmatmul.mubr.bf16.gmra.mrb[92].mxu1 %v6383_v29  ;;  %v6385_v29 = vld [vmem:[%s7507_s20 + $0x28] sm:$0xff]  }
 0x243   : > { %v7680_v6 = vmul.f32 %v1839_v32, %v7375_v13  ;;  %1998 = vmatprep.mubr.bf16.mxu1 %v8931_v50 }
 0x247   : > { %v1843_v20 = vpop.f32.mrb[76].mxu0 }
 0x248   : > { %v7685_v9 = vmul.f32 %v1843_v20, %v7379_v14  ;;  %v1845_v42 = vpop.f32.mrb[77].mxu0 }
 0x249   : > { %v7688_v11 = vmul.f32 %v1845_v42, %v7384_v17  ;;  %v1847_v22 = vpop.f32.mrb[78].mxu0 }
 0x24a   : > { %v7691_v12 = vmul.f32 %v1847_v22, %v7387_v19  ;;  %v1849_v39 = vpop.f32.mrb[79].mxu0  ;;  %1999 = vmatmul.mubr.bf16.gmra.mrb[96].mxu1 %v6384_v18  ;;  %v6386_v18 = vld [vmem:[%s7507_s20 + $0x30] sm:$0xff]  }
 0x24b   : > { %v7694_v13 = vmul.f32 %v1849_v39, %v7389_v21  ;;  %2008 = vmatprep.mubr.bf16.mxu1 %v8931_v50 }
 0x24f   : > { %v1853_v14 = vpop.f32.mrb[80].mxu0 }
 0x250   : > { %v7699_v41 = vmul.f32 %v1853_v14, %v7393_v23  ;;  %v1855_v17 = vpop.f32.mrb[81].mxu0  ;;  %v6387_v23 = vld [vmem:[%s7507_s20 + $0x38] sm:$0xff]  }
 0x251   : > { %v7702_v44 = vmul.f32 %v1855_v17, %v7398_v16  ;;  %v1857_v19 = vpop.f32.mrb[82].mxu0  ;;  %v6435_v16 = vld [vmem:[%s8889_s7 + $0xf4] ss:$8 sps:$4 sm:$0xff]   ;;  %v6436_v17 = vld [vmem:[%s8890_s8] ss:$16 sps:$4 sm:$0xff]  }
 0x252   : > { %v7705_v2 = vmul.f32 %v1857_v19, %v7400_v24  ;;  %v1859_v32 = vpop.f32.mrb[83].mxu0  ;;  %2009 = vmatmul.mubr.bf16.gmra.mrb[100].mxu1 %v6385_v29  ;;  %v6433_v24 = vld [vmem:[%s8889_s7 + $0xf0] ss:$8 sps:$4 sm:$0xff]   ;;  %2309 = vmatprep.subr.bf16.mxu0 %v6435_v16  ;;  %v6441_v19 = vld [vmem:[%s8890_s8 + $0x24] ss:$16 sps:$4 sm:$0xff]  }
 0x253   : > { %v7708_v21 = vmul.f32 %v1859_v32, %v7403_v26  ;;  %2018 = vmatprep.mubr.bf16.mxu1 %v8931_v50  ;;  %2310 = vmatpush1.bf16.msra.mxu0 %v6433_v24  ;;  %v6438_v26 = vld [vmem:[%s8890_s8 + $0x4] ss:$16 sps:$4 sm:$0xff]  }
 0x254   : > { %2867 = vmatprep.subr.bf16.mxu0 %v6438_v26  ;;  %v6444_v16 = vld [vmem:[%s8890_s8 + $0x44] ss:$16 sps:$4 sm:$0xff]  }
 0x25a   : > { %2019 = vmatmul.mubr.bf16.gmra.mrb[104].mxu1 %v6386_v18  ;;  %v6439_v18 = vld [vmem:[%s8890_s8 + $0x20] ss:$16 sps:$4 sm:$0xff]  }
 0x25b   : > { %2028 = vmatprep.mubr.bf16.mxu1 %v8931_v50 }
 0x262   : > { %2029 = vmatmul.mubr.bf16.gmra.mrb[108].mxu1 %v6387_v23 }
 0x263   : > { %2472 = vmatprep.mubr.bf16.mxu1 %v8931_v50 }
 0x2fd   : > { %v1960_v20 = vpop.f32.mrb[80].mxu1 }
 0x2fe   : > { %v1962_v42 = vpop.f32.mrb[81].mxu1 }
 0x2ff   : > { %v1964_v22 = vpop.f32.mrb[82].mxu1 }
 0x300   : > { %v2071_v39 = vpack.c.bf16 %v1964_v22, %v1960_v20  ;;  %v1966_v29 = vpop.f32.mrb[83].mxu1  ;;  %v6442_v22 = vld [vmem:[%s8890_s8 + $0x40] ss:$16 sps:$4 sm:$0xff]  }
 0x301   : > { %v2072_v14 = vpack.c.bf16 %v1966_v29, %v1962_v42 }
 0x303   : > { %2311 = vmatprep.mubr.bf16.mxu0 %v2072_v14  ;;  %v6445_v14 = vld [vmem:[%s8890_s8 + $0x60] ss:$16 sps:$4 sm:$0xff]  }
 0x304   : > { %2312 = vmatmul.mubr.bf16.vlgmr.msra.gmra.mrb[84].mxu0 %v2071_v39  ;;  %v6447_v39 = vld [vmem:[%s8890_s8 + $0x64] ss:$16 sps:$4 sm:$0xff]  }
 0x305   : > { %v1970_v32 = vpop.f32.mrb[84].mxu1  ;;  %2868 = vmatpush1.bf16.msra.mxu0 %v6436_v17 }
 0x306   : > { %v1972_v23 = vpop.f32.mrb[85].mxu1  ;;  %2869 = vmatprep.subr.bf16.mxu0 %v6441_v19  ;;  %v6450_v19 = vld [vmem:[%s8890_s8 + $0x84] ss:$16 sps:$4 sm:$0xff]  }
 0x307   : > { %v1974_v24 = vpop.f32.mrb[86].mxu1 }
 0x308   : > { %v2073_v26 = vpack.c.bf16 %v1974_v24, %v1970_v32  ;;  %v1976_v20 = vpop.f32.mrb[87].mxu1  ;;  %v6448_v24 = vld [vmem:[%s8890_s8 + $0x80] ss:$16 sps:$4 sm:$0xff]  }
 0x309   : > { %v2074_v42 = vpack.c.bf16 %v1976_v20, %v1972_v23  ;;  %2870 = vmatpush1.bf16.msra.mxu0 %v6439_v18 }
 0x30a   : > { %2871 = vmatprep.subr.bf16.mxu0 %v6444_v16 }
 0x30b   : > { %2321 = vmatprep.mubr.bf16.mxu0 %v2074_v42  ;;  %v6451_v42 = vld [vmem:[%s8890_s8 + $0xa0] ss:$16 sps:$4 sm:$0xff]  }
 0x30c   : > { %2322 = vmatmul.mubr.bf16.gmra.mrb[88].mxu0 %v2073_v26  ;;  %v6453_v26 = vld [vmem:[%s8890_s8 + $0xa4] ss:$16 sps:$4 sm:$0xff]  }
 0x30d   : > { %v1980_v29 = vpop.f32.mrb[88].mxu1  ;;  %2872 = vmatpush1.bf16.msra.mxu0 %v6442_v22 }
 0x30e   : > { %v1982_v17 = vpop.f32.mrb[89].mxu1  ;;  %2873 = vmatprep.subr.bf16.mxu0 %v6447_v39  ;;  %v6456_v39 = vld [vmem:[%s8890_s8 + $0xc4] ss:$16 sps:$4 sm:$0xff]  }
 0x30f   : > { %v1984_v32 = vpop.f32.mrb[90].mxu1 }
 0x310   : > { %v2075_v18 = vpack.c.bf16 %v1984_v32, %v1980_v29  ;;  %v1986_v23 = vpop.f32.mrb[91].mxu1  ;;  %v6454_v32 = vld [vmem:[%s8890_s8 + $0xc0] ss:$16 sps:$4 sm:$0xff]  }
 0x311   : > { %v2076_v16 = vpack.c.bf16 %v1986_v23, %v1982_v17  ;;  %2874 = vmatpush1.bf16.msra.mxu0 %v6445_v14 }
 0x312   : > { %2875 = vmatprep.subr.bf16.mxu0 %v6450_v19 }
 0x313   : > { %2331 = vmatprep.mubr.bf16.mxu0 %v2076_v16  ;;  %v6457_v16 = vld [vmem:[%s8890_s8 + $0xe0] ss:$16 sps:$4 sm:$0xff]  }
 0x314   : > { %2332 = vmatmul.mubr.bf16.gmra.mrb[92].mxu0 %v2075_v18  ;;  %v6459_v18 = vld [vmem:[%s8890_s8 + $0xe4] ss:$16 sps:$4 sm:$0xff]  }
 0x315   : > { %v1990_v20 = vpop.f32.mrb[92].mxu1  ;;  %2876 = vmatpush1.bf16.msra.mxu0 %v6448_v24 }
 0x316   : > { %v1992_v22 = vpop.f32.mrb[93].mxu1  ;;  %2877 = vmatprep.subr.bf16.mxu0 %v6453_v26  ;;  %v6462_v26 = vld [vmem:[%s8890_s8 + $0x104] ss:$16 sps:$4 sm:$0xff]  }
 0x317   : > { %v1994_v29 = vpop.f32.mrb[94].mxu1 }
 0x318   : > { %v2077_v14 = vpack.c.bf16 %v1994_v29, %v1990_v20  ;;  %v1996_v17 = vpop.f32.mrb[95].mxu1  ;;  %v6460_v29 = vld [vmem:[%s8890_s8 + $0x100] ss:$16 sps:$4 sm:$0xff]  }
 0x319   : > { %v2078_v19 = vpack.c.bf16 %v1996_v17, %v1992_v22  ;;  %2878 = vmatpush1.bf16.msra.mxu0 %v6451_v42 }
 0x31a   : > { %2879 = vmatprep.subr.bf16.mxu0 %v6456_v39 }
 0x31b   : > { %2341 = vmatprep.mubr.bf16.mxu0 %v2078_v19  ;;  %v6463_v19 = vld [vmem:[%s8890_s8 + $0x120] ss:$16 sps:$4 sm:$0xff]  }
 0x31c   : > { %2342 = vmatmul.mubr.bf16.gmra.mrb[96].mxu0 %v2077_v14  ;;  %v6465_v14 = vld [vmem:[%s8890_s8 + $0x124] ss:$16 sps:$4 sm:$0xff]  }
 0x31d   : > { %v2000_v23 = vpop.f32.mrb[96].mxu1  ;;  %2880 = vmatpush1.bf16.msra.mxu0 %v6454_v32 }
 0x31e   : > { %v2002_v24 = vpop.f32.mrb[97].mxu1  ;;  %2881 = vmatprep.subr.bf16.mxu0 %v6459_v18  ;;  %v6468_v18 = vld [vmem:[%s8890_s8 + $0x144] ss:$16 sps:$4 sm:$0xff]  }
 0x31f   : > { %v2004_v20 = vpop.f32.mrb[98].mxu1 }
 0x320   : > { %v2079_v42 = vpack.c.bf16 %v2004_v20, %v2000_v23  ;;  %v2006_v22 = vpop.f32.mrb[99].mxu1  ;;  %v6466_v20 = vld [vmem:[%s8890_s8 + $0x140] ss:$16 sps:$4 sm:$0xff]  }
 0x321   : > { %v2080_v39 = vpack.c.bf16 %v2006_v22, %v2002_v24  ;;  %2882 = vmatpush1.bf16.msra.mxu0 %v6457_v16 }
 0x322   : > { %2883 = vmatprep.subr.bf16.mxu0 %v6462_v26 }
 0x323   : > { %2351 = vmatprep.mubr.bf16.mxu0 %v2080_v39 }
 0x324   : > { %2352 = vmatmul.mubr.bf16.gmra.mrb[100].mxu0 %v2079_v42 }
 0x325   : > { %v2010_v17 = vpop.f32.mrb[100].mxu1  ;;  %2884 = vmatpush1.bf16.msra.mxu0 %v6460_v29 }
 0x326   : > { %v2012_v32 = vpop.f32.mrb[101].mxu1  ;;  %2885 = vmatprep.subr.bf16.mxu0 %v6465_v14 }
 0x327   : > { %v2014_v23 = vpop.f32.mrb[102].mxu1 }
 0x328   : > { %v2081_v16 = vpack.c.bf16 %v2014_v23, %v2010_v17  ;;  %v2016_v24 = vpop.f32.mrb[103].mxu1 }
 0x329   : > { %v2082_v26 = vpack.c.bf16 %v2016_v24, %v2012_v32  ;;  %2886 = vmatpush1.bf16.msra.mxu0 %v6463_v19 }
 0x32a   : > { %2887 = vmatprep.subr.bf16.mxu0 %v6468_v18  ;;  %v6471_v18 = vld [vmem:[%s8890_s8 + $0x164] ss:$16 sps:$4 sm:$0xff]  }
 0x32b   : > { %2361 = vmatprep.mubr.bf16.mxu0 %v2082_v26  ;;  %v6472_v26 = vld [vmem:[%s8890_s8 + $0x180] ss:$16 sps:$4 sm:$0xff]  }
 0x32c   : > { %2362 = vmatmul.mubr.bf16.gmra.mrb[104].mxu0 %v2081_v16  ;;  %v6469_v16 = vld [vmem:[%s8890_s8 + $0x160] ss:$16 sps:$4 sm:$0xff]  }
 0x32d   : > { %v2020_v42 = vpop.f32.mrb[104].mxu1  ;;  %2888 = vmatpush1.bf16.msra.mxu0 %v6466_v20  ;;  %v6475_v20 = vld [vmem:[%s8890_s8 + $0x1a0] ss:$16 sps:$4 sm:$0xff]  }
 0x32e   : > { %v2022_v22 = vpop.f32.mrb[105].mxu1  ;;  %2889 = vmatprep.subr.bf16.mxu0 %v6471_v18 }
 0x32f   : > { %v2024_v39 = vpop.f32.mrb[106].mxu1 }
 0x330   : > { %v2083_v29 = vpack.c.bf16 %v2024_v39, %v2020_v42  ;;  %v2026_v14 = vpop.f32.mrb[107].mxu1  ;;  %v6480_v42 = vld [vmem:[%s8890_s8 + $0x1c4] ss:$16 sps:$4 sm:$0xff]  }
 0x331   : > { %v2084_v31 = vpack.c.bf16 %v2026_v14, %v2022_v22  ;;  %2890 = vmatpush1.bf16.msra.mxu0 %v6469_v16  ;;  %v6478_v22 = vld [vmem:[%s8890_s8 + $0x1c0] ss:$16 sps:$4 sm:$0xff]   ;;  %v6483_v39 = vld [vmem:[%s8890_s8 + $0x1e4] ss:$16 sps:$4 sm:$0xff]  }
 0x333   : > { %2371 = vmatprep.mubr.bf16.mxu0 %v2084_v31  ;;  %v6474_v31 = vld [vmem:[%s8890_s8 + $0x184] ss:$16 sps:$4 sm:$0xff]  }
 0x334   : > { %2372 = vmatmul.mubr.bf16.gmra.mrb[108].mxu0 %v2083_v29  ;;  %2891 = vmatprep.subr.bf16.mxu0 %v6474_v31  ;;  %v6481_v29 = vld [vmem:[%s8890_s8 + $0x1e0] ss:$16 sps:$4 sm:$0xff]  }
 0x335   : > { %v2030_v17 = vpop.f32.mrb[108].mxu1  ;;  %2892 = vmatpush1.bf16.msra.mxu0 %v6472_v26 }
 0x336   : > { %v2032_v23 = vpop.f32.mrb[109].mxu1 }
 0x337   : > { %v2034_v32 = vpop.f32.mrb[110].mxu1 }
 0x338   : > { %v2085_v19 = vpack.c.bf16 %v2034_v32, %v2030_v17  ;;  %v2036_v24 = vpop.f32.mrb[111].mxu1 }
 0x339   : > { %v2086_v28 = vpack.c.bf16 %v2036_v24, %v2032_v23 }
 0x33b   : > { %2381 = vmatprep.mubr.bf16.mxu0 %v2086_v28  ;;  %v6477_v28 = vld [vmem:[%s8890_s8 + $0x1a4] ss:$16 sps:$4 sm:$0xff]  }
 0x33c   : > { %2382 = vmatmul.mubr.bf16.gmra.mrb[112].mxu0 %v2085_v19  ;;  %2893 = vmatprep.subr.bf16.mxu0 %v6477_v28 }
 0x33d   : > { %2894 = vmatpush1.bf16.msra.mxu0 %v6475_v20 }
 0x33e   : > { %2895 = vmatprep.subr.bf16.mxu0 %v6480_v42 }
 0x341   : > { %2896 = vmatpush1.bf16.msra.mxu0 %v6478_v22 }
 0x342   : > { %2897 = vmatprep.subr.bf16.mxu0 %v6483_v39 }
 0x345   : > { %2898 = vmatpush1.bf16.msra.mxu0 %v6481_v29 }
 0x3d7   : > { %v2313_v14 = vpop.f32.mrb[84].mxu0 }
 0x3d8   : > { %v2314_v17 = vadd.f32 %v2313_v14, %v7601_v38  ;;  %v2315_v23 = vpop.f32.mrb[85].mxu0 }
 0x3d9   : > { %v2316_v32 = vadd.f32 %v2315_v23, %v7604_v1  ;;  %v2317_v19 = vpop.f32.mrb[86].mxu0 }
 0x3da   : > { %6704 = vtanh.f32 %v2314_v17  ;;  %v2318_v24 = vadd.f32 %v2317_v19, %v7610_v48  ;;  %v2319_v18 = vpop.f32.mrb[87].mxu0 }
 0x3db   : > { %6706 = vtanh.f32 %v2316_v32  ;;  %v2320_v16 = vadd.f32 %v2319_v18, %v7613_v30 }
 0x3dc   : > { %6708 = vtanh.f32 %v2318_v24 }
 0x3dd   : > { %6710 = vtanh.f32 %v2320_v16 }
 0x3df   : > { %v2323_v31 = vpop.f32.mrb[88].mxu0 }
 0x3e0   : > { %v2324_v26 = vadd.f32 %v2323_v31, %v7616_v35  ;;  %v2325_v28 = vpop.f32.mrb[89].mxu0 }
 0x3e1   : > { %v2326_v20 = vadd.f32 %v2325_v28, %v7619_v53  ;;  %v2327_v38 = vpop.f32.mrb[90].mxu0 }
 0x3e2   : > { %6712 = vtanh.f32 %v2324_v26  ;;  %v2328_v1 = vadd.f32 %v2327_v38, %v7622_v25  ;;  %v2329_v42 = vpop.f32.mrb[91].mxu0 }
 0x3e3   : > { %6714 = vtanh.f32 %v2326_v20  ;;  %v2330_v48 = vadd.f32 %v2329_v42, %v7625_v37 }
 0x3e4   : > { %v6705_v22 = vpop.eup %6704  ;;  %6716 = vtanh.f32 %v2328_v1 }
 0x3e5   : > { %v6707_v39 = vpop.eup %6706  ;;  %6718 = vtanh.f32 %v2330_v48 }
 0x3e6   : > { %v6709_v30 = vpop.eup %6708 }
 0x3e7   : > { %v6711_v29 = vpop.eup %6710  ;;  %v2333_v14 = vpop.f32.mrb[92].mxu0  ;;  %v7825_v17 = vpack.c.bf16 %v6709_v30, %v6705_v22 }
 0x3e8   : > { %v2334_v35 = vadd.f32 %v2333_v14, %v7629_v34  ;;  %v2335_v53 = vpop.f32.mrb[93].mxu0  ;;  %v7828_v23 = vpack.c.bf16 %v6711_v29, %v6707_v39 }
 0x3e9   : > { %v2336_v25 = vadd.f32 %v2335_v53, %v7632_v36  ;;  %v2337_v32 = vpop.f32.mrb[94].mxu0 }
 0x3ea   : > { %6720 = vtanh.f32 %v2334_v35  ;;  %v2338_v37 = vadd.f32 %v2337_v32, %v7635_v33  ;;  %v2339_v19 = vpop.f32.mrb[95].mxu0  ;;  %2440 = vmatprep.subr.bf16.mxu1 %v7828_v23  ;;  %2899 = vmatprep.mubr.bf16.mxu0 %v7828_v23 }
 0x3eb   : > { %6722 = vtanh.f32 %v2336_v25  ;;  %v2340_v24 = vadd.f32 %v2339_v19, %v7638_v40  ;;  %2441 = vmatpush1.bf16.msra.mxu1 %v7825_v17  ;;  %2900 = vmatmul.mubr.bf16.vlgmr.msra.gmra.mrb[116].mxu0 %v7825_v17 }
 0x3ec   : > { %v6713_v34 = vpop.eup %6712  ;;  %6724 = vtanh.f32 %v2338_v37 }
 0x3ed   : > { %v6715_v18 = vpop.eup %6714  ;;  %6726 = vtanh.f32 %v2340_v24 }
 0x3ee   : > { %v6717_v36 = vpop.eup %6716 }
 0x3ef   : > { %v6719_v16 = vpop.eup %6718  ;;  %v2343_v31 = vpop.f32.mrb[96].mxu0  ;;  %v7837_v33 = vpack.c.bf16 %v6717_v36, %v6713_v34 }
 0x3f0   : > { %v2344_v26 = vadd.f32 %v2343_v31, %v7643_v45  ;;  %v2345_v28 = vpop.f32.mrb[97].mxu0  ;;  %v7840_v20 = vpack.c.bf16 %v6719_v16, %v6715_v18 }
 0x3f1   : > { %v2346_v40 = vadd.f32 %v2345_v28, %v7646_v46  ;;  %v2347_v38 = vpop.f32.mrb[98].mxu0 }
 0x3f2   : > { %6728 = vtanh.f32 %v2344_v26  ;;  %v2348_v1 = vadd.f32 %v2347_v38, %v7649_v47  ;;  %v2349_v42 = vpop.f32.mrb[99].mxu0  ;;  %2442 = vmatprep.subr.bf16.mxu1 %v7840_v20  ;;  %2909 = vmatprep.mubr.bf16.mxu0 %v7840_v20 }
 0x3f3   : > { %6730 = vtanh.f32 %v2346_v40  ;;  %v2350_v48 = vadd.f32 %v2349_v42, %v7652_v49  ;;  %2443 = vmatpush1.bf16.msra.mxu1 %v7837_v33  ;;  %2910 = vmatmul.mubr.bf16.gmra.mrb[120].mxu0 %v7837_v33 }
 0x3f4   : > { %v6721_v45 = vpop.eup %6720  ;;  %6732 = vtanh.f32 %v2348_v1 }
 0x3f5   : > { %v6723_v22 = vpop.eup %6722  ;;  %6734 = vtanh.f32 %v2350_v48 }
 0x3f6   : > { %v6725_v46 = vpop.eup %6724 }
 0x3f7   : > { %v6727_v39 = vpop.eup %6726  ;;  %v2353_v30 = vpop.f32.mrb[100].mxu0  ;;  %v7849_v47 = vpack.c.bf16 %v6725_v46, %v6721_v45 }
 0x3f8   : > { %v2354_v29 = vadd.f32 %v2353_v30, %v7657_v55  ;;  %v2355_v14 = vpop.f32.mrb[101].mxu0  ;;  %v7852_v35 = vpack.c.bf16 %v6727_v39, %v6723_v22 }
 0x3f9   : > { %v2356_v49 = vadd.f32 %v2355_v14, %v7660_v56  ;;  %v2357_v53 = vpop.f32.mrb[102].mxu0 }
 0x3fa   : > { %6736 = vtanh.f32 %v2354_v29  ;;  %v2358_v25 = vadd.f32 %v2357_v53, %v7663_v58  ;;  %v2359_v32 = vpop.f32.mrb[103].mxu0  ;;  %2444 = vmatprep.subr.bf16.mxu1 %v7852_v35  ;;  %2919 = vmatprep.mubr.bf16.mxu0 %v7852_v35 }
 0x3fb   : > { %6738 = vtanh.f32 %v2356_v49  ;;  %v2360_v37 = vadd.f32 %v2359_v32, %v7666_v59  ;;  %2445 = vmatpush1.bf16.msra.mxu1 %v7849_v47  ;;  %2920 = vmatmul.mubr.bf16.gmra.mrb[124].mxu0 %v7849_v47 }
 0x3fc   : > { %v6729_v55 = vpop.eup %6728  ;;  %6740 = vtanh.f32 %v2358_v25 }
 0x3fd   : > { %v6731_v19 = vpop.eup %6730  ;;  %6742 = vtanh.f32 %v2360_v37 }
 0x3fe   : > { %v6733_v56 = vpop.eup %6732 }
 0x3ff   : > { %v6735_v24 = vpop.eup %6734  ;;  %v2363_v34 = vpop.f32.mrb[104].mxu0  ;;  %v7861_v58 = vpack.c.bf16 %v6733_v56, %v6729_v55 }
 0x400   : > { %v2364_v18 = vadd.f32 %v2363_v34, %v7671_v63  ;;  %v2365_v36 = vpop.f32.mrb[105].mxu0  ;;  %v7864_v16 = vpack.c.bf16 %v6735_v24, %v6731_v19 }
 0x401   : > { %v2366_v59 = vadd.f32 %v2365_v36, %v7674_v3  ;;  %v2367_v31 = vpop.f32.mrb[106].mxu0 }
 0x402   : > { %6744 = vtanh.f32 %v2364_v18  ;;  %v2368_v26 = vadd.f32 %v2367_v31, %v7677_v5  ;;  %v2369_v28 = vpop.f32.mrb[107].mxu0  ;;  %2446 = vmatprep.subr.bf16.mxu1 %v7864_v16  ;;  %2929 = vmatprep.mubr.bf16.mxu0 %v7864_v16 }
 0x403   : > { %6746 = vtanh.f32 %v2366_v59  ;;  %v2370_v40 = vadd.f32 %v2369_v28, %v7680_v6  ;;  %2447 = vmatpush1.bf16.msra.mxu1 %v7861_v58  ;;  %2930 = vmatmul.mubr.bf16.gmra.mrb[128].mxu0 %v7861_v58 }
 0x404   : > { %v6737_v63 = vpop.eup %6736  ;;  %6748 = vtanh.f32 %v2368_v26 }
 0x405   : > { %v6739_v38 = vpop.eup %6738  ;;  %6750 = vtanh.f32 %v2370_v40 }
 0x406   : > { %v6741_v3 = vpop.eup %6740 }
 0x407   : > { %v6743_v1 = vpop.eup %6742  ;;  %v2373_v42 = vpop.f32.mrb[108].mxu0  ;;  %v7873_v5 = vpack.c.bf16 %v6741_v3, %v6737_v63  ;;  %v6486_v63 = vld [vmem:[%s8890_s8 + $0xc] ss:$16 sps:$4 sm:$0xff]  }
 0x408   : > { %v2374_v48 = vadd.f32 %v2373_v42, %v7685_v9  ;;  %v2375_v45 = vpop.f32.mrb[109].mxu0  ;;  %v7876_v22 = vpack.c.bf16 %v6743_v1, %v6739_v38  ;;  %v6484_v38 = vld [vmem:[%s8890_s8 + $0x8] ss:$16 sps:$4 sm:$0xff]   ;;  %v6489_v3 = vld [vmem:[%s8890_s8 + $0x2c] ss:$16 sps:$4 sm:$0xff]   ;;  %v6872_v1 = vld [vmem:[%s8885_s3] sm:$0xff]  }
 0x409   : > { %v2376_v6 = vadd.f32 %v2375_v45, %v7688_v11  ;;  %v2377_v46 = vpop.f32.mrb[110].mxu0  ;;  %v6487_v42 = vld [vmem:[%s8890_s8 + $0x28] ss:$16 sps:$4 sm:$0xff]  }
 0x40a   : > { %6752 = vtanh.f32 %v2374_v48  ;;  %v2378_v39 = vadd.f32 %v2377_v46, %v7691_v12  ;;  %v2379_v30 = vpop.f32.mrb[111].mxu0  ;;  %2448 = vmatprep.subr.bf16.mxu1 %v7876_v22  ;;  %2939 = vmatprep.mubr.bf16.mxu0 %v7876_v22  ;;  %v6492_v48 = vld [vmem:[%s8890_s8 + $0x4c] ss:$16 sps:$4 sm:$0xff]   ;;  %v6490_v45 = vld [vmem:[%s8890_s8 + $0x48] ss:$16 sps:$4 sm:$0xff]  }
 0x40b   : > { %6754 = vtanh.f32 %v2376_v6  ;;  %v2380_v29 = vadd.f32 %v2379_v30, %v7694_v13  ;;  %2449 = vmatpush1.bf16.msra.mxu1 %v7873_v5  ;;  %2940 = vmatmul.mubr.bf16.gmra.mrb[132].mxu0 %v7873_v5  ;;  %v6495_v6 = vld [vmem:[%s8890_s8 + $0x6c] ss:$16 sps:$4 sm:$0xff]  }
 0x40c   : > { %v6745_v9 = vpop.eup %6744  ;;  %6756 = vtanh.f32 %v2378_v39  ;;  %v6498_v46 = vld [vmem:[%s8890_s8 + $0x8c] ss:$16 sps:$4 sm:$0xff]   ;;  %v6496_v39 = vld [vmem:[%s8890_s8 + $0x88] ss:$16 sps:$4 sm:$0xff]  }
 0x40d   : > { %v6747_v14 = vpop.eup %6746  ;;  %6758 = vtanh.f32 %v2380_v29  ;;  %v6501_v30 = vld [vmem:[%s8890_s8 + $0xac] ss:$16 sps:$4 sm:$0xff]   ;;  %v6499_v29 = vld [vmem:[%s8890_s8 + $0xa8] ss:$16 sps:$4 sm:$0xff]  }
 0x40e   : > { %v6749_v11 = vpop.eup %6748 }
 0x40f   : > { %v6751_v49 = vpop.eup %6750  ;;  %v2383_v53 = vpop.f32.mrb[112].mxu0  ;;  %v7885_v12 = vpack.c.bf16 %v6749_v11, %v6745_v9  ;;  %v6504_v9 = vld [vmem:[%s8890_s8 + $0xcc] ss:$16 sps:$4 sm:$0xff]  }
 0x410   : > { %v2384_v25 = vadd.f32 %v2383_v53, %v7699_v41  ;;  %v2385_v32 = vpop.f32.mrb[113].mxu0  ;;  %v7888_v37 = vpack.c.bf16 %v6751_v49, %v6747_v14  ;;  %v6502_v14 = vld [vmem:[%s8890_s8 + $0xc8] ss:$16 sps:$4 sm:$0xff]   ;;  %v6507_v11 = vld [vmem:[%s8890_s8 + $0xec] ss:$16 sps:$4 sm:$0xff]  }
 0x411   : > { %v2386_v13 = vadd.f32 %v2385_v32, %v7702_v44  ;;  %v2387_v55 = vpop.f32.mrb[114].mxu0  ;;  %v6505_v49 = vld [vmem:[%s8890_s8 + $0xe8] ss:$16 sps:$4 sm:$0xff]   ;;  %v6510_v53 = vld [vmem:[%s8890_s8 + $0x10c] ss:$16 sps:$4 sm:$0xff]  }
 0x412   : > { %6760 = vtanh.f32 %v2384_v25  ;;  %v2388_v19 = vadd.f32 %v2387_v55, %v7705_v2  ;;  %v2389_v56 = vpop.f32.mrb[115].mxu0  ;;  %2450 = vmatprep.subr.bf16.mxu1 %v7888_v37  ;;  %2949 = vmatprep.mubr.bf16.mxu0 %v7888_v37  ;;  %v6508_v25 = vld [vmem:[%s8890_s8 + $0x108] ss:$16 sps:$4 sm:$0xff]   ;;  %v6513_v32 = vld [vmem:[%s8890_s8 + $0x12c] ss:$16 sps:$4 sm:$0xff]  }
 0x413   : > { %6762 = vtanh.f32 %v2386_v13  ;;  %v2390_v24 = vadd.f32 %v2389_v56, %v7708_v21  ;;  %2451 = vmatpush1.bf16.msra.mxu1 %v7885_v12  ;;  %2950 = vmatmul.mubr.bf16.gmra.mrb[136].mxu0 %v7885_v12  ;;  %v6511_v13 = vld [vmem:[%s8890_s8 + $0x128] ss:$16 sps:$4 sm:$0xff]   ;;  %v6516_v55 = vld [vmem:[%s8890_s8 + $0x14c] ss:$16 sps:$4 sm:$0xff]  }
 0x414   : > { %v6753_v41 = vpop.eup %6752  ;;  %6764 = vtanh.f32 %v2388_v19  ;;  %v6514_v19 = vld [vmem:[%s8890_s8 + $0x148] ss:$16 sps:$4 sm:$0xff]   ;;  %v6519_v56 = vld [vmem:[%s8890_s8 + $0x16c] ss:$16 sps:$4 sm:$0xff]  }
 0x415   : > { %v6755_v34 = vpop.eup %6754  ;;  %6766 = vtanh.f32 %v2390_v24  ;;  %v6517_v24 = vld [vmem:[%s8890_s8 + $0x168] ss:$16 sps:$4 sm:$0xff]  }
 0x416   : > { %v6757_v44 = vpop.eup %6756 }
 0x417   : > { %v6759_v18 = vpop.eup %6758  ;;  %v7897_v36 = vpack.c.bf16 %v6757_v44, %v6753_v41  ;;  %v6522_v41 = vld [vmem:[%s8890_s8 + $0x18c] ss:$16 sps:$4 sm:$0xff]  }
 0x418   : > { %v7899_v2 = vpack.c.bf16 %v6759_v18, %v6755_v34  ;;  %v6520_v34 = vld [vmem:[%s8890_s8 + $0x188] ss:$16 sps:$4 sm:$0xff]   ;;  %v6525_v44 = vld [vmem:[%s8890_s8 + $0x1ac] ss:$16 sps:$4 sm:$0xff]  }
 0x419   : > { %v6523_v18 = vld [vmem:[%s8890_s8 + $0x1a8] ss:$16 sps:$4 sm:$0xff]  }
 0x41a   : > { %2452 = vmatprep.subr.bf16.mxu1 %v7899_v2  ;;  %2959 = vmatprep.mubr.bf16.mxu0 %v7899_v2 }
 0x41b   : > { %2453 = vmatpush1.bf16.msra.mxu1 %v7897_v36  ;;  %2960 = vmatmul.mubr.bf16.gmra.mrb[140].mxu0 %v7897_v36 }
 0x41c   : > { %v6761_v21 = vpop.eup %6760 }
 0x41d   : > { %v6763_v59 = vpop.eup %6762 }
 0x41e   : > { %v6765_v31 = vpop.eup %6764 }
 0x41f   : > { %v6767_v26 = vpop.eup %6766  ;;  %v7905_v28 = vpack.c.bf16 %v6765_v31, %v6761_v21  ;;  %v6528_v21 = vld [vmem:[%s8890_s8 + $0x1cc] ss:$16 sps:$4 sm:$0xff]  }
 0x420   : > { %v7907_v40 = vpack.c.bf16 %v6767_v26, %v6763_v59  ;;  %v6526_v59 = vld [vmem:[%s8890_s8 + $0x1c8] ss:$16 sps:$4 sm:$0xff]   ;;  %v6531_v31 = vld [vmem:[%s8890_s8 + $0x1ec] ss:$16 sps:$4 sm:$0xff]  }
 0x421   : > { %v6529_v26 = vld [vmem:[%s8890_s8 + $0x1e8] ss:$16 sps:$4 sm:$0xff]  }
 0x422   : > { %2454 = vmatprep.subr.bf16.mxu1 %v7907_v40  ;;  %2969 = vmatprep.mubr.bf16.mxu0 %v7907_v40 }
 0x423   : > { %2455 = vmatpush1.bf16.msra.mxu1 %v7905_v28  ;;  %2970 = vmatmul.mubr.bf16.gmra.mrb[144].mxu0 %v7905_v28 }
 0x424   : > { %2980 = vmatprep.subr.bf16.mxu1 %v6486_v63  ;;  %3141 = vmatprep.mubr.bf16.mxu0 %v8931_v50 }
 0x426   : > { %2473 = vmatmul.mubr.bf16.vlgmr.msra.gmra.mrb[112].mxu1 %v6872_v1 }
 0x427   : > { %2981 = vmatpush1.bf16.msra.mxu1 %v6484_v38  ;;  %3012 = vmatprep.mubr.bf16.mxu1 %v7828_v23  ;;  %v6493_v23 = vld [vmem:[%s8890_s8 + $0x68] ss:$16 sps:$4 sm:$0xff]  }
 0x428   : > { %2982 = vmatprep.subr.bf16.mxu1 %v6489_v3 }
 0x42b   : > { %2983 = vmatpush1.bf16.msra.mxu1 %v6487_v42 }
 0x42c   : > { %2984 = vmatprep.subr.bf16.mxu1 %v6492_v48 }
 0x42f   : > { %2985 = vmatpush1.bf16.msra.mxu1 %v6490_v45 }
 0x430   : > { %2986 = vmatprep.subr.bf16.mxu1 %v6495_v6 }
 0x433   : > { %2987 = vmatpush1.bf16.msra.mxu1 %v6493_v23 }
 0x434   : > { %2988 = vmatprep.subr.bf16.mxu1 %v6498_v46 }
 0x437   : > { %2989 = vmatpush1.bf16.msra.mxu1 %v6496_v39 }
 0x438   : > { %2990 = vmatprep.subr.bf16.mxu1 %v6501_v30 }
 0x43b   : > { %2991 = vmatpush1.bf16.msra.mxu1 %v6499_v29 }
 0x43c   : > { %2992 = vmatprep.subr.bf16.mxu1 %v6504_v9 }
 0x43f   : > { %2993 = vmatpush1.bf16.msra.mxu1 %v6502_v14 }
 0x440   : > { %2994 = vmatprep.subr.bf16.mxu1 %v6507_v11 }
 0x443   : > { %2995 = vmatpush1.bf16.msra.mxu1 %v6505_v49 }
 0x444   : > { %2996 = vmatprep.subr.bf16.mxu1 %v6510_v53 }
 0x447   : > { %2997 = vmatpush1.bf16.msra.mxu1 %v6508_v25 }
 0x448   : > { %2998 = vmatprep.subr.bf16.mxu1 %v6513_v32 }
 0x44b   : > { %2999 = vmatpush1.bf16.msra.mxu1 %v6511_v13 }
 0x44c   : > { %3000 = vmatprep.subr.bf16.mxu1 %v6516_v55 }
 0x44f   : > { %3001 = vmatpush1.bf16.msra.mxu1 %v6514_v19 }
 0x450   : > { %3002 = vmatprep.subr.bf16.mxu1 %v6519_v56 }
 0x453   : > { %3003 = vmatpush1.bf16.msra.mxu1 %v6517_v24 }
 0x454   : > { %3004 = vmatprep.subr.bf16.mxu1 %v6522_v41 }
 0x457   : > { %3005 = vmatpush1.bf16.msra.mxu1 %v6520_v34 }
 0x458   : > { %3006 = vmatprep.subr.bf16.mxu1 %v6525_v44  ;;  %v6532_v44 = vld [vmem:[%s8891_s9] ss:$8 sps:$4 sm:$0xff]  }
 0x45b   : > { %3007 = vmatpush1.bf16.msra.mxu1 %v6523_v18  ;;  %v6534_v18 = vld [vmem:[%s8891_s9 + $0x4] ss:$8 sps:$4 sm:$0xff]  }
 0x45c   : > { %3008 = vmatprep.subr.bf16.mxu1 %v6528_v21 }
 0x45f   : > { %3009 = vmatpush1.bf16.msra.mxu1 %v6526_v59  ;;  %v6537_v59 = vld [vmem:[%s8891_s9 + $0x14] ss:$8 sps:$4 sm:$0xff]  }
 0x460   : > { %3010 = vmatprep.subr.bf16.mxu1 %v6531_v31 }
 0x463   : > { %3011 = vmatpush1.bf16.msra.mxu1 %v6529_v26 }
 0x464   : > { %3462 = vmatprep.subr.bf16.mxu1 %v6534_v18 }
 0x466   : > { %3013 = vmatmul.mubr.bf16.vlgmr.msra.gmra.mrb[116].mxu1 %v7825_v17 }
 0x467   : > { %3022 = vmatprep.mubr.bf16.mxu1 %v7840_v20  ;;  %3463 = vmatpush1.bf16.msra.mxu1 %v6532_v44 }
 0x468   : > { %3464 = vmatprep.subr.bf16.mxu1 %v6537_v59 }
 0x46e   : > { %3023 = vmatmul.mubr.bf16.gmra.mrb[120].mxu1 %v7837_v33 }
 0x46f   : > { %3032 = vmatprep.mubr.bf16.mxu1 %v7852_v35 }
 0x476   : > { %3033 = vmatmul.mubr.bf16.gmra.mrb[124].mxu1 %v7849_v47 }
 0x477   : > { %3042 = vmatprep.mubr.bf16.mxu1 %v7864_v16 }
 0x47e   : > { %3043 = vmatmul.mubr.bf16.gmra.mrb[128].mxu1 %v7861_v58 }
 0x47f   : > { %3052 = vmatprep.mubr.bf16.mxu1 %v7876_v22 }
 0x486   : > { %3053 = vmatmul.mubr.bf16.gmra.mrb[132].mxu1 %v7873_v5 }
 0x487   : > { %3062 = vmatprep.mubr.bf16.mxu1 %v7888_v37 }
 0x48e   : > { %3063 = vmatmul.mubr.bf16.gmra.mrb[136].mxu1 %v7885_v12 }
 0x48f   : > { %3072 = vmatprep.mubr.bf16.mxu1 %v7899_v2 }
 0x496   : > { %3073 = vmatmul.mubr.bf16.gmra.mrb[140].mxu1 %v7897_v36 }
 0x497   : > { %3082 = vmatprep.mubr.bf16.mxu1 %v7907_v40 }
 0x49e   : > { %3083 = vmatmul.mubr.bf16.gmra.mrb[144].mxu1 %v7905_v28 }
 0x4be   : > { %v2901_v17 = vpop.f32.mrb[116].mxu0 }
 0x4bf   : > { %v2903_v33 = vpop.f32.mrb[117].mxu0 }
 0x4c0   : > { %v2905_v20 = vpop.f32.mrb[118].mxu0 }
 0x4c1   : > { %v3093_v47 = vpack.c.bf16 %v2905_v20, %v2901_v17  ;;  %v2907_v35 = vpop.f32.mrb[119].mxu0  ;;  %v6535_v17 = vld [vmem:[%s8891_s9 + $0x10] ss:$8 sps:$4 sm:$0xff]  }
 0x4c2   : > { %v3094_v58 = vpack.c.bf16 %v2907_v35, %v2903_v33  ;;  %v6540_v35 = vld [vmem:[%s8891_s9 + $0x24] ss:$8 sps:$4 sm:$0xff]   ;;  %3465 = vmatpush1.bf16.msra.mxu1 %v6535_v17 }
 0x4c3   : > { %3466 = vmatprep.subr.bf16.mxu1 %v6540_v35 }
 0x4c4   : > { %3109 = vmatprep.subr.bf16.mxu0 %v3094_v58 }
 0x4c5   : > { %3110 = vmatpush1.bf16.msra.mxu0 %v3093_v47 }
 0x4c6   : > { %v2911_v16 = vpop.f32.mrb[120].mxu0 }
 0x4c7   : > { %v2913_v5 = vpop.f32.mrb[121].mxu0 }
 0x4c8   : > { %v2915_v22 = vpop.f32.mrb[122].mxu0 }
 0x4c9   : > { %v3095_v12 = vpack.c.bf16 %v2915_v22, %v2911_v16  ;;  %v2917_v37 = vpop.f32.mrb[123].mxu0 }
 0x4ca   : > { %v3096_v2 = vpack.c.bf16 %v2917_v37, %v2913_v5  ;;  %v6543_v37 = vld [vmem:[%s8891_s9 + $0x34] ss:$8 sps:$4 sm:$0xff]  }
 0x4cc   : > { %3111 = vmatprep.subr.bf16.mxu0 %v3096_v2  ;;  %v8059_v2 = vld [vmem:[%s7507_s20] sm:$0xff]  }
 0x4cd   : > { %3112 = vmatpush1.bf16.msra.mxu0 %v3095_v12  ;;  %v6538_v12 = vld [vmem:[%s8891_s9 + $0x20] ss:$8 sps:$4 sm:$0xff]  }
 0x4ce   : > { %v2921_v36 = vpop.f32.mrb[124].mxu0  ;;  %3467 = vmatpush1.bf16.msra.mxu1 %v6538_v12 }
 0x4cf   : > { %v2923_v40 = vpop.f32.mrb[125].mxu0  ;;  %3468 = vmatprep.subr.bf16.mxu1 %v6543_v37 }
 0x4d0   : > { %v2925_v63 = vpop.f32.mrb[126].mxu0 }
 0x4d1   : > { %v3097_v28 = vpack.c.bf16 %v2925_v63, %v2921_v36  ;;  %v2927_v38 = vpop.f32.mrb[127].mxu0  ;;  %v6541_v36 = vld [vmem:[%s8891_s9 + $0x30] ss:$8 sps:$4 sm:$0xff]   ;;  %v6544_v63 = vld [vmem:[%s8891_s9 + $0x40] ss:$8 sps:$4 sm:$0xff]  }
 0x4d2   : > { %v3098_v3 = vpack.c.bf16 %v2927_v38, %v2923_v40  ;;  %v6546_v40 = vld [vmem:[%s8891_s9 + $0x44] ss:$8 sps:$4 sm:$0xff]   ;;  %3469 = vmatpush1.bf16.msra.mxu1 %v6541_v36 }
 0x4d3   : > { %3470 = vmatprep.subr.bf16.mxu1 %v6546_v40  ;;  %v6874_v38 = vld [vmem:[%s7507_s20 + $0x8] sm:$0xff]  }
 0x4d4   : > { %3113 = vmatprep.subr.bf16.mxu0 %v3098_v3  ;;  %v6547_v3 = vld [vmem:[%s8891_s9 + $0x50] ss:$8 sps:$4 sm:$0xff]  }
 0x4d5   : > { %3114 = vmatpush1.bf16.msra.mxu0 %v3097_v28  ;;  %v6549_v28 = vld [vmem:[%s8891_s9 + $0x54] ss:$8 sps:$4 sm:$0xff]  }
 0x4d6   : > { %v2931_v1 = vpop.f32.mrb[128].mxu0  ;;  %3471 = vmatpush1.bf16.msra.mxu1 %v6544_v63 }
 0x4d7   : > { %v2933_v42 = vpop.f32.mrb[129].mxu0  ;;  %3472 = vmatprep.subr.bf16.mxu1 %v6549_v28 }
 0x4d8   : > { %v2935_v48 = vpop.f32.mrb[130].mxu0 }
 0x4d9   : > { %v3099_v45 = vpack.c.bf16 %v2935_v48, %v2931_v1  ;;  %v2937_v6 = vpop.f32.mrb[131].mxu0  ;;  %v6552_v1 = vld [vmem:[%s8891_s9 + $0x64] ss:$8 sps:$4 sm:$0xff]   ;;  %v6555_v48 = vld [vmem:[%s8891_s9 + $0x74] ss:$8 sps:$4 sm:$0xff]  }
 0x4da   : > { %v3100_v23 = vpack.c.bf16 %v2937_v6, %v2933_v42  ;;  %3473 = vmatpush1.bf16.msra.mxu1 %v6547_v3  ;;  %v6550_v42 = vld [vmem:[%s8891_s9 + $0x60] ss:$8 sps:$4 sm:$0xff]   ;;  %v6553_v6 = vld [vmem:[%s8891_s9 + $0x70] ss:$8 sps:$4 sm:$0xff]  }
 0x4db   : > { %3474 = vmatprep.subr.bf16.mxu1 %v6552_v1 }
 0x4dc   : > { %3115 = vmatprep.subr.bf16.mxu0 %v3100_v23  ;;  %v6558_v23 = vld [vmem:[%s8891_s9 + $0x84] ss:$8 sps:$4 sm:$0xff]  }
 0x4dd   : > { %3116 = vmatpush1.bf16.msra.mxu0 %v3099_v45  ;;  %v6875_v45 = vld [vmem:[%s7507_s20 + $0x10] sm:$0xff]  }
 0x4de   : > { %v2941_v46 = vpop.f32.mrb[132].mxu0  ;;  %3475 = vmatpush1.bf16.msra.mxu1 %v6550_v42  ;;  %v8932_v42 = vld [vmem:[#allocation2_spill] sm:$0xff] }
 0x4df   : > { %v2943_v39 = vpop.f32.mrb[133].mxu0  ;;  %3476 = vmatprep.subr.bf16.mxu1 %v6555_v48  ;;  %v8933_v48 = vld [vmem:[#allocation3_spill] sm:$0xff] }
 0x4e0   : > { %v2945_v30 = vpop.f32.mrb[134].mxu0 }
 0x4e1   : > { %v3101_v29 = vpack.c.bf16 %v2945_v30, %v2941_v46  ;;  %v2947_v9 = vpop.f32.mrb[135].mxu0  ;;  %v6556_v46 = vld [vmem:[%s8891_s9 + $0x80] ss:$8 sps:$4 sm:$0xff]   ;;  %v6876_v30 = vld [vmem:[%s7507_s20 + $0x18] sm:$0xff]  }
 0x4e2   : > { %v3102_v14 = vpack.c.bf16 %v2947_v9, %v2943_v39  ;;  %3477 = vmatpush1.bf16.msra.mxu1 %v6553_v6  ;;  %v6561_v39 = vld [vmem:[%s8891_s9 + $0x94] ss:$8 sps:$4 sm:$0xff]   ;;  %v6564_v9 = vld [vmem:[%s8891_s9 + $0xa4] ss:$8 sps:$4 sm:$0xff]  }
 0x4e3   : > { %3478 = vmatprep.subr.bf16.mxu1 %v6558_v23  ;;  %v8934_v6 = vld [vmem:[#allocation4_spill] sm:$0xff] }
 0x4e4   : > { %3117 = vmatprep.subr.bf16.mxu0 %v3102_v14  ;;  %v6562_v14 = vld [vmem:[%s8891_s9 + $0xa0] ss:$8 sps:$4 sm:$0xff]  }
 0x4e5   : > { %3118 = vmatpush1.bf16.msra.mxu0 %v3101_v29  ;;  %v6559_v29 = vld [vmem:[%s8891_s9 + $0x90] ss:$8 sps:$4 sm:$0xff]  }
 0x4e6   : > { %v2951_v11 = vpop.f32.mrb[136].mxu0  ;;  %3479 = vmatpush1.bf16.msra.mxu1 %v6556_v46 }
 0x4e7   : > { %v2953_v49 = vpop.f32.mrb[137].mxu0  ;;  %3480 = vmatprep.subr.bf16.mxu1 %v6561_v39  ;;  %v8935_v39 = vld [vmem:[#allocation5_spill] sm:$0xff] }
 0x4e8   : > { %v2955_v53 = vpop.f32.mrb[138].mxu0 }
 0x4e9   : > { %v3103_v25 = vpack.c.bf16 %v2955_v53, %v2951_v11  ;;  %v2957_v32 = vpop.f32.mrb[139].mxu0  ;;  %v6567_v11 = vld [vmem:[%s8891_s9 + $0xb4] ss:$8 sps:$4 sm:$0xff]   ;;  %v6565_v53 = vld [vmem:[%s8891_s9 + $0xb0] ss:$8 sps:$4 sm:$0xff]  }
 0x4ea   : > { %v3104_v13 = vpack.c.bf16 %v2957_v32, %v2953_v49  ;;  %3481 = vmatpush1.bf16.msra.mxu1 %v6559_v29  ;;  %v8118_v49 = vld [vmem:[%s7507_s20 + $0x20] sm:$0xff]  }
 0x4eb   : > { %3482 = vmatprep.subr.bf16.mxu1 %v6564_v9  ;;  %v6568_v32 = vld [vmem:[%s8891_s9 + $0xc0] ss:$8 sps:$4 sm:$0xff]  }
 0x4ec   : > { %3119 = vmatprep.subr.bf16.mxu0 %v3104_v13  ;;  %v6573_v13 = vld [vmem:[%s8891_s9 + $0xd4] ss:$8 sps:$4 sm:$0xff]   ;;  %v8936_v9 = vld [vmem:[#allocation6_spill] sm:$0xff] }
 0x4ed   : > { %3120 = vmatpush1.bf16.msra.mxu0 %v3103_v25  ;;  %v6570_v25 = vld [vmem:[%s8891_s9 + $0xc4] ss:$8 sps:$4 sm:$0xff]  }
 0x4ee   : > { %v2961_v55 = vpop.f32.mrb[140].mxu0  ;;  %3483 = vmatpush1.bf16.msra.mxu1 %v6562_v14 }
 0x4ef   : > { %v2963_v19 = vpop.f32.mrb[141].mxu0  ;;  %3484 = vmatprep.subr.bf16.mxu1 %v6567_v11 }
 0x4f0   : > { %v2965_v56 = vpop.f32.mrb[142].mxu0 }
 0x4f1   : > { %v3105_v24 = vpack.c.bf16 %v2965_v56, %v2961_v55  ;;  %v2967_v41 = vpop.f32.mrb[143].mxu0  ;;  %v8135_v55 = vld [vmem:[%s7507_s20 + $0x28] sm:$0xff]  }
 0x4f2   : > { %v3106_v34 = vpack.c.bf16 %v2967_v41, %v2963_v19  ;;  %3485 = vmatpush1.bf16.msra.mxu1 %v6565_v53  ;;  %v6571_v19 = vld [vmem:[%s8891_s9 + $0xd0] ss:$8 sps:$4 sm:$0xff]   ;;  %v6576_v56 = vld [vmem:[%s8891_s9 + $0xe4] ss:$8 sps:$4 sm:$0xff]  }
 0x4f3   : > { %3486 = vmatprep.subr.bf16.mxu1 %v6570_v25  ;;  %v8149_v41 = vld [vmem:[%s7507_s20 + $0x30] sm:$0xff]   ;;  %v8937_v53 = vld [vmem:[#allocation7_spill] sm:$0xff] }
 0x4f4   : > { %3121 = vmatprep.subr.bf16.mxu0 %v3106_v34  ;;  %v8154_v34 = vld [vmem:[%s7507_s20 + $0x38] sm:$0xff]  }
 0x4f5   : > { %3122 = vmatpush1.bf16.msra.mxu0 %v3105_v24  ;;  %v6574_v24 = vld [vmem:[%s8891_s9 + $0xe0] ss:$8 sps:$4 sm:$0xff]  }
 0x4f6   : > { %v2971_v21 = vpop.f32.mrb[144].mxu0  ;;  %3487 = vmatpush1.bf16.msra.mxu1 %v6568_v32 }
 0x4f7   : > { %v2973_v31 = vpop.f32.mrb[145].mxu0  ;;  %3488 = vmatprep.subr.bf16.mxu1 %v6573_v13  ;;  %v8938_v13 = vld [vmem:[#allocation8_spill] sm:$0xff] }
 0x4f8   : > { %v2975_v26 = vpop.f32.mrb[146].mxu0 }
 0x4f9   : > { %v3107_v33 = vpack.c.bf16 %v2975_v26, %v2971_v21  ;;  %v2977_v20 = vpop.f32.mrb[147].mxu0  ;;  %v8041_v47 = vpop.f32.mrb[112].mxu1 }
 0x4fa   : > { %v3108_v58 = vpack.c.bf16 %v2977_v20, %v2973_v31  ;;  %v8046_v16 = vpop.f32.mrb[113].mxu1  ;;  %3489 = vmatpush1.bf16.msra.mxu1 %v6571_v19 }
 0x4fb   : > { %v8048_v5 = vpop.f32.mrb[114].mxu1  ;;  %3490 = vmatprep.subr.bf16.mxu1 %v6576_v56 }
 0x4fc   : > { %3123 = vmatprep.subr.bf16.mxu0 %v3108_v58  ;;  %v8050_v22 = vpop.f32.mrb[115].mxu1 }
 0x4fd   : > { %3124 = vmatpush1.bf16.msra.mxu0 %v3107_v33 }
 0x4fe   : > { %3491 = vmatpush1.bf16.msra.mxu1 %v6574_v24  ;;  %v8939_v24 = vld [vmem:[#allocation9_spill] sm:$0xff] }
 0x500   : > { %3142 = vmatmul.mubr.bf16.vlgmr.msra.gmra.mrb[148].mxu0 %v8059_v2 }
 0x501   : > { %3151 = vmatprep.mubr.bf16.mxu0 %v8931_v50 }
 0x508   : > { %3152 = vmatmul.mubr.bf16.gmra.mrb[152].mxu0 %v6874_v38 }
 0x509   : > { %3161 = vmatprep.mubr.bf16.mxu0 %v8931_v50 }
 0x510   : > { %3162 = vmatmul.mubr.bf16.gmra.mrb[156].mxu0 %v6875_v45 }
 0x511   : > { %3171 = vmatprep.mubr.bf16.mxu0 %v8931_v50 }
 0x518   : > { %3172 = vmatmul.mubr.bf16.gmra.mrb[160].mxu0 %v6876_v30 }
 0x519   : > { %3181 = vmatprep.mubr.bf16.mxu0 %v8931_v50 }
 0x520   : > { %3182 = vmatmul.mubr.bf16.gmra.mrb[164].mxu0 %v8118_v49 }
 0x521   : > { %3191 = vmatprep.mubr.bf16.mxu0 %v8931_v50 }
 0x528   : > { %3192 = vmatmul.mubr.bf16.gmra.mrb[168].mxu0 %v8135_v55 }
 0x529   : > { %3201 = vmatprep.mubr.bf16.mxu0 %v8931_v50 }
 0x530   : > { %3202 = vmatmul.mubr.bf16.gmra.mrb[172].mxu0 %v8149_v41 }
 0x531   : > { %3211 = vmatprep.mubr.bf16.mxu0 %v8931_v50 }
 0x538   : > { %3212 = vmatmul.mubr.bf16.gmra.mrb[176].mxu0 %v8154_v34 }
 0x539   : > { %v3014_v44 = vpop.f32.mrb[116].mxu1  ;;  %3655 = vmatprep.mubr.bf16.mxu0 %v8931_v50 }
 0x53a   : > { %v8159_v18 = vmul.f32 %v3014_v44, %v7432_v51  ;;  %v3016_v21 = vpop.f32.mrb[117].mxu1 }
 0x53b   : > { %v8162_v59 = vmul.f32 %v3016_v21, %v7437_v43  ;;  %v3018_v31 = vpop.f32.mrb[118].mxu1 }
 0x53c   : > { %v8165_v26 = vmul.f32 %v3018_v31, %v7440_v52  ;;  %v3020_v17 = vpop.f32.mrb[119].mxu1  ;;  %v8940_v31 = vld [vmem:[#allocation10_spill] sm:$0xff] }
 0x53d   : > { %v8168_v33 = vmul.f32 %v3020_v17, %v7442_v57 }
 0x541   : > { %v3024_v20 = vpop.f32.mrb[120].mxu1 }
 0x542   : > { %v8171_v35 = vmul.f32 %v3024_v20, %v7444_v60  ;;  %v3026_v50 = vpop.f32.mrb[121].mxu1 }
 0x543   : > { %v8174_v51 = vmul.f32 %v3026_v50, %v7446_v61  ;;  %v3028_v58 = vpop.f32.mrb[122].mxu1  ;;  %v8941_v50 = vld [vmem:[#allocation11_spill] sm:$0xff] }
 0x544   : > { %v8177_v43 = vmul.f32 %v3028_v58, %v7448_v62  ;;  %v3030_v12 = vpop.f32.mrb[123].mxu1 }
 0x545   : > { %v8180_v52 = vmul.f32 %v3030_v12, %v7450_v0 }
 0x549   : > { %v3034_v37 = vpop.f32.mrb[124].mxu1 }
 0x54a   : > { %v8183_v57 = vmul.f32 %v3034_v37, %v7452_v4  ;;  %v3036_v36 = vpop.f32.mrb[125].mxu1  ;;  %v8942_v37 = vld [vmem:[#allocation12_spill] sm:$0xff] }
 0x54b   : > { %v8186_v60 = vmul.f32 %v3036_v36, %v7456_v54  ;;  %v3038_v40 = vpop.f32.mrb[126].mxu1 }
 0x54c   : > { %v8189_v61 = vmul.f32 %v3038_v40, %v7458_v7  ;;  %v3040_v63 = vpop.f32.mrb[127].mxu1  ;;  %v6579_v7 = vld [vmem:[%s8891_s9 + $0xf4] ss:$8 sps:$4 sm:$0xff]  }
 0x54d   : > { %v8192_v62 = vmul.f32 %v3040_v63, %v7460_v8  ;;  %3492 = vmatprep.subr.bf16.mxu1 %v6579_v7  ;;  %v8943_v63 = vld [vmem:[#allocation13_spill] sm:$0xff] }
 0x551   : > { %v3044_v28 = vpop.f32.mrb[128].mxu1 }
 0x552   : > { %v8195_v0 = vmul.f32 %v3044_v28, %v7462_v10  ;;  %v3046_v38 = vpop.f32.mrb[129].mxu1  ;;  %v6577_v10 = vld [vmem:[%s8891_s9 + $0xf0] ss:$8 sps:$4 sm:$0xff]  }
 0x553   : > { %v8198_v4 = vmul.f32 %v3046_v38, %v7464_v27  ;;  %v3048_v3 = vpop.f32.mrb[130].mxu1  ;;  %3493 = vmatpush1.bf16.msra.mxu1 %v6577_v10 }
 0x554   : > { %v8201_v54 = vmul.f32 %v3048_v3, %v7466_v15  ;;  %v3050_v1 = vpop.f32.mrb[131].mxu1  ;;  %v8944_v3 = vld [vmem:[#allocation14_spill] sm:$0xff] }
 0x555   : > { %v8207_v8 = vmul.f32 %v3050_v1, %v8932_v42  ;;  %v8945_v42 = vld [vmem:[#allocation15_spill] sm:$0xff] }
 0x559   : > { %v3054_v27 = vpop.f32.mrb[132].mxu1 }
 0x55a   : > { %v8213_v45 = vmul.f32 %v3054_v27, %v8933_v48  ;;  %v3056_v15 = vpop.f32.mrb[133].mxu1  ;;  %v8946_v48 = vld [vmem:[#allocation16_spill] sm:$0xff] }
 0x55b   : > { %v8216_v23 = vmul.f32 %v3056_v15, %v8934_v6  ;;  %v3058_v46 = vpop.f32.mrb[134].mxu1 }
 0x55c   : > { %v8219_v30 = vmul.f32 %v3058_v46, %v8935_v39  ;;  %v3060_v29 = vpop.f32.mrb[135].mxu1  ;;  %v8947_v46 = vld [vmem:[#allocation17_spill] sm:$0xff] }
 0x55d   : > { %v8222_v14 = vmul.f32 %v3060_v29, %v8936_v9  ;;  %v8948_v9 = vld [vmem:[#allocation18_spill] sm:$0xff] }
 0x561   : > { %v3064_v11 = vpop.f32.mrb[136].mxu1 }
 0x562   : > { %v8225_v25 = vmul.f32 %v3064_v11, %v8937_v53  ;;  %v3066_v32 = vpop.f32.mrb[137].mxu1 }
 0x563   : > { %v8228_v19 = vmul.f32 %v3066_v32, %v8938_v13  ;;  %v3068_v56 = vpop.f32.mrb[138].mxu1 }
 0x564   : > { %v8231_v44 = vmul.f32 %v3068_v56, %v8939_v24  ;;  %v3070_v21 = vpop.f32.mrb[139].mxu1 }
 0x565   : > { %v8234_v17 = vmul.f32 %v3070_v21, %v8940_v31 }
 0x569   : > { %v3074_v20 = vpop.f32.mrb[140].mxu1 }
 0x56a   : > { %v8237_v58 = vmul.f32 %v3074_v20, %v8941_v50  ;;  %v3076_v12 = vpop.f32.mrb[141].mxu1 }
 0x56b   : > { %v8240_v36 = vmul.f32 %v3076_v12, %v8942_v37  ;;  %v3078_v40 = vpop.f32.mrb[142].mxu1 }
 0x56c   : > { %v8243_v28 = vmul.f32 %v3078_v40, %v8943_v63  ;;  %v3080_v38 = vpop.f32.mrb[143].mxu1 }
 0x56d   : > { %v8246_v1 = vmul.f32 %v3080_v38, %v8944_v3 }
 0x571   : > { %v3084_v7 = vpop.f32.mrb[144].mxu1 }
 0x572   : > { %v8249_v10 = vmul.f32 %v3084_v7, %v8945_v42  ;;  %v3086_v27 = vpop.f32.mrb[145].mxu1 }
 0x573   : > { %v8252_v15 = vmul.f32 %v3086_v27, %v8946_v48  ;;  %v3088_v6 = vpop.f32.mrb[146].mxu1 }
 0x574   : > { %v8255_v39 = vmul.f32 %v3088_v6, %v8947_v46  ;;  %v3090_v29 = vpop.f32.mrb[147].mxu1 }
 0x575   : > { %v8258_v11 = vmul.f32 %v3090_v29, %v8948_v9 }
 0x5d3   : > { %v3143_v53 = vpop.f32.mrb[148].mxu0 }
 0x5d4   : > { %v3145_v32 = vpop.f32.mrb[149].mxu0 }
 0x5d5   : > { %v3147_v13 = vpop.f32.mrb[150].mxu0 }
 0x5d6   : > { %v3254_v56 = vpack.c.bf16 %v3147_v13, %v3143_v53  ;;  %v3149_v24 = vpop.f32.mrb[151].mxu0 }
 0x5d7   : > { %v3255_v21 = vpack.c.bf16 %v3149_v24, %v3145_v32 }
 0x5d9   : > { %3494 = vmatprep.mubr.bf16.mxu1 %v3255_v21 }
 0x5da   : > { %3495 = vmatmul.mubr.bf16.vlgmr.msra.gmra.mrb[148].mxu1 %v3254_v56 }
 0x5db   : > { %v3153_v31 = vpop.f32.mrb[152].mxu0 }
 0x5dc   : > { %v3155_v20 = vpop.f32.mrb[153].mxu0 }
 0x5dd   : > { %v3157_v50 = vpop.f32.mrb[154].mxu0 }
 0x5de   : > { %v3256_v12 = vpack.c.bf16 %v3157_v50, %v3153_v31  ;;  %v3159_v37 = vpop.f32.mrb[155].mxu0 }
 0x5df   : > { %v3257_v40 = vpack.c.bf16 %v3159_v37, %v3155_v20 }
 0x5e1   : > { %3504 = vmatprep.mubr.bf16.mxu1 %v3257_v40 }
 0x5e2   : > { %3505 = vmatmul.mubr.bf16.gmra.mrb[152].mxu1 %v3256_v12 }
 0x5e3   : > { %v3163_v63 = vpop.f32.mrb[156].mxu0 }
 0x5e4   : > { %v3165_v38 = vpop.f32.mrb[157].mxu0 }
 0x5e5   : > { %v3167_v3 = vpop.f32.mrb[158].mxu0 }
 0x5e6   : > { %v3258_v7 = vpack.c.bf16 %v3167_v3, %v3163_v63  ;;  %v3169_v42 = vpop.f32.mrb[159].mxu0 }
 0x5e7   : > { %v3259_v27 = vpack.c.bf16 %v3169_v42, %v3165_v38 }
 0x5e9   : > { %3514 = vmatprep.mubr.bf16.mxu1 %v3259_v27 }
 0x5ea   : > { %3515 = vmatmul.mubr.bf16.gmra.mrb[156].mxu1 %v3258_v7 }
 0x5eb   : > { %v3173_v48 = vpop.f32.mrb[160].mxu0 }
 0x5ec   : > { %v3175_v6 = vpop.f32.mrb[161].mxu0 }
 0x5ed   : > { %v3177_v46 = vpop.f32.mrb[162].mxu0 }
 0x5ee   : > { %v3260_v29 = vpack.c.bf16 %v3177_v46, %v3173_v48  ;;  %v3179_v9 = vpop.f32.mrb[163].mxu0 }
 0x5ef   : > { %v3261_v53 = vpack.c.bf16 %v3179_v9, %v3175_v6 }
 0x5f1   : > { %3524 = vmatprep.mubr.bf16.mxu1 %v3261_v53 }
 0x5f2   : > { %3525 = vmatmul.mubr.bf16.gmra.mrb[160].mxu1 %v3260_v29 }
 0x5f3   : > { %v3183_v32 = vpop.f32.mrb[164].mxu0 }
 0x5f4   : > { %v3185_v13 = vpop.f32.mrb[165].mxu0 }
 0x5f5   : > { %v3187_v56 = vpop.f32.mrb[166].mxu0 }
 0x5f6   : > { %v3262_v24 = vpack.c.bf16 %v3187_v56, %v3183_v32  ;;  %v3189_v21 = vpop.f32.mrb[167].mxu0 }
 0x5f7   : > { %v3263_v31 = vpack.c.bf16 %v3189_v21, %v3185_v13 }
 0x5f9   : > { %3534 = vmatprep.mubr.bf16.mxu1 %v3263_v31 }
 0x5fa   : > { %3535 = vmatmul.mubr.bf16.gmra.mrb[164].mxu1 %v3262_v24 }
 0x5fb   : > { %v3193_v20 = vpop.f32.mrb[168].mxu0 }
 0x5fc   : > { %v3195_v50 = vpop.f32.mrb[169].mxu0 }
 0x5fd   : > { %v3197_v12 = vpop.f32.mrb[170].mxu0 }
 0x5fe   : > { %v3264_v37 = vpack.c.bf16 %v3197_v12, %v3193_v20  ;;  %v3199_v40 = vpop.f32.mrb[171].mxu0 }
 0x5ff   : > { %v3265_v63 = vpack.c.bf16 %v3199_v40, %v3195_v50 }
 0x601   : > { %3544 = vmatprep.mubr.bf16.mxu1 %v3265_v63 }
 0x602   : > { %3545 = vmatmul.mubr.bf16.gmra.mrb[168].mxu1 %v3264_v37 }
 0x603   : > { %v3203_v38 = vpop.f32.mrb[172].mxu0 }
 0x604   : > { %v3205_v3 = vpop.f32.mrb[173].mxu0 }
 0x605   : > { %v3207_v7 = vpop.f32.mrb[174].mxu0 }
 0x606   : > { %v3266_v42 = vpack.c.bf16 %v3207_v7, %v3203_v38  ;;  %v3209_v27 = vpop.f32.mrb[175].mxu0 }
 0x607   : > { %v3267_v48 = vpack.c.bf16 %v3209_v27, %v3205_v3 }
 0x609   : > { %3554 = vmatprep.mubr.bf16.mxu1 %v3267_v48 }
 0x60a   : > { %3555 = vmatmul.mubr.bf16.gmra.mrb[172].mxu1 %v3266_v42 }
 0x60b   : > { %v3213_v6 = vpop.f32.mrb[176].mxu0 }
 0x60c   : > { %v3215_v46 = vpop.f32.mrb[177].mxu0 }
 0x60d   : > { %v3217_v29 = vpop.f32.mrb[178].mxu0 }
 0x60e   : > { %v3268_v9 = vpack.c.bf16 %v3217_v29, %v3213_v6  ;;  %v3219_v53 = vpop.f32.mrb[179].mxu0 }
 0x60f   : > { %v3269_v32 = vpack.c.bf16 %v3219_v53, %v3215_v46 }
 0x611   : > { %3564 = vmatprep.mubr.bf16.mxu1 %v3269_v32 }
 0x612   : > { %3565 = vmatmul.mubr.bf16.gmra.mrb[176].mxu1 %v3268_v9 }
 0x613   : > { %6151 = vmatprep.mubr.bf16.mxu1 %v8059_v2 }
 0x6ad   : > { %v3496_v13 = vpop.f32.mrb[148].mxu1 }
 0x6ae   : > { %v3497_v56 = vadd.f32 %v3496_v13, %v8159_v18  ;;  %v3498_v24 = vpop.f32.mrb[149].mxu1 }
 0x6af   : > { %v3499_v21 = vadd.f32 %v3498_v24, %v8162_v59  ;;  %v3500_v31 = vpop.f32.mrb[150].mxu1 }
 0x6b0   : > { %6768 = vtanh.f32 %v3497_v56  ;;  %v3501_v20 = vadd.f32 %v3500_v31, %v8165_v26  ;;  %v3502_v50 = vpop.f32.mrb[151].mxu1 }
 0x6b1   : > { %6770 = vtanh.f32 %v3499_v21  ;;  %v3503_v12 = vadd.f32 %v3502_v50, %v8168_v33 }
 0x6b2   : > { %6772 = vtanh.f32 %v3501_v20 }
 0x6b3   : > { %6774 = vtanh.f32 %v3503_v12 }
 0x6b5   : > { %v3506_v37 = vpop.f32.mrb[152].mxu1 }
 0x6b6   : > { %v3507_v40 = vadd.f32 %v3506_v37, %v8171_v35  ;;  %v3508_v2 = vpop.f32.mrb[153].mxu1 }
 0x6b7   : > { %v3509_v63 = vadd.f32 %v3508_v2, %v8174_v51  ;;  %v3510_v18 = vpop.f32.mrb[154].mxu1 }
 0x6b8   : > { %6776 = vtanh.f32 %v3507_v40  ;;  %v3511_v59 = vadd.f32 %v3510_v18, %v8177_v43  ;;  %v3512_v38 = vpop.f32.mrb[155].mxu1 }
 0x6b9   : > { %6778 = vtanh.f32 %v3509_v63  ;;  %v3513_v26 = vadd.f32 %v3512_v38, %v8180_v52 }
 0x6ba   : > { %v6769_v3 = vpop.eup %6768  ;;  %6780 = vtanh.f32 %v3511_v59 }
 0x6bb   : > { %v6771_v7 = vpop.eup %6770  ;;  %6782 = vtanh.f32 %v3513_v26 }
 0x6bc   : > { %v6773_v33 = vpop.eup %6772 }
 0x6bd   : > { %v6775_v42 = vpop.eup %6774  ;;  %v3516_v27 = vpop.f32.mrb[156].mxu1  ;;  %v8269_v48 = vpack.c.bf16 %v6773_v33, %v6769_v3 }
 0x6be   : > { %v3517_v35 = vadd.f32 %v3516_v27, %v8183_v57  ;;  %v3518_v51 = vpop.f32.mrb[157].mxu1  ;;  %v8272_v6 = vpack.c.bf16 %v6775_v42, %v6771_v7 }
 0x6bf   : > { %v3519_v43 = vadd.f32 %v3518_v51, %v8186_v60  ;;  %v3520_v46 = vpop.f32.mrb[158].mxu1 }
 0x6c0   : > { %6784 = vtanh.f32 %v3517_v35  ;;  %v3521_v52 = vadd.f32 %v3520_v46, %v8189_v61  ;;  %v3522_v29 = vpop.f32.mrb[159].mxu1  ;;  %3623 = vmatprep.subr.bf16.mxu0 %v8272_v6 }
 0x6c1   : > { %6786 = vtanh.f32 %v3519_v43  ;;  %v3523_v9 = vadd.f32 %v3522_v29, %v8192_v62  ;;  %3624 = vmatpush1.bf16.msra.mxu0 %v8269_v48 }
 0x6c2   : > { %v6777_v53 = vpop.eup %6776  ;;  %6788 = vtanh.f32 %v3521_v52 }
 0x6c3   : > { %v6779_v57 = vpop.eup %6778  ;;  %6790 = vtanh.f32 %v3523_v9 }
 0x6c4   : > { %v6781_v32 = vpop.eup %6780 }
 0x6c5   : > { %v6783_v13 = vpop.eup %6782  ;;  %v3526_v56 = vpop.f32.mrb[160].mxu1  ;;  %v8279_v60 = vpack.c.bf16 %v6781_v32, %v6777_v53 }
 0x6c6   : > { %v3527_v24 = vadd.f32 %v3526_v56, %v8195_v0  ;;  %v3528_v61 = vpop.f32.mrb[161].mxu1  ;;  %v8282_v21 = vpack.c.bf16 %v6783_v13, %v6779_v57 }
 0x6c7   : > { %v3529_v31 = vadd.f32 %v3528_v61, %v8198_v4  ;;  %v3530_v20 = vpop.f32.mrb[162].mxu1 }
 0x6c8   : > { %6792 = vtanh.f32 %v3527_v24  ;;  %v3531_v62 = vadd.f32 %v3530_v20, %v8201_v54  ;;  %v3532_v50 = vpop.f32.mrb[163].mxu1  ;;  %3625 = vmatprep.subr.bf16.mxu0 %v8282_v21 }
 0x6c9   : > { %6794 = vtanh.f32 %v3529_v31  ;;  %v3533_v12 = vadd.f32 %v3532_v50, %v8207_v8  ;;  %3626 = vmatpush1.bf16.msra.mxu0 %v8279_v60 }
 0x6ca   : > { %v6785_v37 = vpop.eup %6784  ;;  %6796 = vtanh.f32 %v3531_v62 }
 0x6cb   : > { %v6787_v0 = vpop.eup %6786  ;;  %6798 = vtanh.f32 %v3533_v12 }
 0x6cc   : > { %v6789_v40 = vpop.eup %6788 }
 0x6cd   : > { %v6791_v2 = vpop.eup %6790  ;;  %v3536_v63 = vpop.f32.mrb[164].mxu1  ;;  %v8289_v4 = vpack.c.bf16 %v6789_v40, %v6785_v37 }
 0x6ce   : > { %v3537_v18 = vadd.f32 %v3536_v63, %v8213_v45  ;;  %v3538_v54 = vpop.f32.mrb[165].mxu1  ;;  %v8292_v59 = vpack.c.bf16 %v6791_v2, %v6787_v0 }
 0x6cf   : > { %v3539_v38 = vadd.f32 %v3538_v54, %v8216_v23  ;;  %v3540_v26 = vpop.f32.mrb[166].mxu1 }
 0x6d0   : > { %6800 = vtanh.f32 %v3537_v18  ;;  %v3541_v8 = vadd.f32 %v3540_v26, %v8219_v30  ;;  %v3542_v3 = vpop.f32.mrb[167].mxu1  ;;  %3627 = vmatprep.subr.bf16.mxu0 %v8292_v59 }
 0x6d1   : > { %6802 = vtanh.f32 %v3539_v38  ;;  %v3543_v7 = vadd.f32 %v3542_v3, %v8222_v14  ;;  %3628 = vmatpush1.bf16.msra.mxu0 %v8289_v4 }
 0x6d2   : > { %v6793_v33 = vpop.eup %6792  ;;  %6804 = vtanh.f32 %v3541_v8 }
 0x6d3   : > { %v6795_v45 = vpop.eup %6794  ;;  %6806 = vtanh.f32 %v3543_v7 }
 0x6d4   : > { %v6797_v42 = vpop.eup %6796 }
 0x6d5   : > { %v6799_v27 = vpop.eup %6798  ;;  %v3546_v35 = vpop.f32.mrb[168].mxu1  ;;  %v8299_v23 = vpack.c.bf16 %v6797_v42, %v6793_v33 }
 0x6d6   : > { %v3547_v51 = vadd.f32 %v3546_v35, %v8225_v25  ;;  %v3548_v30 = vpop.f32.mrb[169].mxu1  ;;  %v8302_v43 = vpack.c.bf16 %v6799_v27, %v6795_v45 }
 0x6d7   : > { %v3549_v46 = vadd.f32 %v3548_v30, %v8228_v19  ;;  %v3550_v52 = vpop.f32.mrb[170].mxu1  ;;  %v6582_v30 = vld [vmem:[%s8892_s10 + $0x48] sm:$0xff]  }
 0x6d8   : > { %6808 = vtanh.f32 %v3547_v51  ;;  %v3551_v14 = vadd.f32 %v3550_v52, %v8231_v44  ;;  %v3552_v29 = vpop.f32.mrb[171].mxu1  ;;  %3629 = vmatprep.subr.bf16.mxu0 %v8302_v43  ;;  %v6581_v51 = vld [vmem:[%s8892_s10] sm:$0xff]   ;;  %v6583_v52 = vld [vmem:[%s8892_s10 + $0x8] sm:$0xff]  }
 0x6d9   : > { %6810 = vtanh.f32 %v3549_v46  ;;  %v3553_v9 = vadd.f32 %v3552_v29, %v8234_v17  ;;  %3630 = vmatpush1.bf16.msra.mxu0 %v8299_v23  ;;  %v8341_v46 = vld [vmem:[%s8885_s3] sm:$0xff]   ;;  %v6585_v29 = vld [vmem:[%s8892_s10 + $0x10] sm:$0xff]  }
 0x6da   : > { %v6801_v53 = vpop.eup %6800  ;;  %6812 = vtanh.f32 %v3551_v14  ;;  %v6584_v14 = vld [vmem:[%s8892_s10 + $0x50] sm:$0xff]  }
 0x6db   : > { %v6803_v25 = vpop.eup %6802  ;;  %6814 = vtanh.f32 %v3553_v9  ;;  %v6586_v9 = vld [vmem:[%s8892_s10 + $0x58] sm:$0xff]  }
 0x6dc   : > { %v6805_v57 = vpop.eup %6804 }
 0x6dd   : > { %v6807_v32 = vpop.eup %6806  ;;  %v3556_v13 = vpop.f32.mrb[172].mxu1  ;;  %v8309_v19 = vpack.c.bf16 %v6805_v57, %v6801_v53  ;;  %v6588_v53 = vld [vmem:[%s8892_s10 + $0x60] sm:$0xff]   ;;  %v6590_v57 = vld [vmem:[%s8892_s10 + $0x68] sm:$0xff]  }
 0x6de   : > { %v3557_v56 = vadd.f32 %v3556_v13, %v8237_v58  ;;  %v3558_v44 = vpop.f32.mrb[173].mxu1  ;;  %v8312_v24 = vpack.c.bf16 %v6807_v32, %v6803_v25  ;;  %v6589_v25 = vld [vmem:[%s8892_s10 + $0x20] sm:$0xff]   ;;  %v6591_v32 = vld [vmem:[%s8892_s10 + $0x28] sm:$0xff]   ;;  %v6592_v13 = vld [vmem:[%s8892_s10 + $0x70] sm:$0xff]  }
 0x6df   : > { %v3559_v61 = vadd.f32 %v3558_v44, %v8240_v36  ;;  %v3560_v31 = vpop.f32.mrb[174].mxu1  ;;  %v6594_v44 = vld [vmem:[%s8892_s10 + $0x78] sm:$0xff]  }
 0x6e0   : > { %6816 = vtanh.f32 %v3557_v56  ;;  %v3561_v17 = vadd.f32 %v3560_v31, %v8243_v28  ;;  %v3562_v20 = vpop.f32.mrb[175].mxu1  ;;  %3631 = vmatprep.subr.bf16.mxu0 %v8312_v24  ;;  %v6593_v56 = vld [vmem:[%s8892_s10 + $0x30] sm:$0xff]   ;;  %v8949_v31 = vmov 0.0  }
 0x6e1   : > { %6818 = vtanh.f32 %v3559_v61  ;;  %v3563_v62 = vadd.f32 %v3562_v20, %v8246_v1  ;;  %3632 = vmatpush1.bf16.msra.mxu0 %v8309_v19  ;;  %v6595_v61 = vld [vmem:[%s8892_s10 + $0x38] sm:$0xff]  }
 0x6e2   : > { %v6809_v50 = vpop.eup %6808  ;;  %6820 = vtanh.f32 %v3561_v17 }
 0x6e3   : > { %v6811_v58 = vpop.eup %6810  ;;  %6822 = vtanh.f32 %v3563_v62 }
 0x6e4   : > { %v6813_v12 = vpop.eup %6812 }
 0x6e5   : > { %v6815_v37 = vpop.eup %6814  ;;  %v3566_v0 = vpop.f32.mrb[176].mxu1  ;;  %v8319_v36 = vpack.c.bf16 %v6813_v12, %v6809_v50 }
 0x6e6   : > { %v3567_v40 = vadd.f32 %v3566_v0, %v8249_v10  ;;  %v3568_v28 = vpop.f32.mrb[177].mxu1  ;;  %v8322_v2 = vpack.c.bf16 %v6815_v37, %v6811_v58  ;;  %v4017_v37 = vpop.permute.xlu1 %4016 }
 0x6e7   : > { %v3569_v63 = vadd.f32 %v3568_v28, %v8252_v15  ;;  %v3570_v18 = vpop.f32.mrb[178].mxu1 }
 0x6e8   : > { %6824 = vtanh.f32 %v3567_v40  ;;  %v3571_v1 = vadd.f32 %v3570_v18, %v8255_v39  ;;  %v3572_v54 = vpop.f32.mrb[179].mxu1  ;;  %3633 = vmatprep.subr.bf16.mxu0 %v8322_v2 }
 0x6e9   : > { %6826 = vtanh.f32 %v3569_v63  ;;  %v3573_v38 = vadd.f32 %v3572_v54, %v8258_v11  ;;  %3634 = vmatpush1.bf16.msra.mxu0 %v8319_v36  ;;  %v6580_v11 = vld [vmem:[%s8892_s10 + $0x40] sm:$0xff]  }
 0x6ea   : > { %v6817_v26 = vpop.eup %6816  ;;  %6828 = vtanh.f32 %v3571_v1  ;;  %v4019_v1 = vpop.permute.xlu1 %4018 }
 0x6eb   : > { %v6819_v10 = vpop.eup %6818  ;;  %6830 = vtanh.f32 %v3573_v38 }
 0x6ec   : > { %v6821_v8 = vpop.eup %6820 }
 0x6ed   : > { %v6823_v3 = vpop.eup %6822  ;;  %v3619_v7 = vpack.c.bf16 %v6821_v8, %v6817_v26 }
 0x6ee   : > { %v3620_v15 = vpack.c.bf16 %v6823_v3, %v6819_v10 }
 0x6f0   : > { %3635 = vmatprep.subr.bf16.mxu0 %v3620_v15 }
 0x6f1   : > { %3636 = vmatpush1.bf16.msra.mxu0 %v3619_v7 }
 0x6f2   : > { %v6825_v33 = vpop.eup %6824 }
 0x6f3   : > { %v6827_v39 = vpop.eup %6826 }
 0x6f4   : > { %v6829_v45 = vpop.eup %6828 }
 0x6f5   : > { %v6831_v42 = vpop.eup %6830  ;;  %v3621_v27 = vpack.c.bf16 %v6829_v45, %v6825_v33  ;;  %v4023_v45 = vpop.permute.xlu1 %4022 }
 0x6f6   : > { %v3622_v35 = vpack.c.bf16 %v6831_v42, %v6827_v39 }
 0x6f8   : > { %3637 = vmatprep.subr.bf16.mxu0 %v3622_v35 }
 0x6f9   : > { %3638 = vmatpush1.bf16.msra.mxu0 %v3621_v27 }
 0x6fa   : > { %5857 = vmatprep.subr.bf16.mxu0 %v6580_v11 }
 0x6fc   : > { %3656 = vmatmul.mubr.bf16.vlgmr.msra.gmra.mrb[180].mxu0 %v8341_v46 }
 0x6fd   : > { %5858 = vmatpush3.bf16.msra.mxu0 %v6581_v51  ;;  %3826 = vmatprep.mubr.bf16.mxu0 %v8272_v6  ;;  %v6587_v6 = vld [vmem:[%s8892_s10 + $0x18] sm:$0xff]  }
 0x6fe   : > { %5859 = vmatprep.subr.bf16.mxu0 %v6582_v30 }
 0x701   : > { %5860 = vmatpush3.bf16.msra.mxu0 %v6583_v52 }
 0x702   : > { %5861 = vmatprep.subr.bf16.mxu0 %v6584_v14 }
 0x705   : > { %5862 = vmatpush3.bf16.msra.mxu0 %v6585_v29 }
 0x706   : > { %5863 = vmatprep.subr.bf16.mxu0 %v6586_v9 }
 0x709   : > { %5864 = vmatpush3.bf16.msra.mxu0 %v6587_v6  ;;  %v4027_v6 = vpop.permute.xlu1 %4026 }
 0x70a   : > { %5865 = vmatprep.subr.bf16.mxu0 %v6588_v53 }
 0x70d   : > { %5866 = vmatpush3.bf16.msra.mxu0 %v6589_v25 }
 0x70e   : > { %5867 = vmatprep.subr.bf16.mxu0 %v6590_v57 }
 0x711   : > { %5868 = vmatpush3.bf16.msra.mxu0 %v6591_v32 }
 0x712   : > { %5869 = vmatprep.subr.bf16.mxu0 %v6592_v13 }
 0x715   : > { %5870 = vmatpush3.bf16.msra.mxu0 %v6593_v56 }
 0x716   : > { %5871 = vmatprep.subr.bf16.mxu0 %v6594_v44 }
 0x719   : > { %5872 = vmatpush3.bf16.msra.mxu0 %v6595_v61 }
 0x71a   : > { %6191 = vmatprep.subr.bf16.mxu0 %v8949_v31 }
 0x71c   : > { %3827 = vmatmul.mubr.bf16.vlgmr.msra.gmra.mrb[184].mxu0 %v8269_v48 }
 0x71d   : > { %3834 = vmatprep.mubr.bf16.mxu0 %v8282_v21 }
 0x724   : > { %3835 = vmatmul.mubr.bf16.gmra.mrb[188].mxu0 %v8279_v60 }
 0x725   : > { %3842 = vmatprep.mubr.bf16.mxu0 %v8292_v59  ;;  %v4013_v59 = vpop.permute.xlu0 %4012 }
 0x729   : > { %v4015_v50 = vpop.permute.xlu0 %4014 }
 0x72c   : > { %3843 = vmatmul.mubr.bf16.gmra.mrb[192].mxu0 %v8289_v4 }
 0x72d   : > { %3850 = vmatprep.mubr.bf16.mxu0 %v8302_v43 }
 0x734   : > { %3851 = vmatmul.mubr.bf16.gmra.mrb[196].mxu0 %v8299_v23 }
 0x735   : > { %3858 = vmatprep.mubr.bf16.mxu0 %v8312_v24 }
 0x73c   : > { %3859 = vmatmul.mubr.bf16.gmra.mrb[200].mxu0 %v8309_v19 }
 0x73d   : > { %3866 = vmatprep.mubr.bf16.mxu0 %v8322_v2 }
 0x744   : > { %3867 = vmatmul.mubr.bf16.gmra.mrb[204].mxu0 %v8319_v36 }
 0x745   : > { %3874 = vmatprep.mubr.bf16.mxu0 %v3620_v15 }
 0x74c   : > { %3875 = vmatmul.mubr.bf16.gmra.mrb[208].mxu0 %v3619_v7  ;;  %v4021_v7 = vpop.permute.xlu0 %4020 }
 0x74d   : > { %3882 = vmatprep.mubr.bf16.mxu0 %v3622_v35 }
 0x750   : > { %v4025_v52 = vpop.permute.xlu0 %4024 }
 0x754   : > { %3883 = vmatmul.mubr.bf16.gmra.mrb[212].mxu0 %v3621_v27  ;;  %v4029_v44 = vpop.permute.xlu0 %4028 }
 0x755   : > { %6207 = vmatprep.mubr.msk.bf16.mxu0 %vm6895_vm0, %v8949_v31 }
 0x7cf   : > { %v8398_v48 = vpop.f32.mrb[180].mxu0 }
 0x7d0   : > { %v8400_v60 = vpop.f32.mrb[181].mxu0 }
 0x7d1   : > { %v8402_v21 = vpop.f32.mrb[182].mxu0 }
 0x7d2   : > { %v8404_v4 = vpop.f32.mrb[183].mxu0 }
 0x7ef   : > { %v5873_v23 = vpop.f32.mrb[184].mxu0 }
 0x7f0   : > { %v5874_v43 = vpop.f32.mrb[185].mxu0 }
 0x7f1   : > { %v5875_v19 = vadd.f32 %v5874_v43, %v5873_v23  ;;  %v5876_v24 = vpop.f32.mrb[186].mxu0  ;;  %v4031_v43 = vpop.permute.xlu1 %4030 }
 0x7f2   : > { %v5877_v17 = vpop.f32.mrb[187].mxu0 }
 0x7f3   : > { %v4060_v20 = vmul.f32 %v5875_v19, %v4013_v59  ;;  %v5878_v62 = vadd.f32 %v5877_v17, %v5876_v24 }
 0x7f5   : > { %v3891_v58 = vpack.c.bf16 %v5878_v62, %v5875_v19  ;;  %v4061_v12 = vmul.f32 %v5878_v62, %v4015_v50  ;;  %4132 = vrot.lane.b32.xlu0 %v4060_v20, %s8950_s2 }
 0x7f7   : > { %v5879_v0 = vpop.f32.mrb[188].mxu0  ;;  %4134 = vrot.lane.b32.xlu1 %v4061_v12, %s8950_s2  ;;  %6135 = vmatprep.subr.bf16.mxu1 %v3891_v58 }
 0x7f8   : > { %v5880_v36 = vpop.f32.mrb[189].mxu0  ;;  %6136 = vmatpush3.bf16.msra.mxu1 %v3891_v58  ;;  %v4033_v58 = vpop.permute.xlu0 %4032 }
 0x7f9   : > { %v5881_v40 = vadd.f32 %v5880_v36, %v5879_v0  ;;  %v5882_v28 = vpop.f32.mrb[190].mxu0  ;;  %v4035_v36 = vpop.permute.xlu1 %4034 }
 0x7fa   : > { %v5883_v2 = vpop.f32.mrb[191].mxu0 }
 0x7fb   : > { %v4062_v63 = vmul.f32 %v5881_v40, %v4017_v37  ;;  %v5884_v18 = vadd.f32 %v5883_v2, %v5882_v28 }
 0x7fd   : > { %v3892_v54 = vpack.c.bf16 %v5884_v18, %v5881_v40  ;;  %v4063_v38 = vmul.f32 %v5884_v18, %v4019_v1  ;;  %4136 = vrot.lane.b32.xlu0 %v4062_v63, %s8950_s2 }
 0x7ff   : > { %v5885_v26 = vpop.f32.mrb[192].mxu0  ;;  %4138 = vrot.lane.b32.xlu1 %v4063_v38, %s8950_s2  ;;  %6137 = vmatprep.subr.bf16.mxu1 %v3892_v54 }
 0x800   : > { %v5886_v10 = vpop.f32.mrb[193].mxu0  ;;  %6138 = vmatpush3.bf16.msra.mxu1 %v3892_v54  ;;  %v4037_v54 = vpop.permute.xlu0 %4036 }
 0x801   : > { %v5887_v8 = vadd.f32 %v5886_v10, %v5885_v26  ;;  %v5888_v3 = vpop.f32.mrb[194].mxu0 }
 0x802   : > { %v5889_v15 = vpop.f32.mrb[195].mxu0 }
 0x803   : > { %v4064_v33 = vmul.f32 %v5887_v8, %v4021_v7  ;;  %v5890_v39 = vadd.f32 %v5889_v15, %v5888_v3 }
 0x805   : > { %v3893_v42 = vpack.c.bf16 %v5890_v39, %v5887_v8  ;;  %v4065_v27 = vmul.f32 %v5890_v39, %v4023_v45  ;;  %4140 = vrot.lane.b32.xlu0 %v4064_v33, %s8950_s2  ;;  %v4039_v8 = vpop.permute.xlu1 %4038 }
 0x807   : > { %v5891_v35 = vpop.f32.mrb[196].mxu0  ;;  %4142 = vrot.lane.b32.xlu1 %v4065_v27, %s8950_s2  ;;  %6139 = vmatprep.subr.bf16.mxu1 %v3893_v42 }
 0x808   : > { %v5892_v11 = vpop.f32.mrb[197].mxu0  ;;  %6140 = vmatpush3.bf16.msra.mxu1 %v3893_v42  ;;  %v4041_v42 = vpop.permute.xlu0 %4040 }
 0x809   : > { %v5893_v51 = vadd.f32 %v5892_v11, %v5891_v35  ;;  %v5894_v30 = vpop.f32.mrb[198].mxu0 }
 0x80a   : > { %v5895_v14 = vpop.f32.mrb[199].mxu0 }
 0x80b   : > { %v4066_v29 = vmul.f32 %v5893_v51, %v4025_v52  ;;  %v5896_v9 = vadd.f32 %v5895_v14, %v5894_v30  ;;  %v6882_v14 = vld [vmem:[%s7507_s20 + $0x8] sm:$0xff]  }
 0x80d   : > { %v3894_v53 = vpack.c.bf16 %v5896_v9, %v5893_v51  ;;  %v4067_v25 = vmul.f32 %v5896_v9, %v4027_v6  ;;  %4144 = vrot.lane.b32.xlu0 %v4066_v29, %s8950_s2  ;;  %v4043_v51 = vpop.permute.xlu1 %4042  ;;  %v6883_v29 = vld [vmem:[%s7507_s20 + $0x10] sm:$0xff]   ;;  %v6596_v9 = vld [vmem:[%s8893_s11] sm:$0xff]  }
 0x80f   : > { %v5897_v57 = vpop.f32.mrb[200].mxu0  ;;  %4146 = vrot.lane.b32.xlu1 %v4067_v25, %s8950_s2  ;;  %6141 = vmatprep.subr.bf16.mxu1 %v3894_v53  ;;  %v4424_v25 = vlaneseq }
 0x810   : > { %v5898_v32 = vpop.f32.mrb[201].mxu0  ;;  %6142 = vmatpush3.bf16.msra.mxu1 %v3894_v53 }
 0x811   : > { %v5899_v13 = vadd.f32 %v5898_v32, %v5897_v57  ;;  %v5900_v56 = vpop.f32.mrb[202].mxu0 }
 0x812   : > { %v5901_v61 = vpop.f32.mrb[203].mxu0 }
 0x813   : > { %v4068_v59 = vmul.f32 %v5899_v13, %v4029_v44  ;;  %v5902_v23 = vadd.f32 %v5901_v61, %v5900_v56 }
 0x815   : > { %v3895_v19 = vpack.c.bf16 %v5902_v23, %v5899_v13  ;;  %v4069_v24 = vmul.f32 %v5902_v23, %v4031_v43  ;;  %4148 = vrot.lane.b32.xlu0 %v4068_v59, %s8950_s2  ;;  %v8481_v13 = vshrl.u32 %v4424_v25, 7  ;;  %v8491_v59 = vld [vmem:[%s8894_s12] ss:$2 sm:$0x3f] }
 0x817   : > { %v5903_v17 = vpop.f32.mrb[204].mxu0  ;;  %4150 = vrot.lane.b32.xlu1 %v4069_v24, %s8950_s2  ;;  %6143 = vmatprep.subr.bf16.mxu1 %v3895_v19  ;;  %v4430_v61 = vsub.s32 1, %v8481_v13  ;;  %v4434_v24 = vsub.s32 2, %v8481_v13 }
 0x818   : > { %v5904_v20 = vpop.f32.mrb[205].mxu0  ;;  %6144 = vmatpush3.bf16.msra.mxu1 %v3895_v19 }
 0x819   : > { %v5905_v62 = vadd.f32 %v5904_v20, %v5903_v17  ;;  %v5906_v50 = vpop.f32.mrb[206].mxu0  ;;  %v4431_v19 = vrot.slane %v8491_v59, %v4430_v61  ;;  %v8502_v17 = vld [vmem:[%s8894_s12 + $0x1] ss:$2 sm:$0x3f] }
 0x81a   : > { %v5907_v12 = vpop.f32.mrb[207].mxu0 }
 0x81b   : > { %v4070_v37 = vmul.f32 %v5905_v62, %v4033_v58  ;;  %v5908_v0 = vadd.f32 %v5907_v12, %v5906_v50  ;;  %v4476_v58 = vrot.slane %v8502_v17, %v4430_v61 }
 0x81d   : > { %v3896_v40 = vpack.c.bf16 %v5908_v0, %v5905_v62  ;;  %v4071_v28 = vmul.f32 %v5908_v0, %v4035_v36  ;;  %4152 = vrot.lane.b32.xlu0 %v4070_v37, %s8950_s2  ;;  %v8951_v62 = vld [vmem:[#allocation19_spill] sm:$0xff]  ;;  %v4435_v0 = vrot.slane %v8491_v59, %v4434_v24  ;;  %v8952_v36 = vld [vmem:[#allocation20_spill] sm:$0xff] }
 0x81f   : > { %v5909_v2 = vpop.f32.mrb[208].mxu0  ;;  %4154 = vrot.lane.b32.xlu1 %v4071_v28, %s8950_s2  ;;  %6145 = vmatprep.subr.bf16.mxu1 %v3896_v40 }
 0x820   : > { %v5910_v63 = vpop.f32.mrb[209].mxu0  ;;  %6146 = vmatpush3.bf16.msra.mxu1 %v3896_v40 }
 0x821   : > { %v5911_v18 = vadd.f32 %v5910_v63, %v5909_v2  ;;  %v5912_v1 = vpop.f32.mrb[210].mxu0  ;;  %v4480_v63 = vrot.slane %v8502_v17, %v4434_v24 }
 0x822   : > { %v5913_v38 = vpop.f32.mrb[211].mxu0 }
 0x823   : > { %v4072_v26 = vmul.f32 %v5911_v18, %v4037_v54  ;;  %v5914_v10 = vadd.f32 %v5913_v38, %v5912_v1 }
 0x825   : > { %v3897_v3 = vpack.c.bf16 %v5914_v10, %v5911_v18  ;;  %v4073_v7 = vmul.f32 %v5914_v10, %v4039_v8  ;;  %4156 = vrot.lane.b32.xlu0 %v4072_v26, %s8950_s2  ;;  %v4442_v10 = vsub.s32 4, %v8481_v13 }
 0x827   : > { %v5915_v15 = vpop.f32.mrb[212].mxu0  ;;  %4158 = vrot.lane.b32.xlu1 %v4073_v7, %s8950_s2  ;;  %6147 = vmatprep.subr.bf16.mxu1 %v3897_v3 }
 0x828   : > { %v5916_v33 = vpop.f32.mrb[213].mxu0  ;;  %6148 = vmatpush3.bf16.msra.mxu1 %v3897_v3 }
 0x829   : > { %v5917_v39 = vadd.f32 %v5916_v33, %v5915_v15  ;;  %v5918_v45 = vpop.f32.mrb[214].mxu0 }
 0x82a   : > { %v5919_v27 = vpop.f32.mrb[215].mxu0 }
 0x82b   : > { %v4074_v35 = vmul.f32 %v5917_v39, %v4041_v42  ;;  %v5920_v11 = vadd.f32 %v5919_v27, %v5918_v45  ;;  %v4443_v42 = vrot.slane %v8491_v59, %v4442_v10 }
 0x82d   : > { %v3898_v30 = vpack.c.bf16 %v5920_v11, %v5917_v39  ;;  %v4075_v52 = vmul.f32 %v5920_v11, %v4043_v51  ;;  %4160 = vrot.lane.b32.xlu0 %v4074_v35, %s8950_s2  ;;  %v4488_v51 = vrot.slane %v8502_v17, %v4442_v10 }
 0x82f   : > { %4162 = vrot.lane.b32.xlu1 %v4075_v52, %s8950_s2  ;;  %6149 = vmatprep.subr.bf16.mxu1 %v3898_v30 }
 0x830   : > { %6150 = vmatpush3.bf16.msra.mxu1 %v3898_v30 }
 0x831   : > { %4372 = vrot.lane.b32.xlu0 %v8041_v47, %s8950_s2  ;;  %v6597_v47 = vld [vmem:[%s8893_s11 + $0x8] sm:$0xff]   ;;  %6167 = vmatprep.subr.bf16.mxu1 %v6596_v9 }
 0x833   : > { %4376 = vrot.lane.b32.xlu1 %v8048_v5, %s8950_s2  ;;  %6152 = vmatmul.mubr.bf16.vlgmr.msra.gmra.mrb[180].mxu1 %v6882_v14  ;;  %v6598_v5 = vld [vmem:[%s8893_s11 + $0x10] sm:$0xff]  }
 0x834   : > { %6155 = vmatprep.mubr.bf16.mxu1 %v6883_v29  ;;  %6168 = vmatpush3.bf16.msra.mxu1 %v6596_v9 }
 0x835   : > { %4374 = vrot.lane.b32.xlu0 %v8046_v16, %s8950_s2  ;;  %v6884_v16 = vld [vmem:[%s7507_s20 + $0x18] sm:$0xff]   ;;  %6169 = vmatprep.subr.bf16.mxu1 %v6597_v47 }
 0x837   : > { %4378 = vrot.lane.b32.xlu1 %v8050_v22, %s8950_s2 }
 0x838   : > { %6170 = vmatpush3.bf16.msra.mxu1 %v6597_v47 }
 0x839   : > { %4392 = vrot.lane.b32.xlu0 %v8398_v48, %s8950_s2  ;;  %6171 = vmatprep.subr.bf16.mxu1 %v6598_v5 }
 0x83b   : > { %4396 = vrot.lane.b32.xlu1 %v8402_v21, %s8950_s2  ;;  %6156 = vmatmul.mubr.bf16.gmra.mrb[184].mxu1 %v6884_v16 }
 0x83c   : > { %6159 = vmatprep.mubr.bf16.mxu1 %v8118_v49  ;;  %6172 = vmatpush3.bf16.msra.mxu1 %v6598_v5 }
 0x83d   : > { %4394 = vrot.lane.b32.xlu0 %v8400_v60, %s8950_s2  ;;  %v6599_v60 = vld [vmem:[%s8893_s11 + $0x18] sm:$0xff]  }
 0x83e   : > { %6173 = vmatprep.subr.bf16.mxu1 %v6599_v60 }
 0x83f   : > { %4398 = vrot.lane.b32.xlu1 %v8404_v4, %s8950_s2 }
 0x840   : > { %6174 = vmatpush3.bf16.msra.mxu1 %v6599_v60 }
 0x843   : > { %6160 = vmatmul.mubr.bf16.gmra.mrb[188].mxu1 %v8135_v55 }
 0x844   : > { %6163 = vmatprep.mubr.bf16.mxu1 %v8149_v41 }
 0x84b   : > { %6164 = vmatmul.mubr.bf16.gmra.mrb[192].mxu1 %v8154_v34 }
 0x867   : > { %v8454_v22 = vpop.permute.xlu0 %4132 }
 0x869   : > { %v8456_v48 = vpop.permute.xlu1 %4134 }
 0x86f   : > { %v8458_v49 = vpop.permute.xlu0 %4136 }
 0x871   : > { %v8463_v21 = vpop.permute.xlu1 %4138 }
 0x877   : > { %v8465_v4 = vpop.permute.xlu0 %4140 }
 0x879   : > { %v8467_v55 = vpop.permute.xlu1 %4142 }
 0x87f   : > { %v8469_v41 = vpop.permute.xlu0 %4144 }
 0x881   : > { %v8471_v34 = vpop.permute.xlu1 %4146 }
 0x887   : > { %v8473_v6 = vpop.permute.xlu0 %4148 }
 0x889   : > { %v8475_v53 = vpop.permute.xlu1 %4150 }
 0x88f   : > { %v8477_v57 = vpop.permute.xlu0 %4152 }
 0x891   : > { %v8479_v32 = vpop.permute.xlu1 %4154 }
 0x897   : > { %v8483_v56 = vpop.permute.xlu0 %4156 }
 0x899   : > { %v8485_v44 = vpop.permute.xlu1 %4158 }
 0x89f   : > { %v8493_v23 = vpop.permute.xlu0 %4160 }
 0x8a1   : > { %v8495_v43 = vpop.permute.xlu1 %4162 }
 0x8a3   : > { %v4373_v20 = vpop.permute.xlu0 %4372 }
 0x8a4   : > { %v4416_v50 = vsel %vm1611_vm1, %v8951_v62, %v4373_v20 }
 0x8a5   : > { %v4455_v12 = vmul.f32 %v4431_v19, %v4416_v50  ;;  %v4377_v37 = vpop.permute.xlu1 %4376 }
 0x8a6   : > { %v4417_v40 = vsel %vm1611_vm1, %v8952_v36, %v4377_v37 }
 0x8a7   : > { %v4461_v28 = vmul.f32 %v4431_v19, %v4417_v40  ;;  %v8510_v2 = vpop.permute.xlu0 %4374  ;;  %v4500_v1 = vadd.f32 %v4476_v58, %v4455_v12 }
 0x8a8   : > { %v4380_v18 = vsel %vm1611_vm1, %v4373_v20, %v8510_v2 }
 0x8a9   : > { %v4506_v54 = vadd.f32 %v4476_v58, %v4461_v28  ;;  %v4456_v38 = vmul.f32 %v4435_v0, %v4380_v18  ;;  %v8515_v26 = vpop.permute.xlu1 %4378 }
 0x8aa   : > { %v4381_v8 = vsel %vm1611_vm1, %v4377_v37, %v8515_v26 }
 0x8ab   : > { %v4462_v3 = vmul.f32 %v4435_v0, %v4381_v8  ;;  %v8520_v7 = vpop.permute.xlu0 %4392  ;;  %v4512_v15 = vpack.c.bf16 %v4506_v54, %v4500_v1  ;;  %v8522_v33 = vadd.f32 %v4480_v63, %v4456_v38 }
 0x8ad   : > { %v8524_v39 = vadd.f32 %v4480_v63, %v4462_v3  ;;  %v8526_v45 = vpop.permute.xlu1 %4396 }
 0x8af   : > { %v4513_v27 = vpack.c.bf16 %v8524_v39, %v8522_v33  ;;  %v8531_v35 = vpop.permute.xlu0 %4394  ;;  %v6634_v33 = vld [vmem:[%s8895_s13 + $0x148] sm:$0xff]  }
 0x8b0   : > { %v4400_v11 = vsel %vm1611_vm1, %v8520_v7, %v8531_v35  ;;  %v6635_v39 = vld [vmem:[%s8895_s13 + $0x108] sm:$0xff]  }
 0x8b1   : > { %v4458_v30 = vmul.f32 %v4443_v42, %v4400_v11  ;;  %v8537_v52 = vpop.permute.xlu1 %4398  ;;  %v6601_v11 = vld [vmem:[%s8895_s13] sm:$0xff]  }
 0x8b2   : > { %v4401_v14 = vsel %vm1611_vm1, %v8526_v45, %v8537_v52 }
 0x8b3   : > { %v4464_v29 = vmul.f32 %v4443_v42, %v4401_v14  ;;  %v8542_v9 = vadd.f32 %v4488_v51, %v4458_v30  ;;  %v6600_v42 = vld [vmem:[%s8895_s13 + $0x40] sm:$0xff]   ;;  %v6605_v30 = vld [vmem:[%s8895_s13 + $0x8] sm:$0xff]   ;;  %v6609_v14 = vld [vmem:[%s8895_s13 + $0x10] sm:$0xff]  }
 0x8b4   : > { %5958 = vmatprep.subr.bf16.mxu1 %v6600_v42 }
 0x8b5   : > { %v8544_v47 = vadd.f32 %v4488_v51, %v4464_v29  ;;  %v6604_v51 = vld [vmem:[%s8895_s13 + $0x48] sm:$0xff]   ;;  %v6612_v29 = vld [vmem:[%s8895_s13 + $0x58] sm:$0xff]  }
 0x8b7   : > { %v4515_v16 = vpack.c.bf16 %v8544_v47, %v8542_v9  ;;  %v6658_v9 = vld [vmem:[%s8897_s15 + $0x10] sm:$0xff]   ;;  %v6659_v47 = vld [vmem:[%s8897_s15 + $0x18] sm:$0xff]  }
 0x906   : > { %v6153_v5 = vpop.f32.mrb[180].mxu1 }
 0x907   : > { %v3933_v60 = vpop.f32.mrb[181].mxu1 }
 0x908   : > { %v6154_v25 = vpop.f32.mrb[182].mxu1 }
 0x909   : > { %v4077_v61 = vpack.c.bf16 %v6154_v25, %v6153_v5  ;;  %v3936_v19 = vpop.f32.mrb[183].mxu1  ;;  %v6613_v5 = vld [vmem:[%s8895_s13 + $0x18] sm:$0xff]   ;;  %v6617_v25 = vld [vmem:[%s8895_s13 + $0x20] sm:$0xff]  }
 0x90a   : > { %v4076_v24 = vpack.c.bf16 %v3936_v19, %v3933_v60  ;;  %v6616_v60 = vld [vmem:[%s8895_s13 + $0x60] sm:$0xff]   ;;  %v6621_v19 = vld [vmem:[%s8895_s13 + $0x28] sm:$0xff]  }
 0x90c   : > { %6175 = vmatprep.mubr.msk.bf16.mxu1 %vm1611_vm1, %v4076_v24  ;;  %v6624_v24 = vld [vmem:[%s8895_s13 + $0x70] sm:$0xff]  }
 0x90d   : > { %6176 = vmatmul.mubr.msk.bf16.vlgmr.msra.gmra.mrb[196].mxu1 %vm1611_vm1, %v4077_v61  ;;  %v6620_v61 = vld [vmem:[%s8895_s13 + $0x68] sm:$0xff]  }
 0x90e   : > { %v6157_v20 = vpop.f32.mrb[184].mxu1  ;;  %5959 = vmatpush3.bf16.msra.mxu1 %v6601_v11 }
 0x90f   : > { %v3949_v62 = vpop.f32.mrb[185].mxu1  ;;  %5960 = vmatprep.subr.bf16.mxu1 %v6604_v51 }
 0x910   : > { %v6158_v50 = vpop.f32.mrb[186].mxu1 }
 0x911   : > { %v4079_v58 = vpack.c.bf16 %v6158_v50, %v6157_v20  ;;  %v3952_v12 = vpop.f32.mrb[187].mxu1  ;;  %v4426_v20 = vsub.s32 0, %v8481_v13 }
 0x912   : > { %v4078_v37 = vpack.c.bf16 %v3952_v12, %v3949_v62  ;;  %5961 = vmatpush3.bf16.msra.mxu1 %v6605_v30  ;;  %v6625_v62 = vld [vmem:[%s8895_s13 + $0x30] sm:$0xff]   ;;  %v4367_v12 = vld [vmem:[%s613_s21 + $0x8] sm:$0xff] }
 0x913   : > { %v4427_v50 = vrot.slane %v8491_v59, %v4426_v20 }
 0x914   : > { %6179 = vmatprep.mubr.msk.bf16.mxu1 %vm1611_vm1, %v4078_v37  ;;  %v6628_v37 = vld [vmem:[%s8895_s13 + $0x78] sm:$0xff]  }
 0x915   : > { %6180 = vmatmul.mubr.msk.bf16.gmra.mrb[200].mxu1 %vm1611_vm1, %v4079_v58  ;;  %v4366_v58 = vld [vmem:[%s613_s21] sm:$0xff] }
 0x916   : > { %v6161_v0 = vpop.f32.mrb[188].mxu1 }
 0x917   : > { %v3965_v36 = vpop.f32.mrb[189].mxu1 }
 0x918   : > { %v6162_v40 = vpop.f32.mrb[190].mxu1 }
 0x919   : > { %v4081_v28 = vpack.c.bf16 %v6162_v40, %v6161_v0  ;;  %v3968_v63 = vpop.f32.mrb[191].mxu1  ;;  %v4454_v0 = vmul.f32 %v4427_v50, %v4366_v58  ;;  %v4472_v40 = vrot.slane %v8502_v17, %v4426_v20 }
 0x91a   : > { %v4080_v18 = vpack.c.bf16 %v3968_v63, %v3965_v36  ;;  %v4460_v36 = vmul.f32 %v4427_v50, %v4367_v12 }
 0x91b   : > { %v4499_v63 = vadd.f32 %v4472_v40, %v4454_v0 }
 0x91c   : > { %6183 = vmatprep.mubr.msk.bf16.mxu1 %vm1611_vm1, %v4080_v18  ;;  %v4505_v18 = vadd.f32 %v4472_v40, %v4460_v36 }
 0x91d   : > { %6184 = vmatmul.mubr.msk.bf16.gmra.mrb[204].mxu1 %vm1611_vm1, %v4081_v28  ;;  %v6629_v28 = vld [vmem:[%s8895_s13 + $0x38] sm:$0xff]  }
 0x91e   : > { %v6165_v1 = vpop.f32.mrb[192].mxu1 }
 0x91f   : > { %v3981_v54 = vpop.f32.mrb[193].mxu1 }
 0x920   : > { %v6166_v38 = vpop.f32.mrb[194].mxu1 }
 0x921   : > { %v4083_v10 = vpack.c.bf16 %v6166_v38, %v6165_v1  ;;  %v3984_v8 = vpop.f32.mrb[195].mxu1  ;;  %v4511_v1 = vpack.c.bf16 %v4505_v18, %v4499_v63 }
 0x922   : > { %v4082_v3 = vpack.c.bf16 %v3984_v8, %v3981_v54 }
 0x924   : > { %6187 = vmatprep.mubr.msk.bf16.mxu1 %vm1611_vm1, %v4082_v3 }
 0x925   : > { %6188 = vmatmul.mubr.msk.bf16.gmra.mrb[208].mxu1 %vm1611_vm1, %v4083_v10 }
 0x926   : > { %4938 = vmatprep.mubr.bf16.mxu1 %v4512_v15  ;;  %v6608_v15 = vld [vmem:[%s8895_s13 + $0x50] sm:$0xff]  }
 0x927   : > { %5962 = vmatprep.subr.bf16.mxu1 %v6608_v15 }
 0x928   : > { %5963 = vmatpush3.bf16.msra.mxu1 %v6609_v14 }
 0x929   : > { %5964 = vmatprep.subr.bf16.mxu1 %v6612_v29 }
 0x92c   : > { %5965 = vmatpush3.bf16.msra.mxu1 %v6613_v5 }
 0x92d   : > { %5966 = vmatprep.subr.bf16.mxu1 %v6616_v60 }
 0x930   : > { %5967 = vmatpush3.bf16.msra.mxu1 %v6617_v25 }
 0x931   : > { %5968 = vmatprep.subr.bf16.mxu1 %v6620_v61 }
 0x934   : > { %5969 = vmatpush3.bf16.msra.mxu1 %v6621_v19 }
 0x935   : > { %5970 = vmatprep.subr.bf16.mxu1 %v6624_v24 }
 0x938   : > { %5971 = vmatpush3.bf16.msra.mxu1 %v6625_v62 }
 0x939   : > { %5972 = vmatprep.subr.bf16.mxu1 %v6628_v37 }
 0x93c   : > { %5973 = vmatpush3.bf16.msra.mxu1 %v6629_v28 }
 0x93f   : > { %4939 = vmatmul.mubr.bf16.vlgmr.msra.gmra.mrb[212].mxu1 %v4511_v1 }
 0x9e0   : > { %v6177_v54 = vpop.f32.mrb[196].mxu1 }
 0x9e1   : > { %v4247_v38 = vadd.f32 %v6177_v54, %v8458_v49  ;;  %v4238_v10 = vpop.f32.mrb[197].mxu1 }
 0x9e2   : > { %v4239_v8 = vadd.f32 %v4238_v10, %v8454_v22  ;;  %v6178_v3 = vpop.f32.mrb[198].mxu1 }
 0x9e3   : > { %6832 = vtanh.f32 %v4247_v38  ;;  %v4250_v42 = vadd.f32 %v6178_v3, %v8463_v21  ;;  %v4241_v11 = vpop.f32.mrb[199].mxu1 }
 0x9e4   : > { %6834 = vtanh.f32 %v4239_v8  ;;  %v4242_v51 = vadd.f32 %v4241_v11, %v8456_v48  ;;  %v4419_v11 = vsel %vm1611_vm1, %v8515_v26, %v8526_v45  ;;  %v6602_v26 = vld [vmem:[%s8895_s13 + $0xc0] sm:$0xff]  }
 0x9e5   : > { %6836 = vtanh.f32 %v4250_v42 }
 0x9e6   : > { %6838 = vtanh.f32 %v4242_v51 }
 0x9e8   : > { %v6181_v30 = vpop.f32.mrb[200].mxu1 }
 0x9e9   : > { %v4263_v15 = vadd.f32 %v6181_v30, %v8469_v41  ;;  %v4254_v14 = vpop.f32.mrb[201].mxu1 }
 0x9ea   : > { %v4255_v29 = vadd.f32 %v4254_v14, %v8465_v4  ;;  %v6182_v49 = vpop.f32.mrb[202].mxu1  ;;  %v4418_v14 = vsel %vm1611_vm1, %v8510_v2, %v8520_v7  ;;  %v6603_v2 = vld [vmem:[%s8895_s13 + $0x80] sm:$0xff]   ;;  %v6606_v7 = vld [vmem:[%s8895_s13 + $0xc8] sm:$0xff]  }
 0x9eb   : > { %6840 = vtanh.f32 %v4263_v15  ;;  %v4266_v22 = vadd.f32 %v6182_v49, %v8471_v34  ;;  %v4257_v5 = vpop.f32.mrb[203].mxu1 }
 0x9ec   : > { %6842 = vtanh.f32 %v4255_v29  ;;  %v4258_v21 = vadd.f32 %v4257_v5, %v8467_v55 }
 0x9ed   : > { %v6833_v60 = vpop.eup %6832  ;;  %6844 = vtanh.f32 %v4266_v22 }
 0x9ee   : > { %v6835_v25 = vpop.eup %6834  ;;  %6846 = vtanh.f32 %v4258_v21 }
 0x9ef   : > { %v6837_v48 = vpop.eup %6836 }
 0x9f0   : > { %v6839_v61 = vpop.eup %6838  ;;  %v6185_v19 = vpop.f32.mrb[204].mxu1  ;;  %v4318_v24 = vpack.c.bf16 %v6837_v48, %v6833_v60  ;;  %v6607_v48 = vld [vmem:[%s8895_s13 + $0x88] sm:$0xff]  }
 0x9f1   : > { %v4279_v41 = vadd.f32 %v6185_v19, %v8477_v57  ;;  %v4270_v20 = vpop.f32.mrb[205].mxu1  ;;  %v4317_v4 = vpack.c.bf16 %v6839_v61, %v6835_v25  ;;  %v6610_v61 = vld [vmem:[%s8895_s13 + $0xd0] sm:$0xff]  }
 0x9f2   : > { %v4271_v62 = vadd.f32 %v4270_v20, %v8473_v6  ;;  %v6186_v50 = vpop.f32.mrb[206].mxu1  ;;  %v6611_v19 = vld [vmem:[%s8895_s13 + $0x90] sm:$0xff]   ;;  %v6619_v20 = vld [vmem:[%s8895_s13 + $0xa0] sm:$0xff]  }
 0x9f3   : > { %6848 = vtanh.f32 %v4279_v41  ;;  %v4282_v34 = vadd.f32 %v6186_v50, %v8479_v32  ;;  %v4273_v58 = vpop.f32.mrb[207].mxu1  ;;  %6192 = vmatpush3.bf16.msra.mxu0 %v4317_v4  ;;  %v6618_v41 = vld [vmem:[%s8895_s13 + $0xe0] sm:$0xff]   ;;  %v6622_v4 = vld [vmem:[%s8895_s13 + $0xe8] sm:$0xff]   ;;  %v6626_v50 = vld [vmem:[%s8895_s13 + $0xf0] sm:$0xff]  }
 0x9f4   : > { %6850 = vtanh.f32 %v4271_v62  ;;  %v4274_v55 = vadd.f32 %v4273_v58, %v8475_v53  ;;  %6193 = vmatprep.subr.bf16.mxu0 %v8949_v31  ;;  %v6623_v62 = vld [vmem:[%s8895_s13 + $0xa8] sm:$0xff]   ;;  %v6630_v58 = vld [vmem:[%s8895_s13 + $0xf8] sm:$0xff]  }
 0x9f5   : > { %v6841_v12 = vpop.eup %6840  ;;  %6852 = vtanh.f32 %v4282_v34  ;;  %v6627_v34 = vld [vmem:[%s8895_s13 + $0xb0] sm:$0xff]  }
 0x9f6   : > { %v6843_v37 = vpop.eup %6842  ;;  %6854 = vtanh.f32 %v4274_v55  ;;  %v6631_v55 = vld [vmem:[%s8895_s13 + $0xb8] sm:$0xff]  }
 0x9f7   : > { %v6845_v57 = vpop.eup %6844  ;;  %6194 = vmatpush3.bf16.msra.mxu0 %v4318_v24  ;;  %v6615_v24 = vld [vmem:[%s8895_s13 + $0x98] sm:$0xff]  }
 0x9f8   : > { %v6847_v0 = vpop.eup %6846  ;;  %v6189_v36 = vpop.f32.mrb[208].mxu1  ;;  %6195 = vmatprep.subr.bf16.mxu0 %v8949_v31  ;;  %v4320_v6 = vpack.c.bf16 %v6845_v57, %v6841_v12 }
 0x9f9   : > { %v4295_v32 = vadd.f32 %v6189_v36, %v8493_v23  ;;  %v4286_v40 = vpop.f32.mrb[209].mxu1  ;;  %v4319_v28 = vpack.c.bf16 %v6847_v0, %v6843_v37 }
 0x9fa   : > { %v4287_v63 = vadd.f32 %v4286_v40, %v8483_v56  ;;  %v6190_v53 = vpop.f32.mrb[210].mxu1  ;;  %v6633_v40 = vld [vmem:[%s8895_s13 + $0x100] sm:$0xff]  }
 0x9fb   : > { %6856 = vtanh.f32 %v4295_v32  ;;  %v4298_v18 = vadd.f32 %v6190_v53, %v8495_v43  ;;  %v4289_v1 = vpop.f32.mrb[211].mxu1  ;;  %6196 = vmatpush3.bf16.msra.mxu0 %v4319_v28  ;;  %v4438_v43 = vsub.s32 3, %v8481_v13  ;;  %v6632_v32 = vld [vmem:[%s8895_s13 + $0x140] sm:$0xff]   ;;  %v6637_v28 = vld [vmem:[%s8895_s13 + $0x110] sm:$0xff]   ;;  %v6639_v53 = vld [vmem:[%s8895_s13 + $0x118] sm:$0xff]  }
 0x9fc   : > { %6858 = vtanh.f32 %v4287_v63  ;;  %v4290_v54 = vadd.f32 %v4289_v1, %v8485_v44  ;;  %6197 = vmatprep.subr.bf16.mxu0 %v8949_v31  ;;  %6002 = vmatprep.subr.bf16.mxu1 %v6632_v32  ;;  %v6638_v63 = vld [vmem:[%s8895_s13 + $0x158] sm:$0xff]   ;;  %v6641_v1 = vld [vmem:[%s8895_s13 + $0x120] sm:$0xff]  }
 0x9fd   : > { %v6849_v38 = vpop.eup %6848  ;;  %6860 = vtanh.f32 %v4298_v18  ;;  %v4439_v30 = vrot.slane %v8491_v59, %v4438_v43  ;;  %v4484_v5 = vrot.slane %v8502_v17, %v4438_v43  ;;  %6003 = vmatpush3.bf16.msra.mxu1 %v6633_v40  ;;  %v6640_v18 = vld [vmem:[%s8895_s13 + $0x160] sm:$0xff]  }
 0x9fe   : > { %v6851_v10 = vpop.eup %6850  ;;  %6862 = vtanh.f32 %v4290_v54  ;;  %6004 = vmatprep.subr.bf16.mxu1 %v6634_v33  ;;  %v6642_v54 = vld [vmem:[%s8895_s13 + $0x168] sm:$0xff]  }
 0x9ff   : > { %v6853_v23 = vpop.eup %6852  ;;  %6198 = vmatpush3.bf16.msra.mxu0 %v4320_v6  ;;  %v4463_v49 = vmul.f32 %v4439_v30, %v4419_v11  ;;  %v4457_v21 = vmul.f32 %v4439_v30, %v4418_v14  ;;  %v6650_v30 = vld [vmem:[%s8896_s14 + $0x10] sm:$0xff]   ;;  %v6652_v14 = vld [vmem:[%s8896_s14 + $0x20] sm:$0xff]  }
 0xa00   : > { %v6855_v8 = vpop.eup %6854  ;;  %6199 = vmatprep.subr.bf16.mxu0 %v8949_v31  ;;  %v4322_v56 = vpack.c.bf16 %v6853_v23, %v6849_v38  ;;  %v6643_v38 = vld [vmem:[%s8895_s13 + $0x128] sm:$0xff]   ;;  %v6645_v23 = vld [vmem:[%s8895_s13 + $0x130] sm:$0xff]  }
 0xa01   : > { %v4321_v3 = vpack.c.bf16 %v6855_v8, %v6851_v10  ;;  %v4508_v45 = vadd.f32 %v4484_v5, %v4463_v49  ;;  %v4502_v60 = vadd.f32 %v4484_v5, %v4457_v21  ;;  %6005 = vmatpush3.bf16.msra.mxu1 %v6635_v39  ;;  %v6644_v10 = vld [vmem:[%s8895_s13 + $0x170] sm:$0xff]   ;;  %v6646_v8 = vld [vmem:[%s8895_s13 + $0x178] sm:$0xff]  }
 0xa03   : > { %6200 = vmatpush3.bf16.msra.mxu0 %v4321_v3  ;;  %v4514_v25 = vpack.c.bf16 %v4508_v45, %v4502_v60  ;;  %v6648_v3 = vld [vmem:[%s8896_s14] sm:$0xff]  }
 0xa04   : > { %6201 = vmatprep.subr.bf16.mxu0 %v8949_v31 }
 0xa05   : > { %v6857_v42 = vpop.eup %6856 }
 0xa06   : > { %v6859_v44 = vpop.eup %6858 }
 0xa07   : > { %v6861_v51 = vpop.eup %6860  ;;  %6202 = vmatpush3.bf16.msra.mxu0 %v4322_v56  ;;  %v6647_v56 = vld [vmem:[%s8895_s13 + $0x138] sm:$0xff]  }
 0xa08   : > { %v6863_v15 = vpop.eup %6862  ;;  %6203 = vmatprep.subr.bf16.mxu0 %v8949_v31  ;;  %v4324_v29 = vpack.c.bf16 %v6861_v51, %v6857_v42  ;;  %v6649_v42 = vld [vmem:[%s8896_s14 + $0x8] sm:$0xff]  }
 0xa09   : > { %v4323_v22 = vpack.c.bf16 %v6863_v15, %v6859_v44  ;;  %v6651_v15 = vld [vmem:[%s8896_s14 + $0x18] sm:$0xff]  }
 0xa0b   : > { %6204 = vmatpush3.bf16.msra.mxu0 %v4323_v22 }
 0xa0c   : > { %6205 = vmatprep.subr.bf16.mxu0 %v8949_v31 }
 0xa0f   : > { %6206 = vmatpush3.bf16.msra.mxu0 %v4324_v29  ;;  %v5737_v29 = vld [vmem:[%s8899_s17] ss:$0 sm:$0xff] }
 0xa10   : > { %5980 = vmatprep.subr.bf16.mxu0 %v6602_v26 }
 0xa12   : > { %6208 = vmatmul.mubr.bf16.vlgmr.msra.gmra.mrb[216].mxu0 %v8341_v46  ;;  %v6614_v46 = vld [vmem:[%s8895_s13 + $0xd8] sm:$0xff]   ;;  %v5974_v12 = vpop.f32.mrb[212].mxu1 }
 0xa13   : > { %5981 = vmatpush3.bf16.msra.mxu0 %v6603_v2  ;;  %4979 = vmatprep.mubr.bf16.mxu0 %v4514_v25  ;;  %v5975_v37 = vpop.f32.mrb[213].mxu1 }
 0xa14   : > { %5982 = vmatprep.subr.bf16.mxu0 %v6606_v7  ;;  %v5976_v57 = vadd.f32 %v5975_v37, %v5974_v12  ;;  %v5977_v0 = vpop.f32.mrb[214].mxu1 }
 0xa15   : > { %v5978_v36 = vpop.f32.mrb[215].mxu1 }
 0xa16   : > { %v5979_v6 = vadd.f32 %v5978_v36, %v5977_v0  ;;  %v4941_v49 = vadd.f32 %v5976_v57, %v5737_v29 }
 0xa17   : > { %5983 = vmatpush3.bf16.msra.mxu0 %v6607_v48  ;;  %v4446_v48 = vsub.s32 5, %v8481_v13  ;;  %v6653_v13 = vld [vmem:[%s8896_s14 + $0x28] sm:$0xff]  }
 0xa18   : > { %5984 = vmatprep.subr.bf16.mxu0 %v6610_v61  ;;  %v4944_v21 = vadd.f32 %v5979_v6, %v5737_v29  ;;  %v5795_v29 = vld [vmem:[%s8899_s17 + $0x2] ss:$0 sm:$0xff] }
 0xa19   : > { %v4447_v61 = vrot.slane %v8491_v59, %v4446_v48  ;;  %v6654_v59 = vld [vmem:[%s8896_s14 + $0x30] sm:$0xff]  }
 0xa1b   : > { %5985 = vmatpush3.bf16.msra.mxu0 %v6611_v19 }
 0xa1c   : > { %5986 = vmatprep.subr.bf16.mxu0 %v6614_v46 }
 0xa1f   : > { %5987 = vmatpush3.bf16.msra.mxu0 %v6615_v24  ;;  %v4492_v24 = vrot.slane %v8502_v17, %v4446_v48  ;;  %v6655_v17 = vld [vmem:[%s8896_s14 + $0x38] sm:$0xff]  }
 0xa20   : > { %5988 = vmatprep.subr.bf16.mxu0 %v6618_v41 }
 0xa23   : > { %5989 = vmatpush3.bf16.msra.mxu0 %v6619_v20 }
 0xa24   : > { %5990 = vmatprep.subr.bf16.mxu0 %v6622_v4 }
 0xa27   : > { %5991 = vmatpush3.bf16.msra.mxu0 %v6623_v62 }
 0xa28   : > { %5992 = vmatprep.subr.bf16.mxu0 %v6626_v50 }
 0xa2b   : > { %5993 = vmatpush3.bf16.msra.mxu0 %v6627_v34 }
 0xa2c   : > { %5994 = vmatprep.subr.bf16.mxu0 %v6630_v58 }
 0xa2f   : > { %5995 = vmatpush3.bf16.msra.mxu0 %v6631_v55  ;;  %v6661_v55 = vld [vmem:[%s8897_s15 + $0x28] sm:$0xff]  }
 0xa30   : > { %6211 = vmatprep.subr.bf16.mxu0 %v8949_v31 }
 0xa32   : > { %4980 = vmatmul.mubr.bf16.vlgmr.msra.gmra.mrb[220].mxu0 %v4513_v27  ;;  %v6636_v27 = vld [vmem:[%s8895_s13 + $0x150] sm:$0xff]  }
 0xa33   : > { %6227 = vmatprep.mubr.msk.bf16.mxu0 %vm6895_vm0, %v8949_v31  ;;  %6006 = vmatprep.subr.bf16.mxu1 %v6636_v27 }
 0xa34   : > { %6007 = vmatpush3.bf16.msra.mxu1 %v6637_v28  ;;  %6212 = vmatpush3.bf16.msra.mxu0 %v6648_v3  ;;  %v6662_v28 = vld [vmem:[%s8897_s15 + $0x30] sm:$0xff]  }
 0xa35   : > { %6008 = vmatprep.subr.bf16.mxu1 %v6638_v63  ;;  %6213 = vmatprep.subr.bf16.mxu0 %v8949_v31  ;;  %v6663_v63 = vld [vmem:[%s8897_s15 + $0x38] sm:$0xff]  }
 0xa38   : > { %6009 = vmatpush3.bf16.msra.mxu1 %v6639_v53  ;;  %6214 = vmatpush3.bf16.msra.mxu0 %v6649_v42  ;;  %v6664_v53 = vld [vmem:[%s8898_s16] sm:$0xff]  }
 0xa39   : > { %6010 = vmatprep.subr.bf16.mxu1 %v6640_v18  ;;  %6215 = vmatprep.subr.bf16.mxu0 %v8949_v31  ;;  %v6665_v18 = vld [vmem:[%s8898_s16 + $0x8] sm:$0xff]  }
 0xa3c   : > { %6011 = vmatpush3.bf16.msra.mxu1 %v6641_v1  ;;  %6216 = vmatpush3.bf16.msra.mxu0 %v6650_v30  ;;  %v6666_v1 = vld [vmem:[%s8898_s16 + $0x10] sm:$0xff]  }
 0xa3d   : > { %6012 = vmatprep.subr.bf16.mxu1 %v6642_v54  ;;  %6217 = vmatprep.subr.bf16.mxu0 %v8949_v31  ;;  %v6667_v54 = vld [vmem:[%s8898_s16 + $0x18] sm:$0xff]  }
 0xa40   : > { %6013 = vmatpush3.bf16.msra.mxu1 %v6643_v38  ;;  %6218 = vmatpush3.bf16.msra.mxu0 %v6651_v15  ;;  %v6668_v38 = vld [vmem:[%s8898_s16 + $0x20] sm:$0xff]   ;;  %v6670_v15 = vld [vmem:[%s8898_s16 + $0x30] sm:$0xff]  }
 0xa41   : > { %6014 = vmatprep.subr.bf16.mxu1 %v6644_v10  ;;  %6219 = vmatprep.subr.bf16.mxu0 %v8949_v31  ;;  %v6669_v10 = vld [vmem:[%s8898_s16 + $0x28] sm:$0xff]  }
 0xa44   : > { %6015 = vmatpush3.bf16.msra.mxu1 %v6645_v23  ;;  %6220 = vmatpush3.bf16.msra.mxu0 %v6652_v14  ;;  %v5786_v23 = vld [vmem:[%s8899_s17 + $0x1] ss:$0 sm:$0xff]  ;;  %v6671_v14 = vld [vmem:[%s8898_s16 + $0x38] sm:$0xff]  }
 0xa45   : > { %6016 = vmatprep.subr.bf16.mxu1 %v6646_v8  ;;  %6221 = vmatprep.subr.bf16.mxu0 %v8949_v31 }
 0xa48   : > { %6017 = vmatpush3.bf16.msra.mxu1 %v6647_v56  ;;  %6222 = vmatpush3.bf16.msra.mxu0 %v6653_v13 }
 0xa49   : > { %6231 = vmatprep.subr.bf16.mxu1 %v8949_v31  ;;  %6223 = vmatprep.subr.bf16.mxu0 %v8949_v31 }
 0xa4c   : > { %6224 = vmatpush3.bf16.msra.mxu0 %v6654_v59 }
 0xa4d   : > { %6225 = vmatprep.subr.bf16.mxu0 %v8949_v31 }
 0xa50   : > { %6226 = vmatpush3.bf16.msra.mxu0 %v6655_v17 }
 0xa51   : > { %6251 = vmatprep.subr.bf16.mxu0 %v8949_v31 }
 0xae5   : > { %v4359_v43 = vpop.f32.mrb[216].mxu0 }
 0xae6   : > { %4410 = vrot.lane.b32.xlu0 %v4359_v43, %s8950_s2  ;;  %v6209_v44 = vpop.f32.mrb[217].mxu0 }
 0xae7   : > { %v4362_v11 = vpop.f32.mrb[218].mxu0 }
 0xae8   : > { %4412 = vrot.lane.b32.xlu1 %v4362_v11, %s8950_s2  ;;  %v6210_v51 = vpop.f32.mrb[219].mxu0  ;;  %s619_s2 = scalar_lea.vmem %s8900_s18, %s5480_s28 }
 0xb05   : > { %v5996_v22 = vpop.f32.mrb[220].mxu0 }
 0xb06   : > { %v5997_v5 = vpop.f32.mrb[221].mxu0 }
 0xb07   : > { %v5998_v26 = vadd.f32 %v5997_v5, %v5996_v22  ;;  %v5999_v45 = vpop.f32.mrb[222].mxu0 }
 0xb08   : > { %v6000_v60 = vpop.f32.mrb[223].mxu0 }
 0xb09   : > { %v4982_v2 = vadd.f32 %v5998_v26, %v4941_v49  ;;  %v6001_v7 = vadd.f32 %v6000_v60, %v5999_v45 }
 0xb0b   : > { %v4985_v25 = vadd.f32 %v6001_v7, %v4944_v21 }
 0xb58   : > { %v4411_v19 = vpop.permute.xlu0 %4410 }
 0xb59   : > { %v4420_v46 = vsel %vm1611_vm1, %v8531_v35, %v4411_v19  ;;  %v6656_v35 = vld [vmem:[%s8897_s15] sm:$0xff]  }
 0xb5a   : > { %v4459_v41 = vmul.f32 %v4447_v61, %v4420_v46  ;;  %v4413_v20 = vpop.permute.xlu1 %4412 }
 0xb5b   : > { %v4421_v4 = vsel %vm1611_vm1, %v8537_v52, %v4413_v20  ;;  %v6657_v52 = vld [vmem:[%s8897_s15 + $0x8] sm:$0xff]  }
 0xb5c   : > { %v4465_v62 = vmul.f32 %v4447_v61, %v4421_v4  ;;  %v4504_v50 = vadd.f32 %v4492_v24, %v4459_v41 }
 0xb5e   : > { %v4510_v34 = vadd.f32 %v4492_v24, %v4465_v62 }
 0xb60   : > { %v4516_v58 = vpack.c.bf16 %v4510_v34, %v4504_v50 }
 0xb62   : > { %5020 = vmatprep.mubr.bf16.mxu1 %v4516_v58 }
 0xb63   : > { %5021 = vmatmul.mubr.bf16.vlgmr.msra.gmra.mrb[216].mxu1 %v4515_v16  ;;  %v6660_v16 = vld [vmem:[%s8897_s15 + $0x20] sm:$0xff]  }
 0xb64   : > { %6247 = vmatprep.mubr.msk.bf16.mxu1 %vm6895_vm0, %v8949_v31  ;;  %6232 = vmatpush3.bf16.msra.mxu1 %v6656_v35 }
 0xb65   : > { %6233 = vmatprep.subr.bf16.mxu1 %v8949_v31 }
 0xb68   : > { %6234 = vmatpush3.bf16.msra.mxu1 %v6657_v52 }
 0xb69   : > { %6235 = vmatprep.subr.bf16.mxu1 %v8949_v31 }
 0xb6c   : > { %6236 = vmatpush3.bf16.msra.mxu1 %v6658_v9 }
 0xb6d   : > { %6237 = vmatprep.subr.bf16.mxu1 %v8949_v31 }
 0xb70   : > { %6238 = vmatpush3.bf16.msra.mxu1 %v6659_v47 }
 0xb71   : > { %6239 = vmatprep.subr.bf16.mxu1 %v8949_v31 }
 0xb74   : > { %6240 = vmatpush3.bf16.msra.mxu1 %v6660_v16 }
 0xb75   : > { %6241 = vmatprep.subr.bf16.mxu1 %v8949_v31 }
 0xb78   : > { %6242 = vmatpush3.bf16.msra.mxu1 %v6661_v55 }
 0xb79   : > { %6243 = vmatprep.subr.bf16.mxu1 %v8949_v31 }
 0xb7c   : > { %6244 = vmatpush3.bf16.msra.mxu1 %v6662_v28 }
 0xb7d   : > { %6245 = vmatprep.subr.bf16.mxu1 %v8949_v31 }
 0xb80   : > { %6246 = vmatpush3.bf16.msra.mxu1 %v6663_v63 }
 0xc36   : > { %v6018_v12 = vpop.f32.mrb[216].mxu1 }
 0xc37   : > { %v6019_v37 = vpop.f32.mrb[217].mxu1 }
 0xc38   : > { %v6020_v57 = vadd.f32 %v6019_v37, %v6018_v12  ;;  %v6021_v0 = vpop.f32.mrb[218].mxu1 }
 0xc39   : > { %v6022_v36 = vpop.f32.mrb[219].mxu1 }
 0xc3a   : > { %v5023_v6 = vadd.f32 %v6020_v57, %v4982_v2  ;;  %v6023_v32 = vadd.f32 %v6022_v36, %v6021_v0 }
 0xc3c   : > { %v5026_v40 = vadd.f32 %v6023_v32, %v4985_v25  ;;  %v5029_v33 = vmax.f32 %v5023_v6, 0.0 }
 0xc3e   : > { %v5030_v39 = vmax.f32 %v5026_v40, 0.0 }
 0xc40   : > { %v5031_v27 = vpack.c.bf16 %v5030_v39, %v5029_v33 }
 0xc42   : > { %6228 = vmatmul.mubr.bf16.vlgmr.msra.gmra.mrb[224].mxu0 %v5031_v27 }
 0xc43   : > { %6267 = vmatprep.mubr.msk.bf16.mxu0 %vm6895_vm0, %v8949_v31  ;;  %6252 = vmatpush3.bf16.msra.mxu0 %v6664_v53 }
 0xc44   : > { %6253 = vmatprep.subr.bf16.mxu0 %v8949_v31 }
 0xc47   : > { %6254 = vmatpush3.bf16.msra.mxu0 %v6665_v18 }
 0xc48   : > { %6255 = vmatprep.subr.bf16.mxu0 %v8949_v31 }
 0xc4b   : > { %6256 = vmatpush3.bf16.msra.mxu0 %v6666_v1 }
 0xc4c   : > { %6257 = vmatprep.subr.bf16.mxu0 %v8949_v31 }
 0xc4f   : > { %6258 = vmatpush3.bf16.msra.mxu0 %v6667_v54 }
 0xc50   : > { %6259 = vmatprep.subr.bf16.mxu0 %v8949_v31 }
 0xc53   : > { %6260 = vmatpush3.bf16.msra.mxu0 %v6668_v38 }
 0xc54   : > { %6261 = vmatprep.subr.bf16.mxu0 %v8949_v31 }
 0xc57   : > { %6262 = vmatpush3.bf16.msra.mxu0 %v6669_v10 }
 0xc58   : > { %6263 = vmatprep.subr.bf16.mxu0 %v8949_v31 }
 0xc5b   : > { %6264 = vmatpush3.bf16.msra.mxu0 %v6670_v15 }
 0xc5c   : > { %6265 = vmatprep.subr.bf16.mxu0 %v8949_v31  ;;  %v5804_v31 = vld [vmem:[%s8899_s17 + $0x3] ss:$0 sm:$0xff] }
 0xc5f   : > { %6266 = vmatpush3.bf16.msra.mxu0 %v6671_v14 }
 0xd15   : > { %v5135_v8 = vpop.f32.mrb[224].mxu0 }
 0xd16   : > { %v5136_v56 = vadd.f32 %v5786_v23, %v5135_v8  ;;  %v6229_v3 = vpop.f32.mrb[225].mxu0 }
 0xd17   : > { %v5138_v43 = vpop.f32.mrb[226].mxu0 }
 0xd18   : > { %v5139_v42 = vadd.f32 %v5786_v23, %v5138_v43  ;;  %v6230_v44 = vpop.f32.mrb[227].mxu0  ;;  %v5142_v11 = vmax.f32 %v5136_v56, 0.0 }
 0xd1a   : > { %v5143_v51 = vmax.f32 %v5139_v42, 0.0 }
 0xd1c   : > { %v5144_v30 = vpack.c.bf16 %v5143_v51, %v5142_v11 }
 0xd1e   : > { %6248 = vmatmul.mubr.bf16.vlgmr.msra.gmra.mrb[220].mxu1 %v5144_v30 }
 0xdf1   : > { %v5248_v49 = vpop.f32.mrb[220].mxu1 }
 0xdf2   : > { %v5249_v22 = vadd.f32 %v5795_v29, %v5248_v49  ;;  %v6249_v5 = vpop.f32.mrb[221].mxu1 }
 0xdf3   : > { %v5251_v21 = vpop.f32.mrb[222].mxu1 }
 0xdf4   : > { %v5252_v26 = vadd.f32 %v5795_v29, %v5251_v21  ;;  %v6250_v45 = vpop.f32.mrb[223].mxu1  ;;  %v5255_v60 = vmax.f32 %v5249_v22, 0.0 }
 0xdf6   : > { %v5256_v2 = vmax.f32 %v5252_v26, 0.0 }
 0xdf8   : > { %v5257_v7 = vpack.c.bf16 %v5256_v2, %v5255_v60 }
 0xdfa   : > { %6268 = vmatmul.mubr.bf16.vlgmr.msra.gmra.mrb[228].mxu0 %v5257_v7 }
 0xecd   : > { %v5361_v25 = vpop.f32.mrb[228].mxu0 }
 0xece   : > { %v5362_v48 = vadd.f32 %v5804_v31, %v5361_v25  ;;  %v6269_v61 = vpop.f32.mrb[229].mxu0 }
 0xecf   : > { %v5364_v19 = vpop.f32.mrb[230].mxu0 }
 0xed0   : > { %v5365_v46 = vadd.f32 %v5804_v31, %v5364_v19  ;;  %5368 = vmax.xlane.f32.xlu0 %v5362_v48  ;;  %v6270_v24 = vpop.f32.mrb[231].mxu0 }
 0xed2   : > { %5370 = vmax.xlane.f32.xlu1 %v5365_v46 }
 0xf5d   : > { %v5369_v41 = vpop.xlane.xlu0 %5368 }
 0xf5e   : > { %v5372_v20 = vsub.f32 %v5362_v48, %v5369_v41 }
 0xf5f   : > { %v5371_v4 = vpop.xlane.xlu1 %5370 }
 0xf60   : > { %v5374_v62 = vmul.f32 1.442695, %v5372_v20  ;;  %v5373_v50 = vsub.f32 %v5365_v46, %v5371_v4 }
 0xf62   : > { %6864 = vpow2.f32 %v5374_v62  ;;  %v5376_v34 = vmul.f32 1.442695, %v5373_v50 }
 0xf64   : > { %6866 = vpow2.f32 %v5376_v34 }
 0xf6c   : > { %v6865_v58 = vpop.eup %6864 }
 0xf6d   : > { %5378 = vadd.xlane.f32.xlu0 %v6865_v58 }
 0xf6e   : > { %v6867_v13 = vpop.eup %6866 }
 0xf71   : > { %5380 = vadd.xlane.f32.xlu0 %v6867_v13 }
 0xffa   : > { %v5379_v59 = vpop.xlane.xlu0 %5378 }
 0xffb   : > { %6868 = vlog2.f32 %v5379_v59 }
 0xffe   : > { %v5381_v17 = vpop.xlane.xlu0 %5380 }
 0xfff   : > { %6870 = vlog2.f32 %v5381_v17 }
0x1005   : > { %v6869_v35 = vpop.eup %6868 }
0x1006   : > { %v5383_v52 = vmul.f32 0.6931472, %v6869_v35 }
0x1008   : > { %v5386_v9 = vsub.f32 %v5372_v20, %v5383_v52 }
0x1009   : > { %v6871_v47 = vpop.eup %6870 }
0x100a   : > { %5388 = vst [vmem:[%s619_s2] sm:$0xff] %v5386_v9  ;;  %v5385_v16 = vmul.f32 0.6931472, %v6871_v47 }
0x100c   : > { %v5387_v55 = vsub.f32 %v5373_v50, %v5385_v16 }
0x100e   : > { %5389 = vst [vmem:[%s619_s2 + $0x8] sm:$0xff] %v5387_v55 }
0x100f PF: > { %s28_s27 = sadd.s32 1, %s6891_s27  }
0x1010   : > { %p25_p6 = scmp.ge.s32.totalorder %s28_s27, 4  }
0x1012   :  { %27 = sbr.rel (!%p25_p6) target bundleno = 4 (0x4), region = 129 }

</bundles_post_ra>
